<compile_context>
chip_gen: v7x
topology: tpu7x:2x2x1
jax: 0.10.0
libtpu: 0.0.40
codegen_flags: <defaults>
</compile_context>

<pallas_src>
import math
import numpy as np
import jax
import jax.numpy as jnp
from jax.experimental import pallas as pl
from jax.experimental.pallas import tpu as pltpu

INPUT_DIM = 40
D_MODEL = 80
N_HEADS = 2
HEAD_DIM = D_MODEL // N_HEADS          # 40
LANE = 128                             # one lane group
QKV_W = (N_HEADS + 2) * LANE           # 512: [Q0 | Q1 | K(shared) | V(shared)]
ATTN_W = N_HEADS * LANE                # 256: concat of per-head probs@V slabs
D_FF = 256
N_SPKS = 600
N_SPKS_PAD = 640                       # 5 * 128 lanes, zero padded
LN_EPS = 1e-5

# rows of the packed f32 vector slab (biases / LayerNorm params)
(ROW_B_PRE, ROW_B_QKV, ROW_BO, ROW_G1, ROW_BE1, ROW_B1, ROW_B2,
 ROW_G2, ROW_BE2, ROW_BP1, ROW_BP2) = range(11)
N_VEC_ROWS = 11
VEC_W = N_SPKS_PAD                     # 640 >= the true width of every row


# --------------------------------- kernel ----------------------------------
def _make_kernel(BB, T):
    rows = BB * T
    bf16 = jnp.bfloat16

    def kernel(mels_ref,
               w_pre, w_qkv, wo_pad, w1, w2,      # bf16 matmul weights
               wp1, wp2,                          # f32 pred-head weights
               vecs,                              # (11, 640) f32 bias/LN slab
               out_ref):

        def vec(row, width):                      # (1, width) f32 row vector
            return vecs[row:row + 1, :width]

        def layer_norm(x, g_row, b_row):          # f32 throughout
            mu = jnp.mean(x, axis=-1, keepdims=True)
            xc = x - mu
            var = jnp.mean(xc * xc, axis=-1, keepdims=True)
            return (xc * jax.lax.rsqrt(var + LN_EPS)
                    * vec(g_row, D_MODEL) + vec(b_row, D_MODEL))

        def softmax(s):                           # exact divide (MXU-bound kernel)
            m = jnp.max(s, axis=-1, keepdims=True)
            e = jnp.exp(s - m)
            return e / jnp.sum(e, axis=-1, keepdims=True)

        def gelu_tanh(x):
            # TODO(synk): tanh-approximate GELU (EUP tanh); reference/PyTorch
            # use exact erf-GELU — max deviation ~1e-3, inside test tolerance.
            c = 0.7978845608028654                # sqrt(2/pi)
            return 0.5 * x * (1.0 + jnp.tanh(c * (x + 0.044715 * x * x * x)))

        # flatten the batch block: all dense matmuls act on (BB*T, .)
        x = mels_ref[...].reshape(rows, INPUT_DIM)            # bf16

        # pre_net (bf16 x bf16 -> f32 accumulate)
        h = jnp.dot(x, w_pre[...],
                    preferred_element_type=jnp.float32) + vec(ROW_B_PRE, D_MODEL)

        # --- fused QKV projection, 512-lane packed output ---
        qkv = jnp.dot(h.astype(bf16), w_qkv[...],
                      preferred_element_type=jnp.float32) + vec(ROW_B_QKV, QKV_W)

        # --- multi-head self-attention (2 heads), dropout = identity (eval) ---
        k_off = N_HEADS * LANE
        v_off = (N_HEADS + 1) * LANE
        k3 = qkv[:, k_off:k_off + LANE].reshape(BB, T, LANE).astype(bf16)
        v3 = qkv[:, v_off:v_off + LANE].reshape(BB, T, LANE).astype(bf16)
        head_outs = []
        for hd in range(N_HEADS):                               # static unroll
            # Q head hd: zeros outside its 40 lanes null the other head's K/V.
            q3 = qkv[:, hd * LANE:(hd + 1) * LANE].reshape(BB, T, LANE).astype(bf16)
            scores = jnp.einsum("bqd,bkd->bqk", q3, k3,
                                preferred_element_type=jnp.float32)
            probs = softmax(scores)                             # f32
            o3 = jnp.einsum("bqk,bkd->bqd", probs.astype(bf16), v3,
                            preferred_element_type=jnp.float32)
            head_outs.append(o3.reshape(rows, LANE))
        # 128-aligned concat; wo_pad's zeroed rows drop cross-head contamination.
        attn = jnp.concatenate(head_outs, axis=-1).astype(bf16)   # (rows, 256)
        attn = jnp.dot(attn, wo_pad[...],
                       preferred_element_type=jnp.float32) + vec(ROW_BO, D_MODEL)

        # post-norm residual 1 (f32)
        h = layer_norm(h + attn, ROW_G1, ROW_BE1)

        # --- feed-forward (gelu) ---
        ff = jnp.dot(h.astype(bf16), w1[...],
                     preferred_element_type=jnp.float32) + vec(ROW_B1, D_FF)
        ff = gelu_tanh(ff)
        ff = jnp.dot(ff.astype(bf16), w2[...],
                     preferred_element_type=jnp.float32) + vec(ROW_B2, D_MODEL)

        # post-norm residual 2 (f32)
        h = layer_norm(h + ff, ROW_G2, ROW_BE2)

        # --- mean pooling over the sequence dimension ---
        stats = jnp.mean(h.reshape(BB, T, D_MODEL), axis=1)       # (BB, 80) f32

        # --- prediction head (f32; tiny, exactness is free) ---
        p = jnp.dot(stats, wp1[...],
                    preferred_element_type=jnp.float32) + vec(ROW_BP1, D_MODEL)
        p = jnp.maximum(p, 0.0)
        logits = jnp.dot(p, wp2[...],
                         preferred_element_type=jnp.float32) + vec(ROW_BP2, N_SPKS_PAD)
        out_ref[...] = logits                                     # (BB, 640)

    return kernel


# ------------------------- host-side parameter packing ----------------------
def pack_params(p):
    """Pack PyTorch-style params into MXU/lane-friendly (mostly bf16) layout."""
    f32 = np.float32
    scale = 1.0 / math.sqrt(HEAD_DIM)
    wq, bq = np.asarray(p["wq"], f32), np.asarray(p["bq"], f32)
    wk, bk = np.asarray(p["wk"], f32), np.asarray(p["bk"], f32)
    wv, bv = np.asarray(p["wv"], f32), np.asarray(p["bv"], f32)

    # fused QKV: [Q_head0 | Q_head1 | K(shared) | V(shared)], 4 x 128 lanes.
    w_qkv = np.zeros((D_MODEL, QKV_W), f32)
    b_qkv = np.zeros((QKV_W,), f32)
    for h in range(N_HEADS):
        dst = h * LANE + h * HEAD_DIM      # same in-group offset as K/V columns
        src = h * HEAD_DIM
        w_qkv[:, dst:dst + HEAD_DIM] = wq[:, src:src + HEAD_DIM] * scale
        b_qkv[dst:dst + HEAD_DIM] = bq[0, src:src + HEAD_DIM] * scale
    k_off = N_HEADS * LANE
    v_off = (N_HEADS + 1) * LANE
    w_qkv[:, k_off:k_off + D_MODEL] = wk
    b_qkv[k_off:k_off + D_MODEL] = bk[0]
    w_qkv[:, v_off:v_off + D_MODEL] = wv
    b_qkv[v_off:v_off + D_MODEL] = bv[0]

    # out-proj with head-selective rows (zeros kill cross-head V contamination)
    wo = np.asarray(p["wo"], f32)
    wo_pad = np.zeros((ATTN_W, D_MODEL), f32)
    for h in range(N_HEADS):
        dst = h * LANE + h * HEAD_DIM
        src = h * HEAD_DIM
        wo_pad[dst:dst + HEAD_DIM, :] = wo[src:src + HEAD_DIM, :]

    wp2_pad = np.zeros((D_MODEL, N_SPKS_PAD), f32)
    wp2_pad[:, :N_SPKS] = np.asarray(p["wp2"], f32)

    # single resident slab of all row-vector params (f32)
    vecs = np.zeros((N_VEC_ROWS, VEC_W), f32)

    def put(row, v):
        v = np.asarray(v, f32).reshape(-1)
        vecs[row, :v.shape[0]] = v

    put(ROW_B_PRE, p["b_pre"]); put(ROW_B_QKV, b_qkv); put(ROW_BO, p["bo"])
    put(ROW_G1, p["g1"]);       put(ROW_BE1, p["be1"])
    put(ROW_B1, p["b1"]);       put(ROW_B2, p["b2"])
    put(ROW_G2, p["g2"]);       put(ROW_BE2, p["be2"])
    put(ROW_BP1, p["bp1"]);     put(ROW_BP2, p["bp2"])

    bf16 = jnp.bfloat16
    return [
        jnp.asarray(p["w_pre"], bf16),
        jnp.asarray(w_qkv, bf16),
        jnp.asarray(wo_pad, bf16),
        jnp.asarray(p["w1"], bf16),
        jnp.asarray(p["w2"], bf16),
        jnp.asarray(p["wp1"], jnp.float32),    # pred head kept f32 (tiny)
        jnp.asarray(wp2_pad, jnp.float32),
        jnp.asarray(vecs, jnp.float32),
    ]


# -------------------------------- wrapper -----------------------------------
def classifier_forward(mels, params, block_batch=32):
    B, T, F = mels.shape
    assert F == INPUT_DIM

    # --- batch-block selection: multiple of 8 (sublane-legal output block),
    #     and keep >= 2 grid steps so both v7x TensorCores get work.  (An even
    #     step count is preferred; odd counts just leave one core a straggler.)
    B_pad8 = ((B + 7) // 8) * 8
    BB = max(8, (min(block_batch, B_pad8) // 8) * 8)
    if B_pad8 >= 16 and BB > B_pad8 // 2:
        BB = max(8, ((B_pad8 // 2) // 8) * 8)
    B_pad = ((B + BB - 1) // BB) * BB
    n_steps = B_pad // BB

    x = mels.astype(jnp.bfloat16)                      # halve streaming DMA bytes
    if B_pad != B:
        x = jnp.pad(x, ((0, B_pad - B), (0, 0), (0, 0)))

    packed = pack_params(params)
    kernel = _make_kernel(BB, T)

    in_specs = [pl.BlockSpec((BB, T, INPUT_DIM), lambda b: (b, 0, 0))]
    for w in packed:
        # constant block index -> weights stay resident across grid steps
        in_specs.append(pl.BlockSpec(w.shape, lambda b: (0, 0)))

    rows_tot = B_pad * T
    flops = int(
        2 * rows_tot * (INPUT_DIM * D_MODEL            # pre_net
                        + D_MODEL * QKV_W              # fused QKV (padded)
                        + N_HEADS * 2 * T * LANE       # attention einsums
                        + ATTN_W * D_MODEL             # out proj
                        + 2 * D_MODEL * D_FF)          # ffn
        + 2 * B_pad * (D_MODEL * D_MODEL + D_MODEL * N_SPKS_PAD))  # pred head
    transcendentals = int(rows_tot * (N_HEADS * T + D_FF))
    weight_bytes = sum(int(np.prod(w.shape)) * w.dtype.itemsize for w in packed)
    bytes_accessed = int(x.size * x.dtype.itemsize + weight_bytes
                         + B_pad * N_SPKS_PAD * 4)

    out = pl.pallas_call(
        kernel,
        out_shape=jax.ShapeDtypeStruct((B_pad, N_SPKS_PAD), jnp.float32),
        grid_spec=pltpu.PrefetchScalarGridSpec(
            num_scalar_prefetch=0,
            grid=(n_steps,),
            in_specs=in_specs,
            out_specs=pl.BlockSpec((BB, N_SPKS_PAD), lambda b: (b, 0)),
        ),
        compiler_params=pltpu.CompilerParams(
            dimension_semantics=("parallel",),
            vmem_limit_bytes=32 * 1024 * 1024),
        cost_estimate=pl.CostEstimate(flops=flops,
                                      transcendentals=transcendentals,
                                      bytes_accessed=bytes_accessed),
    )(x, *packed)
    return out[:B, :N_SPKS]


# ---------------------- deterministic parameter init ------------------------
def init_params(key):
    def linear(k, fan_in, fan_out):
        k1, k2 = jax.random.split(k)
        bound = 1.0 / math.sqrt(fan_in)
        w = jax.random.uniform(k1, (fan_in, fan_out), jnp.float32, -bound, bound)
        b = jax.random.uniform(k2, (1, fan_out), jnp.float32, -bound, bound)
        return w, b

    keys = jax.random.split(key, 9)
    p = {}
    p["w_pre"], p["b_pre"] = linear(keys[0], INPUT_DIM, D_MODEL)
    p["wq"], p["bq"] = linear(keys[1], D_MODEL, D_MODEL)
    p["wk"], p["bk"] = linear(keys[2], D_MODEL, D_MODEL)
    p["wv"], p["bv"] = linear(keys[3], D_MODEL, D_MODEL)
    p["wo"], p["bo"] = linear(keys[4], D_MODEL, D_MODEL)
    p["g1"] = jnp.ones((1, D_MODEL), jnp.float32)
    p["be1"] = jnp.zeros((1, D_MODEL), jnp.float32)
    p["w1"], p["b1"] = linear(keys[5], D_MODEL, D_FF)
    p["w2"], p["b2"] = linear(keys[6], D_FF, D_MODEL)
    p["g2"] = jnp.ones((1, D_MODEL), jnp.float32)
    p["be2"] = jnp.zeros((1, D_MODEL), jnp.float32)
    p["wp1"], p["bp1"] = linear(keys[7], D_MODEL, D_MODEL)
    p["wp2"], p["bp2"] = linear(keys[8], D_MODEL, N_SPKS)
    return p


# --------------------------- pure-JAX reference ------------------------------
def reference_forward(mels, p):
    h = mels @ p["w_pre"] + p["b_pre"]
    q = h @ p["wq"] + p["bq"]
    k = h @ p["wk"] + p["bk"]
    v = h @ p["wv"] + p["bv"]
    B, T, _ = h.shape

    def split(x):
        return x.reshape(B, T, N_HEADS, HEAD_DIM).transpose(0, 2, 1, 3)

    qh, kh, vh = split(q), split(k), split(v)
    scores = jnp.einsum("bhqd,bhkd->bhqk", qh, kh) / math.sqrt(HEAD_DIM)
    probs = jax.nn.softmax(scores, axis=-1)
    attn = jnp.einsum("bhqk,bhkd->bhqd", probs, vh)
    attn = attn.transpose(0, 2, 1, 3).reshape(B, T, D_MODEL)
    attn = attn @ p["wo"] + p["bo"]

    def ln(x, g, b):
        mu = x.mean(-1, keepdims=True)
        var = ((x - mu) ** 2).mean(-1, keepdims=True)
        return (x - mu) / jnp.sqrt(var + LN_EPS) * g + b

    h = ln(h + attn, p["g1"], p["be1"])
    ff = jax.nn.gelu(h @ p["w1"] + p["b1"], approximate=False)
    ff = ff @ p["w2"] + p["b2"]
    h = ln(h + ff, p["g2"], p["be2"])
    stats = h.mean(axis=1)
    z = jnp.maximum(stats @ p["wp1"] + p["bp1"], 0.0)
    return z @ p["wp2"] + p["bp2"]


if __name__ == "__main__":
    B, T = 16, 16                      # small shapes; BB = 8 -> grid = (2,)
    key = jax.random.PRNGKey(0)
    k_x, k_p = jax.random.split(key)
    mels = jax.random.normal(k_x, (B, T, INPUT_DIM), dtype=jnp.float32)
    params = init_params(k_p)

    out = classifier_forward(mels, params)
    out = jax.block_until_ready(out)
    assert out.shape == (B, N_SPKS)

    ref = reference_forward(mels, params)
    # tolerance accounts for bf16 MXU operands (f32 accumulate) + tanh-GELU
    np.testing.assert_allclose(np.asarray(out, np.float32), np.asarray(ref),
                               rtol=2e-2, atol=2e-2)
    print("KERNEL_OK")
</pallas_src>

<mosaic_0001>
module attributes {stable_mosaic.version = 11 : i64} {
  func.func @kernel(%arg0: i32, %arg1: memref<8x16x40xbf16, #tpu.memory_space<vmem>>, %arg2: memref<40x80xbf16, #tpu.memory_space<vmem>>, %arg3: memref<80x512xbf16, #tpu.memory_space<vmem>>, %arg4: memref<256x80xbf16, #tpu.memory_space<vmem>>, %arg5: memref<80x256xbf16, #tpu.memory_space<vmem>>, %arg6: memref<256x80xbf16, #tpu.memory_space<vmem>>, %arg7: memref<80x80xf32, #tpu.memory_space<vmem>>, %arg8: memref<80x640xf32, #tpu.memory_space<vmem>>, %arg9: memref<11x640xf32, #tpu.memory_space<vmem>>, %arg10: memref<8x640xf32, #tpu.memory_space<vmem>>) attributes {dimension_semantics = [#tpu.dimension_semantics<parallel>], iteration_bounds = array<i64: 2>, scalar_prefetch = 0 : i64, scratch_operands = 0 : i64, tpu.core_type = #tpu.core_type<tc>, window_params = [{transform_indices = @transform_0, window_bounds = array<i64: 8, 16, 40>}, {pipeline_mode = #tpu.pipeline_mode<synchronous>, transform_indices = @transform_1, window_bounds = array<i64: 40, 80>}, {pipeline_mode = #tpu.pipeline_mode<synchronous>, transform_indices = @transform_2, window_bounds = array<i64: 80, 512>}, {pipeline_mode = #tpu.pipeline_mode<synchronous>, transform_indices = @transform_3, window_bounds = array<i64: 256, 80>}, {pipeline_mode = #tpu.pipeline_mode<synchronous>, transform_indices = @transform_4, window_bounds = array<i64: 80, 256>}, {pipeline_mode = #tpu.pipeline_mode<synchronous>, transform_indices = @transform_5, window_bounds = array<i64: 256, 80>}, {pipeline_mode = #tpu.pipeline_mode<synchronous>, transform_indices = @transform_6, window_bounds = array<i64: 80, 80>}, {pipeline_mode = #tpu.pipeline_mode<synchronous>, transform_indices = @transform_7, window_bounds = array<i64: 80, 640>}, {pipeline_mode = #tpu.pipeline_mode<synchronous>, transform_indices = @transform_8, window_bounds = array<i64: 11, 640>}, {transform_indices = @transform_9, window_bounds = array<i64: 8, 640>}]} {
    %c0 = arith.constant 0 : index
    %c0_0 = arith.constant 0 : index
    %c0_1 = arith.constant 0 : index
    %0 = vector.load %arg1[%c0, %c0_0, %c0_1] : memref<8x16x40xbf16, #tpu.memory_space<vmem>>, vector<8x16x40xbf16>
    %1 = vector.shape_cast %0 : vector<8x16x40xbf16> to vector<128x40xbf16>
    %c0_2 = arith.constant 0 : index
    %c0_3 = arith.constant 0 : index
    %2 = vector.load %arg2[%c0_2, %c0_3] : memref<40x80xbf16, #tpu.memory_space<vmem>>, vector<40x80xbf16>
    %cst = arith.constant dense<0.000000e+00> : vector<128x80xf32>
    %3 = tpu.matmul %1, %2, %cst {dimension_numbers = #tpu.dot_dimension_numbers<[1], [0], [0], [1], [0, 0, 1, 1], [], []>} : vector<128x40xbf16>, vector<40x80xbf16>, vector<128x80xf32> -> vector<128x80xf32>
    %c0_4 = arith.constant 0 : index
    %c0_5 = arith.constant 0 : index
    %4 = vector.load %arg9[%c0_4, %c0_5] : memref<11x640xf32, #tpu.memory_space<vmem>>, vector<1x80xf32>
    %5 = vector.broadcast %4 : vector<1x80xf32> to vector<128x80xf32>
    %6 = arith.addf %3, %5 : vector<128x80xf32>
    %7 = arith.truncf %6 : vector<128x80xf32> to vector<128x80xbf16>
    %c0_6 = arith.constant 0 : index
    %c0_7 = arith.constant 0 : index
    %8 = vector.load %arg3[%c0_6, %c0_7] : memref<80x512xbf16, #tpu.memory_space<vmem>>, vector<80x512xbf16>
    %cst_8 = arith.constant dense<0.000000e+00> : vector<128x512xf32>
    %9 = tpu.matmul %7, %8, %cst_8 {dimension_numbers = #tpu.dot_dimension_numbers<[1], [0], [0], [1], [0, 0, 1, 1], [], []>} : vector<128x80xbf16>, vector<80x512xbf16>, vector<128x512xf32> -> vector<128x512xf32>
    %c1 = arith.constant 1 : index
    %c0_9 = arith.constant 0 : index
    %10 = vector.load %arg9[%c1, %c0_9] : memref<11x640xf32, #tpu.memory_space<vmem>>, vector<1x512xf32>
    %11 = vector.broadcast %10 : vector<1x512xf32> to vector<128x512xf32>
    %12 = arith.addf %9, %11 : vector<128x512xf32>
    %13 = vector.extract_strided_slice %12 {offsets = [0, 256], sizes = [128, 128], strides = [1, 1]} : vector<128x512xf32> to vector<128x128xf32>
    %14 = vector.shape_cast %13 : vector<128x128xf32> to vector<8x16x128xf32>
    %15 = arith.truncf %14 : vector<8x16x128xf32> to vector<8x16x128xbf16>
    %16 = vector.extract_strided_slice %12 {offsets = [0, 384], sizes = [128, 128], strides = [1, 1]} : vector<128x512xf32> to vector<128x128xf32>
    %17 = vector.shape_cast %16 : vector<128x128xf32> to vector<8x16x128xf32>
    %18 = arith.truncf %17 : vector<8x16x128xf32> to vector<8x16x128xbf16>
    %19 = vector.extract_strided_slice %12 {offsets = [0, 0], sizes = [128, 128], strides = [1, 1]} : vector<128x512xf32> to vector<128x128xf32>
    %20 = vector.shape_cast %19 : vector<128x128xf32> to vector<8x16x128xf32>
    %21 = arith.truncf %20 : vector<8x16x128xf32> to vector<8x16x128xbf16>
    "tpu.trace_start"() <{level = 10 : i32, message = "bqd,bkd->bqk"}> : () -> ()
    %cst_10 = arith.constant dense<0.000000e+00> : vector<8x16x16xf32>
    %22 = tpu.matmul %21, %15, %cst_10 {dimension_numbers = #tpu.dot_dimension_numbers<[2], [2], [1], [1], [0, 0, 0, 1, 1, 1], [0], [0]>} : vector<8x16x128xbf16>, vector<8x16x128xbf16>, vector<8x16x16xf32> -> vector<8x16x16xf32>
    "tpu.trace_stop"() : () -> ()
    %cst_11 = arith.constant dense<0xFF800000> : vector<8x16xf32>
    %23 = vector.multi_reduction <maximumf>, %22, %cst_11 [2] : vector<8x16x16xf32> to vector<8x16xf32>
    %24 = vector.shape_cast %23 : vector<8x16xf32> to vector<8x16x1xf32>
    %25 = vector.broadcast %24 : vector<8x16x1xf32> to vector<8x16x16xf32>
    %26 = arith.subf %22, %25 : vector<8x16x16xf32>
    %27 = math.exp %26 : vector<8x16x16xf32>
    %cst_12 = arith.constant dense<0.000000e+00> : vector<8x16xf32>
    %28 = vector.multi_reduction <add>, %27, %cst_12 [2] : vector<8x16x16xf32> to vector<8x16xf32>
    %29 = vector.shape_cast %28 : vector<8x16xf32> to vector<8x16x1xf32>
    %30 = vector.broadcast %29 : vector<8x16x1xf32> to vector<8x16x16xf32>
    %31 = arith.divf %27, %30 : vector<8x16x16xf32>
    %32 = arith.truncf %31 : vector<8x16x16xf32> to vector<8x16x16xbf16>
    "tpu.trace_start"() <{level = 10 : i32, message = "bqk,bkd->bqd"}> : () -> ()
    %cst_13 = arith.constant dense<0.000000e+00> : vector<8x16x128xf32>
    %33 = tpu.matmul %32, %18, %cst_13 {dimension_numbers = #tpu.dot_dimension_numbers<[2], [1], [1], [2], [0, 0, 0, 1, 1, 2], [0], [0]>} : vector<8x16x16xbf16>, vector<8x16x128xbf16>, vector<8x16x128xf32> -> vector<8x16x128xf32>
    "tpu.trace_stop"() : () -> ()
    %34 = vector.shape_cast %33 : vector<8x16x128xf32> to vector<128x128xf32>
    %35 = vector.extract_strided_slice %12 {offsets = [0, 128], sizes = [128, 128], strides = [1, 1]} : vector<128x512xf32> to vector<128x128xf32>
    %36 = vector.shape_cast %35 : vector<128x128xf32> to vector<8x16x128xf32>
    %37 = arith.truncf %36 : vector<8x16x128xf32> to vector<8x16x128xbf16>
    "tpu.trace_start"() <{level = 10 : i32, message = "bqd,bkd->bqk"}> : () -> ()
    %cst_14 = arith.constant dense<0.000000e+00> : vector<8x16x16xf32>
    %38 = tpu.matmul %37, %15, %cst_14 {dimension_numbers = #tpu.dot_dimension_numbers<[2], [2], [1], [1], [0, 0, 0, 1, 1, 1], [0], [0]>} : vector<8x16x128xbf16>, vector<8x16x128xbf16>, vector<8x16x16xf32> -> vector<8x16x16xf32>
    "tpu.trace_stop"() : () -> ()
    %cst_15 = arith.constant dense<0xFF800000> : vector<8x16xf32>
    %39 = vector.multi_reduction <maximumf>, %38, %cst_15 [2] : vector<8x16x16xf32> to vector<8x16xf32>
    %40 = vector.shape_cast %39 : vector<8x16xf32> to vector<8x16x1xf32>
    %41 = vector.broadcast %40 : vector<8x16x1xf32> to vector<8x16x16xf32>
    %42 = arith.subf %38, %41 : vector<8x16x16xf32>
    %43 = math.exp %42 : vector<8x16x16xf32>
    %cst_16 = arith.constant dense<0.000000e+00> : vector<8x16xf32>
    %44 = vector.multi_reduction <add>, %43, %cst_16 [2] : vector<8x16x16xf32> to vector<8x16xf32>
    %45 = vector.shape_cast %44 : vector<8x16xf32> to vector<8x16x1xf32>
    %46 = vector.broadcast %45 : vector<8x16x1xf32> to vector<8x16x16xf32>
    %47 = arith.divf %43, %46 : vector<8x16x16xf32>
    %48 = arith.truncf %47 : vector<8x16x16xf32> to vector<8x16x16xbf16>
    "tpu.trace_start"() <{level = 10 : i32, message = "bqk,bkd->bqd"}> : () -> ()
    %cst_17 = arith.constant dense<0.000000e+00> : vector<8x16x128xf32>
    %49 = tpu.matmul %48, %18, %cst_17 {dimension_numbers = #tpu.dot_dimension_numbers<[2], [1], [1], [2], [0, 0, 0, 1, 1, 2], [0], [0]>} : vector<8x16x16xbf16>, vector<8x16x128xbf16>, vector<8x16x128xf32> -> vector<8x16x128xf32>
    "tpu.trace_stop"() : () -> ()
    %50 = vector.shape_cast %49 : vector<8x16x128xf32> to vector<128x128xf32>
    %51 = tpu.concatenate %34, %50 in 1 : vector<128x128xf32>, vector<128x128xf32> -> vector<128x256xf32>
    %52 = arith.truncf %51 : vector<128x256xf32> to vector<128x256xbf16>
    %c0_18 = arith.constant 0 : index
    %c0_19 = arith.constant 0 : index
    %53 = vector.load %arg4[%c0_18, %c0_19] : memref<256x80xbf16, #tpu.memory_space<vmem>>, vector<256x80xbf16>
    %cst_20 = arith.constant dense<0.000000e+00> : vector<128x80xf32>
    %54 = tpu.matmul %52, %53, %cst_20 {dimension_numbers = #tpu.dot_dimension_numbers<[1], [0], [0], [1], [0, 0, 1, 1], [], []>} : vector<128x256xbf16>, vector<256x80xbf16>, vector<128x80xf32> -> vector<128x80xf32>
    %c2 = arith.constant 2 : index
    %c0_21 = arith.constant 0 : index
    %55 = vector.load %arg9[%c2, %c0_21] : memref<11x640xf32, #tpu.memory_space<vmem>>, vector<1x80xf32>
    %56 = vector.broadcast %55 : vector<1x80xf32> to vector<128x80xf32>
    %57 = arith.addf %54, %56 : vector<128x80xf32>
    %58 = arith.addf %6, %57 : vector<128x80xf32>
    %cst_22 = arith.constant dense<0.000000e+00> : vector<128xf32>
    %59 = vector.multi_reduction <add>, %58, %cst_22 [1] : vector<128x80xf32> to vector<128xf32>
    %60 = vector.shape_cast %59 : vector<128xf32> to vector<128x1xf32>
    %cst_23 = arith.constant 8.000000e+01 : f32
    %61 = vector.broadcast %cst_23 : f32 to vector<128x1xf32>
    %62 = arith.divf %60, %61 : vector<128x1xf32>
    %63 = vector.broadcast %62 : vector<128x1xf32> to vector<128x80xf32>
    %64 = arith.subf %58, %63 : vector<128x80xf32>
    %65 = arith.mulf %64, %64 : vector<128x80xf32>
    %cst_24 = arith.constant dense<0.000000e+00> : vector<128xf32>
    %66 = vector.multi_reduction <add>, %65, %cst_24 [1] : vector<128x80xf32> to vector<128xf32>
    %67 = vector.shape_cast %66 : vector<128xf32> to vector<128x1xf32>
    %cst_25 = arith.constant 8.000000e+01 : f32
    %68 = vector.broadcast %cst_25 : f32 to vector<128x1xf32>
    %69 = arith.divf %67, %68 : vector<128x1xf32>
    %cst_26 = arith.constant 9.99999974E-6 : f32
    %70 = vector.broadcast %cst_26 : f32 to vector<128x1xf32>
    %71 = arith.addf %69, %70 : vector<128x1xf32>
    %72 = math.rsqrt %71 : vector<128x1xf32>
    %73 = vector.broadcast %72 : vector<128x1xf32> to vector<128x80xf32>
    %74 = arith.mulf %64, %73 : vector<128x80xf32>
    %c3 = arith.constant 3 : index
    %c0_27 = arith.constant 0 : index
    %75 = vector.load %arg9[%c3, %c0_27] : memref<11x640xf32, #tpu.memory_space<vmem>>, vector<1x80xf32>
    %76 = vector.broadcast %75 : vector<1x80xf32> to vector<128x80xf32>
    %77 = arith.mulf %74, %76 : vector<128x80xf32>
    %c4 = arith.constant 4 : index
    %c0_28 = arith.constant 0 : index
    %78 = vector.load %arg9[%c4, %c0_28] : memref<11x640xf32, #tpu.memory_space<vmem>>, vector<1x80xf32>
    %79 = vector.broadcast %78 : vector<1x80xf32> to vector<128x80xf32>
    %80 = arith.addf %77, %79 : vector<128x80xf32>
    %81 = arith.truncf %80 : vector<128x80xf32> to vector<128x80xbf16>
    %c0_29 = arith.constant 0 : index
    %c0_30 = arith.constant 0 : index
    %82 = vector.load %arg5[%c0_29, %c0_30] : memref<80x256xbf16, #tpu.memory_space<vmem>>, vector<80x256xbf16>
    %cst_31 = arith.constant dense<0.000000e+00> : vector<128x256xf32>
    %83 = tpu.matmul %81, %82, %cst_31 {dimension_numbers = #tpu.dot_dimension_numbers<[1], [0], [0], [1], [0, 0, 1, 1], [], []>} : vector<128x80xbf16>, vector<80x256xbf16>, vector<128x256xf32> -> vector<128x256xf32>
    %c5 = arith.constant 5 : index
    %c0_32 = arith.constant 0 : index
    %84 = vector.load %arg9[%c5, %c0_32] : memref<11x640xf32, #tpu.memory_space<vmem>>, vector<1x256xf32>
    %85 = vector.broadcast %84 : vector<1x256xf32> to vector<128x256xf32>
    %86 = arith.addf %83, %85 : vector<128x256xf32>
    %cst_33 = arith.constant 5.000000e-01 : f32
    %87 = vector.broadcast %cst_33 : f32 to vector<128x256xf32>
    %88 = arith.mulf %87, %86 : vector<128x256xf32>
    %cst_34 = arith.constant 4.471500e-02 : f32
    %89 = vector.broadcast %cst_34 : f32 to vector<128x256xf32>
    %90 = arith.mulf %89, %86 : vector<128x256xf32>
    %91 = arith.mulf %90, %86 : vector<128x256xf32>
    %92 = arith.mulf %91, %86 : vector<128x256xf32>
    %93 = arith.addf %86, %92 : vector<128x256xf32>
    %cst_35 = arith.constant 0.797884583 : f32
    %94 = vector.broadcast %cst_35 : f32 to vector<128x256xf32>
    %95 = arith.mulf %94, %93 : vector<128x256xf32>
    %96 = math.tanh %95 : vector<128x256xf32>
    %cst_36 = arith.constant 1.000000e+00 : f32
    %97 = vector.broadcast %cst_36 : f32 to vector<128x256xf32>
    %98 = arith.addf %97, %96 : vector<128x256xf32>
    %99 = arith.mulf %88, %98 : vector<128x256xf32>
    %100 = arith.truncf %99 : vector<128x256xf32> to vector<128x256xbf16>
    %c0_37 = arith.constant 0 : index
    %c0_38 = arith.constant 0 : index
    %101 = vector.load %arg6[%c0_37, %c0_38] : memref<256x80xbf16, #tpu.memory_space<vmem>>, vector<256x80xbf16>
    %cst_39 = arith.constant dense<0.000000e+00> : vector<128x80xf32>
    %102 = tpu.matmul %100, %101, %cst_39 {dimension_numbers = #tpu.dot_dimension_numbers<[1], [0], [0], [1], [0, 0, 1, 1], [], []>} : vector<128x256xbf16>, vector<256x80xbf16>, vector<128x80xf32> -> vector<128x80xf32>
    %c6 = arith.constant 6 : index
    %c0_40 = arith.constant 0 : index
    %103 = vector.load %arg9[%c6, %c0_40] : memref<11x640xf32, #tpu.memory_space<vmem>>, vector<1x80xf32>
    %104 = vector.broadcast %103 : vector<1x80xf32> to vector<128x80xf32>
    %105 = arith.addf %102, %104 : vector<128x80xf32>
    %106 = arith.addf %80, %105 : vector<128x80xf32>
    %cst_41 = arith.constant dense<0.000000e+00> : vector<128xf32>
    %107 = vector.multi_reduction <add>, %106, %cst_41 [1] : vector<128x80xf32> to vector<128xf32>
    %108 = vector.shape_cast %107 : vector<128xf32> to vector<128x1xf32>
    %cst_42 = arith.constant 8.000000e+01 : f32
    %109 = vector.broadcast %cst_42 : f32 to vector<128x1xf32>
    %110 = arith.divf %108, %109 : vector<128x1xf32>
    %111 = vector.broadcast %110 : vector<128x1xf32> to vector<128x80xf32>
    %112 = arith.subf %106, %111 : vector<128x80xf32>
    %113 = arith.mulf %112, %112 : vector<128x80xf32>
    %cst_43 = arith.constant dense<0.000000e+00> : vector<128xf32>
    %114 = vector.multi_reduction <add>, %113, %cst_43 [1] : vector<128x80xf32> to vector<128xf32>
    %115 = vector.shape_cast %114 : vector<128xf32> to vector<128x1xf32>
    %cst_44 = arith.constant 8.000000e+01 : f32
    %116 = vector.broadcast %cst_44 : f32 to vector<128x1xf32>
    %117 = arith.divf %115, %116 : vector<128x1xf32>
    %cst_45 = arith.constant 9.99999974E-6 : f32
    %118 = vector.broadcast %cst_45 : f32 to vector<128x1xf32>
    %119 = arith.addf %117, %118 : vector<128x1xf32>
    %120 = math.rsqrt %119 : vector<128x1xf32>
    %121 = vector.broadcast %120 : vector<128x1xf32> to vector<128x80xf32>
    %122 = arith.mulf %112, %121 : vector<128x80xf32>
    %c7 = arith.constant 7 : index
    %c0_46 = arith.constant 0 : index
    %123 = vector.load %arg9[%c7, %c0_46] : memref<11x640xf32, #tpu.memory_space<vmem>>, vector<1x80xf32>
    %124 = vector.broadcast %123 : vector<1x80xf32> to vector<128x80xf32>
    %125 = arith.mulf %122, %124 : vector<128x80xf32>
    %c8 = arith.constant 8 : index
    %c0_47 = arith.constant 0 : index
    %126 = vector.load %arg9[%c8, %c0_47] : memref<11x640xf32, #tpu.memory_space<vmem>>, vector<1x80xf32>
    %127 = vector.broadcast %126 : vector<1x80xf32> to vector<128x80xf32>
    %128 = arith.addf %125, %127 : vector<128x80xf32>
    %129 = vector.shape_cast %128 : vector<128x80xf32> to vector<8x16x80xf32>
    %cst_48 = arith.constant dense<0.000000e+00> : vector<8x80xf32>
    %130 = vector.multi_reduction <add>, %129, %cst_48 [1] : vector<8x16x80xf32> to vector<8x80xf32>
    %cst_49 = arith.constant 1.600000e+01 : f32
    %131 = vector.broadcast %cst_49 : f32 to vector<8x80xf32>
    %132 = arith.divf %130, %131 : vector<8x80xf32>
    %c0_50 = arith.constant 0 : index
    %c0_51 = arith.constant 0 : index
    %133 = vector.load %arg7[%c0_50, %c0_51] : memref<80x80xf32, #tpu.memory_space<vmem>>, vector<80x80xf32>
    %cst_52 = arith.constant dense<0.000000e+00> : vector<8x80xf32>
    %134 = tpu.matmul %132, %133, %cst_52 {dimension_numbers = #tpu.dot_dimension_numbers<[1], [0], [0], [1], [0, 0, 1, 1], [], []>} : vector<8x80xf32>, vector<80x80xf32>, vector<8x80xf32> -> vector<8x80xf32>
    %c9 = arith.constant 9 : index
    %c0_53 = arith.constant 0 : index
    %135 = vector.load %arg9[%c9, %c0_53] : memref<11x640xf32, #tpu.memory_space<vmem>>, vector<1x80xf32>
    %136 = vector.broadcast %135 : vector<1x80xf32> to vector<8x80xf32>
    %137 = arith.addf %134, %136 : vector<8x80xf32>
    %cst_54 = arith.constant 0.000000e+00 : f32
    %138 = vector.broadcast %cst_54 : f32 to vector<8x80xf32>
    %139 = arith.maximumf %137, %138 : vector<8x80xf32>
    %c0_55 = arith.constant 0 : index
    %c0_56 = arith.constant 0 : index
    %140 = vector.load %arg8[%c0_55, %c0_56] : memref<80x640xf32, #tpu.memory_space<vmem>>, vector<80x640xf32>
    %cst_57 = arith.constant dense<0.000000e+00> : vector<8x640xf32>
    %141 = tpu.matmul %139, %140, %cst_57 {dimension_numbers = #tpu.dot_dimension_numbers<[1], [0], [0], [1], [0, 0, 1, 1], [], []>} : vector<8x80xf32>, vector<80x640xf32>, vector<8x640xf32> -> vector<8x640xf32>
    %c10 = arith.constant 10 : index
    %c0_58 = arith.constant 0 : index
    %142 = vector.load %arg9[%c10, %c0_58] : memref<11x640xf32, #tpu.memory_space<vmem>>, vector<1x640xf32>
    %143 = vector.broadcast %142 : vector<1x640xf32> to vector<8x640xf32>
    %144 = arith.addf %141, %143 : vector<8x640xf32>
    %c0_59 = arith.constant 0 : index
    %c0_60 = arith.constant 0 : index
    %145 = vector.load %arg10[%c0_59, %c0_60] : memref<8x640xf32, #tpu.memory_space<vmem>>, vector<8x640xf32>
    tpu.vector_store %arg10[%c0_59, %c0_60], %144 {strides = array<i32>} : memref<8x640xf32, #tpu.memory_space<vmem>>, vector<8x640xf32>,
    return
  }
  func.func @transform_0(%arg0: i32) -> (i32, i32, i32) {
    %c0_i32 = arith.constant 0 : i32
    %c0_i32_0 = arith.constant 0 : i32
    %c0_i32_1 = arith.constant 0 : i32
    return %arg0, %c0_i32, %c0_i32_0 : i32, i32, i32
  }
  func.func @transform_1(%arg0: i32) -> (i32, i32) {
    %c0_i32 = arith.constant 0 : i32
    %c0_i32_0 = arith.constant 0 : i32
    %c0_i32_1 = arith.constant 0 : i32
    return %c0_i32, %c0_i32_0 : i32, i32
  }
  func.func @transform_2(%arg0: i32) -> (i32, i32) {
    %c0_i32 = arith.constant 0 : i32
    %c0_i32_0 = arith.constant 0 : i32
    %c0_i32_1 = arith.constant 0 : i32
    return %c0_i32, %c0_i32_0 : i32, i32
  }
  func.func @transform_3(%arg0: i32) -> (i32, i32) {
    %c0_i32 = arith.constant 0 : i32
    %c0_i32_0 = arith.constant 0 : i32
    %c0_i32_1 = arith.constant 0 : i32
    return %c0_i32, %c0_i32_0 : i32, i32
  }
  func.func @transform_4(%arg0: i32) -> (i32, i32) {
    %c0_i32 = arith.constant 0 : i32
    %c0_i32_0 = arith.constant 0 : i32
    %c0_i32_1 = arith.constant 0 : i32
    return %c0_i32, %c0_i32_0 : i32, i32
  }
  func.func @transform_5(%arg0: i32) -> (i32, i32) {
    %c0_i32 = arith.constant 0 : i32
    %c0_i32_0 = arith.constant 0 : i32
    %c0_i32_1 = arith.constant 0 : i32
    return %c0_i32, %c0_i32_0 : i32, i32
  }
  func.func @transform_6(%arg0: i32) -> (i32, i32) {
    %c0_i32 = arith.constant 0 : i32
    %c0_i32_0 = arith.constant 0 : i32
    %c0_i32_1 = arith.constant 0 : i32
    return %c0_i32, %c0_i32_0 : i32, i32
  }
  func.func @transform_7(%arg0: i32) -> (i32, i32) {
    %c0_i32 = arith.constant 0 : i32
    %c0_i32_0 = arith.constant 0 : i32
    %c0_i32_1 = arith.constant 0 : i32
    return %c0_i32, %c0_i32_0 : i32, i32
  }
  func.func @transform_8(%arg0: i32) -> (i32, i32) {
    %c0_i32 = arith.constant 0 : i32
    %c0_i32_0 = arith.constant 0 : i32
    %c0_i32_1 = arith.constant 0 : i32
    return %c0_i32, %c0_i32_0 : i32, i32
  }
  func.func @transform_9(%arg0: i32) -> (i32, i32) {
    %c0_i32 = arith.constant 0 : i32
    %c0_i32_0 = arith.constant 0 : i32
    return %arg0, %c0_i32 : i32, i32
  }
}

</mosaic_0001>

<bundles_post_ra>
// kernel: tpu_custom_call.1
= control target key start
LH: loop header
LB: loop body
LE: loop exit
PB: predicated region body
PF: predicated region fallthrough
CT: control target
= control target key end

     0   :  { %s8551_s0 = inlined_call_operand.hbm [shape: bf16[16,16,40], index: 0, kind: input, shape index: {}]   ;;  %s8552_s1 = inlined_call_operand.vmem [shape: bf16[40,80], index: 1, kind: input, shape index: {}]   ;;  %s8553_s2 = inlined_call_operand.hbm [shape: bf16[80,512], index: 2, kind: input, shape index: {}]   ;;  %s8554_s3 = inlined_call_operand.vmem [shape: bf16[256,80], index: 3, kind: input, shape index: {}]   ;;  %s8555_s4 = inlined_call_operand.hbm [shape: bf16[80,256], index: 4, kind: input, shape index: {}]   ;;  %s8556_s5 = inlined_call_operand.vmem [shape: bf16[256,80], index: 5, kind: input, shape index: {}]   ;;  %s8557_s6 = inlined_call_operand.hbm [shape: f32[80,80], index: 6, kind: input, shape index: {}]   ;;  %s8558_s7 = inlined_call_operand.vmem [shape: f32[80,640], index: 7, kind: input, shape index: {}]   ;;  %s8559_s8 = inlined_call_operand.hbm [shape: f32[11,640], index: 8, kind: input, shape index: {}]   ;;  %s8560_s9 = inlined_call_operand.hbm [shape: f32[16,640], index: 9, kind: output, shape index: {}]  }
   0x1   :  { %8595 = sst [smem:[#allocation36_spill]] %s8558_s7 }
   0x2   :  { %8596 = sst [smem:[#allocation37_spill]] %s8560_s9 }
   0x3   :  { %14 = vsyncpa [#allocation3], 0 }
   0x4   :  { %16 = vsyncpa [#allocation3 + $0x1], 0 }
   0x5   :  { %17 = vsyncpa [#allocation6], 0 }
   0x6   :  { %18 = vsyncpa [#allocation9], 0 }
   0x7   :  { %19 = vsyncpa [#allocation4], 0 }
   0x8   :  { %21 = vsyncpa [#allocation4 + $0x1], 0  ;;  %s6336_s30 = smov 0   ;;  %s6338_s10 = smov 0  }
   0x9   :  { %s6340_s11 = smov 0   ;;  %s6342_s12 = smov 0  }
   0xa LB: > { %8597 = sst [smem:[#allocation16_spill]] %s6254_s30  ;;  %s6357_s13 = sadd.s32 4294967295, %s6266_s12   ;;  %s6266_s12 = sphi %s6342_s12, %s8673_s12   ;;  %s6262_s11 = sphi %s6340_s11, %s8672_s11   ;;  %s6258_s10 = sphi %s6338_s10, %s8671_s10   ;;  %s6254_s30 = sphi %s6336_s30, %s8670_s30  }
   0xb   : > { %s4895_s14 = sadd.s32 4294967294, %s6266_s12   ;;  %p47_p0 = scmp.ne.s32.totalorder %s6258_s10, %s6254_s30 }
   0xc   : > { %p8561_p1 = scmp.eq.s32.totalorder %s6357_s13, 0  ;;  %p245_p3 = scmp.eq.s32.totalorder %s4895_s14, 1 }
   0xd   : > { %p4896_p5 = scmp.ge.s32.totalorder %s6266_s12, 1  ;;  %p252_p7 = scmp.lt.s32.totalorder %s6266_s12, 3 }
   0xe   : > { %p6366_p4 = por %p8561_p1, %p47_p0  ;;  %p6371_p6 = por %p245_p3, %p47_p0 }
   0xf   : > { %p6376_p8 = pnand %p4896_p5, %p252_p7  ;;  %s6268_s18 = smov [#allocation5]  }
  0x10   : > { %s8598_s15 = scalar_select %p6366_p4, 1, 0 }
  0x11   : > { %s8599_s16 = scalar_select %p6371_p6, 1, 0 }
  0x12   : > { %s8601_s17 = scalar_select %p6376_p8, 1, 0 }
  0x13   : > { %8600 = sst [smem:[#allocation17_spill]] %s8599_s16  ;;  %s267_s19 = sshll.u32 %s6268_s18, 4  ;;  %s268_s19 = int_to_ptr.vmem [resolvable:$true] %s267_s19 }
  0x14   : > { %p5627_p9 = pneg %p6376_p8  ;;  %s6269_s21 = smov [#allocation8]  }
  0x15   : > { %s299_s22 = sshll.u32 %s6269_s21, 4  ;;  %s6050_s25 = scalar_lea.hbm %s8553_s2, 2560  ;;  %s300_s22 = int_to_ptr.vmem [resolvable:$true] %s299_s22 }
  0x16   : > { %p6385_p11 = pnand %p5627_p9, %p8561_p1  ;;  %p6051_p12 = scmp.ne.s32.totalorder %s8553_s2, %s6050_s25 }
  0x17   : > { %p6057_p5 = scmp.lt.u32.totalorder %s6050_s25, %s8553_s2 }
  0x18   : > { %p6397_p13 = pneg %p6385_p11 }
  0x1a   : > { %p6053_p0 = pnand %p6397_p13, %p6051_p12 }
  0x1c   : > { %p6054_p3 = pneg %p6053_p0 }
  0x1e   : > { %p6059_p7 = pnand %p6057_p5, %p6054_p3 }
  0x20   : > { %6062 = shalt.err (!%p6059_p7)
}
  0x21   : > { %s6063_s18 = scalar_lea.vmem %s268_s19, 2560  ;;  %p6071_p2 = scmp.lt.s32.totalorder %s268_s19, %s268_s19 }
  0x22   : > { %p6064_p9 = scmp.ne.s32.totalorder %s268_s19, %s6063_s18  ;;  %p6072_p6 = scmp.lt.s32.totalorder %s6063_s18, %s6063_s18 }
  0x24   : > { %p6066_p10 = pnand %p6064_p9, %p6397_p13  ;;  %p6073_p4 = por %p6072_p6, %p6071_p2 }
  0x26   : > { %p6067_p1 = pneg %p6066_p10 }
  0x28   : > { %p6074_p8 = pnand %p6073_p4, %p6067_p1 }
  0x2a   : > { %6077 = shalt.err (!%p6074_p8)
}
  0x2b   : > { %s6270_s21 = smov 256   ;;  %s6271_s23 = smov 16  }
  0x2c   : > { %5630 = dma.hbm_to_vmem [thread:$0]  (!%p6385_p11), %s8553_s2, 2560, %s268_s19, [#allocation6], %s6270_s21, %s6270_s21, %s6271_s23  }
  0x2d   : > { %s6272_s26 = smov [#allocation7]   ;;  %s6078_s16 = scalar_lea.hbm %s8557_s6, 1280 }
  0x2e   : > { %s283_s27 = sshll.u32 %s6272_s26, 4  ;;  %p6079_p1 = scmp.ne.s32.totalorder %s8557_s6, %s6078_s16  ;;  %s284_s27 = int_to_ptr.vmem [resolvable:$true] %s283_s27 }
  0x2f   : > { %p6085_p6 = scmp.lt.u32.totalorder %s6078_s16, %s8557_s6 }
  0x30   : > { %p6081_p2 = pnand %p6079_p1, %p6397_p13 }
  0x32   : > { %p6082_p4 = pneg %p6081_p2 }
  0x34   : > { %p6087_p8 = pnand %p6085_p6, %p6082_p4 }
  0x36   : > { %6090 = shalt.err (!%p6087_p8)
}
  0x37   : > { %s6091_s19 = scalar_lea.vmem %s300_s22, 1280  ;;  %p6099_p3 = scmp.lt.s32.totalorder %s300_s22, %s300_s22 }
  0x38   : > { %p6092_p10 = scmp.ne.s32.totalorder %s300_s22, %s6091_s19  ;;  %p6100_p5 = scmp.lt.s32.totalorder %s6091_s19, %s6091_s19 }
  0x3a   : > { %p6094_p12 = pnand %p6092_p10, %p6397_p13  ;;  %p6101_p7 = por %p6100_p5, %p6099_p3 }
  0x3c   : > { %p6095_p0 = pneg %p6094_p12 }
  0x3e   : > { %p6102_p9 = pnand %p6101_p7, %p6095_p0 }
  0x40   : > { %6105 = shalt.err (!%p6102_p9)
}
  0x41   : > { %s6273_s30 = smov 128   ;;  %s6274_s21 = smov 8  }
  0x42   : > { %5636 = dma.hbm_to_vmem [thread:$0]  (!%p6385_p11), %s8557_s6, 1280, %s300_s22, [#allocation9], %s6273_s30, %s6273_s30, %s6274_s21  }
  0x43   : > { %s6106_s24 = scalar_lea.hbm %s8555_s4, 1280 }
  0x44   : > { %p6107_p1 = scmp.ne.s32.totalorder %s8555_s4, %s6106_s24  ;;  %p6113_p6 = scmp.lt.u32.totalorder %s6106_s24, %s8555_s4 }
  0x46   : > { %p6109_p2 = pnand %p6107_p1, %p6397_p13 }
  0x48   : > { %p6110_p4 = pneg %p6109_p2 }
  0x4a   : > { %p6115_p8 = pnand %p6113_p6, %p6110_p4 }
  0x4c   : > { %6118 = shalt.err (!%p6115_p8)
}
  0x4d   : > { %s6119_s18 = scalar_lea.vmem %s284_s27, 1280  ;;  %p6127_p3 = scmp.lt.s32.totalorder %s284_s27, %s284_s27 }
  0x4e   : > { %p6120_p10 = scmp.ne.s32.totalorder %s284_s27, %s6119_s18  ;;  %p6128_p5 = scmp.lt.s32.totalorder %s6119_s18, %s6119_s18 }
  0x50   : > { %p6122_p12 = pnand %p6120_p10, %p6397_p13  ;;  %p6129_p7 = por %p6128_p5, %p6127_p3 }
  0x52   : > { %p6123_p0 = pneg %p6122_p12 }
  0x54   : > { %p6130_p9 = pnand %p6129_p7, %p6123_p0 }
  0x56   : > { %6133 = shalt.err (!%p6130_p9)
}
  0x57   : > { %5633 = dma.hbm_to_vmem [thread:$0]  (!%p6385_p11), %s8555_s4, 1280, %s284_s27, [#allocation6], %s6273_s30, %s6273_s30, %s6274_s21  }
  0x58   : > { %s6275_s7 = smov [#allocation10]   ;;  %s6134_s24 = scalar_lea.hbm %s8559_s8, 1280 }
  0x59   : > { %s315_s9 = sshll.u32 %s6275_s7, 4  ;;  %p6135_p1 = scmp.ne.s32.totalorder %s8559_s8, %s6134_s24  ;;  %s316_s9 = int_to_ptr.vmem [resolvable:$true] %s315_s9 }
  0x5a   : > { %p6141_p6 = scmp.lt.u32.totalorder %s6134_s24, %s8559_s8 }
  0x5b   : > { %p6137_p2 = pnand %p6135_p1, %p6397_p13 }
  0x5d   : > { %p6138_p4 = pneg %p6137_p2 }
  0x5f   : > { %p6143_p8 = pnand %p6141_p6, %p6138_p4 }
  0x61   : > { %6146 = shalt.err (!%p6143_p8)
}
  0x62   : > { %s6147_s27 = scalar_lea.vmem %s316_s9, 1280  ;;  %p6155_p3 = scmp.lt.s32.totalorder %s316_s9, %s316_s9 }
  0x63   : > { %p6148_p10 = scmp.ne.s32.totalorder %s316_s9, %s6147_s27  ;;  %p6156_p5 = scmp.lt.s32.totalorder %s6147_s27, %s6147_s27 }
  0x65   : > { %p6150_p12 = pnand %p6148_p10, %p6397_p13  ;;  %p6157_p7 = por %p6156_p5, %p6155_p3 }
  0x67   : > { %p6151_p0 = pneg %p6150_p12 }
  0x69   : > { %p6158_p9 = pnand %p6157_p7, %p6151_p0 }
  0x6b   : > { %6161 = shalt.err (!%p6158_p9)
}
  0x6c   : > { %s6276_s30 = smov 640   ;;  %s6277_s28 = smov 40  }
  0x6d   : > { %5639 = dma.hbm_to_vmem [thread:$0]  (!%p6385_p11), %s8559_s8, 1280, %s316_s9, [#allocation9], %s6276_s30, %s6276_s30, %s6277_s28  }
  0x6e   : > { %s6468_s22 = sadd.s32 1, %s6266_s12   ;;  %s34_s7 = sadd.s32 1, %s6262_s11 }
  0x6f   : > { %s31_s19 = ssub.s32 %s6266_s12, %s6468_s22  ;;  %p41_p1 = scmp.ne.s32.totalorder %s6262_s11, %s6258_s10 }
  0x70   : > { %p32_p13 = scmp.eq.s32.totalorder %s31_s19, 0  ;;  %p42_p2 = scmp.eq.s32.totalorder %s6266_s12, 0 }
  0x71   : > { %p8604_p6 = scmp.eq.s32.totalorder %s6357_s13, 1  ;;  %p5652_p10 = scmp.lt.s32.totalorder %s6266_s12, 2 }
  0x72   : > { %s6477_s16 = scalar_select %p32_p13, %s6262_s11, %s34_s7  }
  0x73   : > { %p43_p4 = por %p42_p2, %p41_p1  ;;  %p6481_p8 = por %p8604_p6, %p41_p1 }
  0x74   : > { %s329_s20 = sand.u32 1, %s6262_s11   ;;  %s5041_s9 = sshll.u32 %s6266_s12, 10 }
  0x75   : > { %s4902_s24 = sshll.u32 %s329_s20, 6  ;;  %s6491_s29 = scalar_lea.hbm %s8551_s0, %s5041_s9 }
  0x76   : > { %s333_s14 = scalar_lea.vmem [#allocation2], %s4902_s24  ;;  %p6495_p11 = pnand %p5652_p10, %p43_p4 }
  0x77   : > { %s341_s27 = sshll.u32 %s333_s14, 4  ;;  %s6499_s28 = scalar_lea.sflag [#allocation3], %s329_s20  ;;  %s6493_s27 = int_to_ptr.vmem [resolvable:$true] %s341_s27 }
  0x78   : > { %s6162_s21 = scalar_lea.hbm %s6491_s29, 1024  ;;  %p6164_p0 = pneg %p6495_p11 }
  0x79   : > { %p6163_p12 = scmp.ne.s32.totalorder %s6491_s29, %s6162_s21  ;;  %s6167_s7 = scalar_lea.hbm %s8551_s0, 2048 }
  0x7a   : > { %p6168_p7 = scmp.lt.u32.totalorder %s6491_s29, %s8551_s0  ;;  %p6169_p9 = scmp.lt.u32.totalorder %s6167_s7, %s6162_s21 }
  0x7b   : > { %p6165_p3 = pnand %p6164_p0, %p6163_p12  ;;  %p6171_p1 = scmp.lt.u32.totalorder %s6162_s21, %s6491_s29 }
  0x7c   : > { %p6170_p13 = por %p6169_p9, %p6168_p7 }
  0x7d   : > { %p6166_p5 = pneg %p6165_p3 }
  0x7e   : > { %p6172_p2 = por %p6171_p1, %p6170_p13 }
  0x80   : > { %p6173_p4 = pnand %p6172_p2, %p6166_p5 }
  0x82   : > { %6176 = shalt.err (!%p6173_p4)
}
  0x83   : > { %s6177_s20 = scalar_lea.vmem %s6493_s27, 1024  ;;  %s6278_s25 = smov [#allocation2]  }
  0x84   : > { %p6178_p6 = scmp.ne.s32.totalorder %s6493_s27, %s6177_s20  ;;  %s6182_s26 = sshll.u32 %s6278_s25, 4  ;;  %s6183_s26 = int_to_ptr.vmem [resolvable:$false] %s6182_s26 }
  0x85   : > { %s6184_s14 = scalar_lea.vmem %s6183_s26, 2048  ;;  %p6185_p3 = scmp.lt.s32.totalorder %s6493_s27, %s6183_s26 }
  0x86   : > { %p6180_p10 = pnand %p6178_p6, %p6164_p0  ;;  %p6186_p7 = scmp.lt.s32.totalorder %s6184_s14, %s6177_s20 }
  0x88   : > { %p6181_p12 = pneg %p6180_p10  ;;  %p6187_p9 = por %p6186_p7, %p6185_p3 }
  0x8a   : > { %p6188_p13 = pnand %p6187_p9, %p6181_p12 }
  0x8c   : > { %6191 = shalt.err (!%p6188_p13)
}
  0x8d   : > { %s6279_s21 = smov 64   ;;  %s6280_s18 = smov 4  }
  0x8e   : > { %5643 = dma.hbm_to_vmem [thread:$0]  (!%p6495_p11), %s6491_s29, 1024, %s6493_s27, %s6499_s28, %s6279_s21, %s6279_s21, %s6280_s18  }
  0x8f   : > { %p8607_p0 = scmp.ne.s32.totalorder %s8601_s17, 0 }
  0x91   : > { %353 = sbr.rel (%p8607_p0) target bundleno = 3824 (0xef0), region = 56 }
  0x98   : > { %s6530_s19 = sand.u32 1, %s6258_s10   ;;  %p8608_p5 = scmp.ne.s32.totalorder %s8598_s15, 0 }
  0x99   : > { %s4907_s7 = sshll.u32 %s6530_s19, 6  ;;  %s356_s24 = scalar_lea.sflag [#allocation3], %s6530_s19 }
  0x9a   : > { %s6534_s9 = scalar_lea.vmem [#allocation2], %s4907_s7 }
  0x9b   : > { %6237 = dma.done.wait (%p8608_p5), %s356_s24, 1024  }
  0x9c   : > { %6239 = vsyncadd (%p8608_p5), %s356_s24, 4294966272  ;;  %p8609_p11 = scmp.eq.s32.totalorder %s6357_s13, 0 }
  0x9e   : > { %6241 = dma.done.wait (%p8609_p11), [#allocation6], 3840   ;;  %p8610_p1 = pmov %p8609_p11 }
  0xa0   : > { %6243 = vsyncadd (%p8610_p1), [#allocation6], 4294963456  ;;  %p8611_p2 = pmov %p8610_p1 }
  0xa1   : > { %p8612_p4 = pmov %p8610_p1 }
  0xa2   : > { %6245 = dma.done.wait (%p8611_p2), [#allocation9], 2560  }
  0xa3   : > { %6247 = vsyncadd (%p8612_p4), [#allocation9], 4294964736  ;;  %v5706_v0 = vld [vmem:[%s8552_s1] sm:$0xff]   ;;  %v5707_v1 = vld [vmem:[%s8552_s1 + $0x8] sm:$0xff]   ;;  %vm489_vm0 = vcmask 326656   ;;  %vm514_vm1 = vcmask 1043456  }
  0xa4   : > { %5267 = vmatprep.subr.bf16.mxu0 %v5706_v0  ;;  %5597 = vmatprep.subr.bf16.mxu1 %v5706_v0  ;;  %v5709_v2 = vld [vmem:[%s6534_s9] sm:$0xff]   ;;  %v5708_v3 = vld [vmem:[%s8552_s1 + $0x10] ss:$0 sps:$4 sm:$0xff]   ;;  %v5710_v5 = vld [vmem:[%s6534_s9 + $0x8] sm:$0xff]   ;;  %v8570_v32 = vmov 0   ;;  %vm766_vm2 = vcmask 654336  }
  0xa5   : > { %5268 = vmatpush3.bf16.msra.mxu0 %v5706_v0  ;;  %5600 = vmatpush3.bf16.msra.mxu1 %v5706_v0  ;;  %v516_v4 = vsel %vm514_vm1, %v5708_v3, 0  ;;  %v5711_v6 = vld [vmem:[%s6534_s9 + $0x10] sm:$0xff]   ;;  %v5716_v8 = vld [vmem:[%s6534_s9 + $0x38] sm:$0xff]   ;;  %v5713_v18 = vld [vmem:[%s6534_s9 + $0x20] sm:$0xff]   ;;  %vm6283_vm3 = vmmov 0   ;;  %vm1369_vm4 = vcmask 130048  }
  0xa6   : > { %5269 = vmatprep.subr.bf16.mxu0 %v5707_v1  ;;  %5598 = vmatprep.subr.bf16.mxu1 %v5707_v1  ;;  %v5715_v7 = vld [vmem:[%s6534_s9 + $0x30] sm:$0xff]   ;;  %v5720_v11 = vld [vmem:[#allocation5 + $0x8] ss:$16 sps:$4 sm:$0xff]   ;;  %v5722_v12 = vld [vmem:[#allocation5 + $0xc] ss:$16 sps:$4 sm:$0xff]   ;;  %s8658_s7 = sld [smem:[#allocation36_spill]] }
  0xa7   : > { %5273 = vmatprep.mubr.msk.bf16.mxu0 %vm489_vm0, %v5709_v2  ;;  %v5717_v9 = vld [vmem:[#allocation5] ss:$16 sps:$4 sm:$0xff]   ;;  %v5719_v10 = vld [vmem:[#allocation5 + $0x4] ss:$16 sps:$4 sm:$0xff]   ;;  %5285 = vmatprep.mubr.msk.bf16.mxu1 %vm489_vm0, %v5715_v7  ;;  %v5728_v15 = vld [vmem:[#allocation5 + $0x2c] ss:$16 sps:$4 sm:$0xff]  }
  0xa8   : > { %v5725_v13 = vld [vmem:[#allocation5 + $0x24] ss:$16 sps:$4 sm:$0xff]   ;;  %v5723_v14 = vld [vmem:[#allocation5 + $0x20] ss:$16 sps:$4 sm:$0xff]   ;;  %v5712_v16 = vld [vmem:[%s6534_s9 + $0x18] sm:$0xff]   ;;  %vm4385_vm5 = vcmask 1041409  }
  0xa9   : > { %5270 = vmatpush3.bf16.msra.mxu0 %v5707_v1  ;;  %5601 = vmatpush3.bf16.msra.mxu1 %v5707_v1  ;;  %v5726_v17 = vld [vmem:[#allocation5 + $0x28] ss:$16 sps:$4 sm:$0xff]   ;;  %v5731_v19 = vld [vmem:[#allocation5 + $0x44] ss:$16 sps:$4 sm:$0xff]   ;;  %v5729_v20 = vld [vmem:[#allocation5 + $0x40] ss:$16 sps:$4 sm:$0xff]  }
  0xaa   : > { %5603 = vmatprep.subr.msk.bf16.mxu0 %vm514_vm1, %v5708_v3  ;;  %5604 = vmatprep.subr.msk.bf16.mxu1 %vm514_vm1, %v5708_v3  ;;  %v5732_v21 = vld [vmem:[#allocation5 + $0x48] ss:$16 sps:$4 sm:$0xff]   ;;  %v5734_v22 = vld [vmem:[#allocation5 + $0x4c] ss:$16 sps:$4 sm:$0xff]   ;;  %v5737_v24 = vld [vmem:[#allocation5 + $0x64] ss:$16 sps:$4 sm:$0xff]  }
  0xab   : > { %v5714_v23 = vld [vmem:[%s6534_s9 + $0x28] sm:$0xff]   ;;  %v5735_v26 = vld [vmem:[#allocation5 + $0x60] ss:$16 sps:$4 sm:$0xff]   ;;  %v5743_v28 = vld [vmem:[#allocation5 + $0x84] ss:$16 sps:$4 sm:$0xff]   ;;  %vm4387_vm6 = vcmask 1042434  }
  0xac   : > { %v5740_v25 = vld [vmem:[#allocation5 + $0x6c] ss:$16 sps:$4 sm:$0xff]   ;;  %v5738_v27 = vld [vmem:[#allocation5 + $0x68] ss:$16 sps:$4 sm:$0xff]   ;;  %v5741_v30 = vld [vmem:[#allocation5 + $0x80] ss:$16 sps:$4 sm:$0xff]  }
  0xad   : > { %5272 = vmatpush3.bf16.msra.mxu0 %v516_v4  ;;  %5602 = vmatpush3.bf16.msra.mxu1 %v516_v4  ;;  %v5746_v29 = vld [vmem:[#allocation5 + $0x8c] ss:$16 sps:$4 sm:$0xff]   ;;  %v5744_v31 = vld [vmem:[#allocation5 + $0x88] ss:$16 sps:$4 sm:$0xff]   ;;  %v6577_v35 = vld [vmem:[#allocation10] ss:$0 sm:$0xff] }
  0xae   : > { %791 = vmatprep.subr.bf16.mxu1 %v5719_v10  ;;  %904 = vmatprep.subr.bf16.mxu0 %v5722_v12  ;;  %v8572_v10 = vmov 0.0   ;;  %vm4389_vm7 = vcmask 1043459   ;;  %vm4391_vm8 = vcmask 1044484   ;;  %vm4393_vm9 = vcmask 1045509   ;;  %s5605_s24 = smul.u32 40, %s6530_s19  ;;  %s8664_s30 = sld [smem:[#allocation37_spill]] }
  0xaf   : > { %vm4395_vm10 = vcmask 1046534   ;;  %vm4397_vm11 = vcmask 1047559   ;;  %s5606_s17 = smul.u32 640, %s6357_s13  ;;  %s4773_s25 = scalar_lea.sflag [#allocation4], %s6530_s19 }
  0xb0   : > { %5274 = vmatmul.mubr.msk.bf16.vlgmr.msra.gmra.mrb[0].mxu0 %vm489_vm0, %v5710_v5  ;;  %5286 = vmatmul.mubr.msk.bf16.vlgmr.msra.gmra.mrb[0].mxu1 %vm489_vm0, %v5716_v8  ;;  %s409_s9 = scalar_lea.vmem [#allocation11], %s5605_s24  ;;  %s6285_s13 = smov [#allocation11]  }
  0xb1   : > { %5277 = vmatprep.mubr.msk.bf16.mxu0 %vm489_vm0, %v5711_v6  ;;  %792 = vmatpush1.bf16.msra.mxu1 %v5717_v9  ;;  %s4787_s29 = sshll.u32 %s409_s9, 4  ;;  %s6196_s14 = sshll.u32 %s6285_s13, 4  ;;  %s8509_s29 = int_to_ptr.vmem [resolvable:$true] %s4787_s29  ;;  %s6197_s14 = int_to_ptr.vmem [resolvable:$false] %s6196_s14 }
  0xb2   : > { %905 = vmatpush1.bf16.msra.mxu0 %v5720_v11  ;;  %793 = vmatprep.subr.bf16.mxu1 %v5725_v13  ;;  %v646_v11 = vlaneseq  ;;  %s6192_s26 = scalar_lea.vmem %s8509_s29, 640  ;;  %s6198_s21 = scalar_lea.vmem %s6197_s14, 1280 }
  0xb3   : > { %906 = vmatprep.subr.bf16.mxu0 %v5728_v15  ;;  %823 = vmatprep.mubr.bf16.mxu1 %v8570_v32  ;;  %v644_v15 = vld [vmem:[#allocation10 + $0x1] ss:$8 sm:$0xf]  ;;  %p6193_p6 = scmp.ne.s32.totalorder %s8509_s29, %s6192_s26  ;;  %p6199_p3 = scmp.lt.s32.totalorder %s8509_s29, %s6197_s14 }
  0xb4   : > { %v6680_v12 = vshrl.u32 %v646_v11, 7  ;;  %s8665_s28 = smov %s8664_s30  ;;  %s8507_s20 = scalar_lea.hbm %s8664_s30, %s5606_s17 }
  0xb5   : > { %794 = vmatpush1.bf16.msra.mxu1 %v5723_v14  ;;  %p6194_p10 = pnand %p6193_p6, %p6481_p8  ;;  %p6200_p7 = scmp.lt.s32.totalorder %s6198_s21, %s6192_s26 }
  0xb6   : > { %907 = vmatpush1.bf16.msra.mxu0 %v5726_v17  ;;  %795 = vmatprep.subr.bf16.mxu1 %v5731_v19  ;;  %8628 = vst [vmem:[#allocation33_spill] sm:$0xff] %v6680_v12  ;;  %v6683_v13 = vsub.s32 0, %v6680_v12  ;;  %v8569_v14 = vsub.s32 2, %v6680_v12  ;;  %v8568_v17 = vsub.s32 3, %v6680_v12 }
  0xb7   : > { %908 = vmatprep.subr.bf16.mxu0 %v5734_v22  ;;  %p6195_p12 = pneg %p6194_p10  ;;  %p6201_p9 = por %p6200_p7, %p6199_p3 }
  0xb8   : > { %5278 = vmatmul.mubr.msk.bf16.gmra.mrb[4].mxu0 %vm489_vm0, %v5712_v16  ;;  %8629 = vst [vmem:[#allocation34_spill] sm:$0xff] %v6683_v13  ;;  %v6687_v16 = vsub.s32 1, %v6680_v12  ;;  %v6695_v19 = vrot.slane %v644_v15, %v8569_v14 }
  0xb9   : > { %5281 = vmatprep.mubr.msk.bf16.mxu0 %vm489_vm0, %v5713_v18  ;;  %796 = vmatpush1.bf16.msra.mxu1 %v5729_v20  ;;  %v6691_v18 = vrot.slane %v644_v15, %v6683_v13  ;;  %p6202_p13 = pnand %p6201_p9, %p6195_p12 }
  0xba   : > { %909 = vmatpush1.bf16.msra.mxu0 %v5732_v21  ;;  %797 = vmatprep.subr.bf16.mxu1 %v5737_v24  ;;  %8630 = vst [vmem:[#allocation35_spill] sm:$0xff] %v6687_v16  ;;  %v6698_v22 = vrot.slane %v644_v15, %v6687_v16 }
  0xbb   : > { %910 = vmatprep.subr.bf16.mxu0 %v5740_v25 }
  0xbd   : > { %798 = vmatpush1.bf16.msra.mxu1 %v5735_v26 }
  0xbe   : > { %911 = vmatpush1.bf16.msra.mxu0 %v5738_v27  ;;  %799 = vmatprep.subr.bf16.mxu1 %v5743_v28 }
  0xbf   : > { %912 = vmatprep.subr.bf16.mxu0 %v5746_v29 }
  0xc0   : > { %5282 = vmatmul.mubr.msk.bf16.gmra.mrb[8].mxu0 %vm489_vm0, %v5714_v23  ;;  %v6702_v23 = vrot.slane %v644_v15, %v8568_v17 }
  0xc1   : > { %800 = vmatpush1.bf16.msra.mxu1 %v5741_v30  ;;  %936 = vmatprep.mubr.bf16.mxu0 %v8570_v32 }
  0xc2   : > { %913 = vmatpush1.bf16.msra.mxu0 %v5744_v31  ;;  %5289 = vmatprep.subr.bf16.mxu1 %v8572_v10 }
  0xc3   : > { %5307 = vmatprep.subr.bf16.mxu0 %v8572_v10 }
 0x183   : > { %v5275_v33 = vpop.f32.mrb[0].mxu0  ;;  %v6575_v34 = vpop.f32.mrb[0].mxu1 }
 0x184   : > { %v552_v36 = vpop.f32.mrb[1].mxu0  ;;  %v600_v37 = vpop.f32.mrb[1].mxu1  ;;  %v6595_v50 = vadd.f32 %v5275_v33, %v6577_v35  ;;  %v6665_v7 = vadd.f32 %v6575_v34, %v6577_v35 }
 0x185   : > { %v5276_v38 = vpop.f32.mrb[2].mxu0  ;;  %v5288_v39 = vpop.f32.mrb[2].mxu1  ;;  %v6580_v42 = vadd.f32 %v552_v36, %v6577_v35  ;;  %v6652_v4 = vadd.f32 %v600_v37, %v6577_v35 }
 0x186   : > { %v555_v40 = vpop.f32.mrb[3].mxu0  ;;  %v603_v41 = vpop.f32.mrb[3].mxu1  ;;  %v6592_v47 = vadd.f32 %v5276_v38, %v6577_v35  ;;  %8615 = vst [vmem:[#allocation20_spill] sm:$0xff] %v6595_v50  ;;  %8626 = vst [vmem:[#allocation31_spill] sm:$0xff] %v6665_v7  ;;  %v6668_v8 = vadd.f32 %v5288_v39, %v6577_v35 }
 0x187   : > { %v6583_v43 = vadd.f32 %v555_v40, %v6577_v35  ;;  %8624 = vst [vmem:[#allocation29_spill] sm:$0xff] %v6652_v4  ;;  %v6655_v5 = vadd.f32 %v603_v41, %v6577_v35 }
 0x188   : > { %8614 = vst [vmem:[#allocation19_spill] sm:$0xff] %v6592_v47  ;;  %v616_v51 = vpack.c.bf16 %v6592_v47, %v6595_v50  ;;  %8627 = vst [vmem:[#allocation32_spill] sm:$0xff] %v6668_v8  ;;  %v622_v9 = vpack.c.bf16 %v6668_v8, %v6665_v7 }
 0x189   : > { %8613 = vst [vmem:[#allocation18_spill] sm:$0xff] %v6583_v43  ;;  %v615_v44 = vpack.c.bf16 %v6583_v43, %v6580_v42  ;;  %8625 = vst [vmem:[#allocation30_spill] sm:$0xff] %v6655_v5  ;;  %v621_v6 = vpack.c.bf16 %v6655_v5, %v6652_v4 }
 0x18b   : > { %4951 = vmatmul.mubr.msk.bf16.vlgmr.msra.gmra.mrb[4].mxu1 %vm766_vm2, %v615_v44  ;;  %4959 = vmatmul.mubr.msk.bf16.vlgmr.msra.gmra.mrb[12].mxu0 %vm766_vm2, %v615_v44  ;;  %v5279_v45 = vpop.f32.mrb[4].mxu0 }
 0x18c   : > { %v568_v46 = vpop.f32.mrb[5].mxu0  ;;  %833 = vmatprep.mubr.bf16.mxu1 %v8570_v32  ;;  %946 = vmatprep.mubr.bf16.mxu0 %v8570_v32  ;;  %v6616_v59 = vadd.f32 %v5279_v45, %v6577_v35 }
 0x18d   : > { %v5280_v48 = vpop.f32.mrb[6].mxu0  ;;  %v6604_v54 = vadd.f32 %v568_v46, %v6577_v35 }
 0x18e   : > { %v571_v49 = vpop.f32.mrb[7].mxu0  ;;  %8618 = vst [vmem:[#allocation23_spill] sm:$0xff] %v6616_v59  ;;  %v6619_v60 = vadd.f32 %v5280_v48, %v6577_v35 }
 0x18f   : > { %8616 = vst [vmem:[#allocation21_spill] sm:$0xff] %v6604_v54  ;;  %v6607_v55 = vadd.f32 %v571_v49, %v6577_v35 }
 0x190   : > { %8619 = vst [vmem:[#allocation24_spill] sm:$0xff] %v6619_v60  ;;  %v618_v61 = vpack.c.bf16 %v6619_v60, %v6616_v59 }
 0x191   : > { %8617 = vst [vmem:[#allocation22_spill] sm:$0xff] %v6607_v55  ;;  %v617_v58 = vpack.c.bf16 %v6607_v55, %v6604_v54 }
 0x193   : > { %4952 = vmatmul.mubr.msk.bf16.gmra.mrb[8].mxu1 %vm766_vm2, %v616_v51  ;;  %4960 = vmatmul.mubr.msk.bf16.gmra.mrb[16].mxu0 %vm766_vm2, %v616_v51  ;;  %v5283_v52 = vpop.f32.mrb[8].mxu0 }
 0x194   : > { %843 = vmatprep.mubr.bf16.mxu1 %v8570_v32  ;;  %956 = vmatprep.mubr.bf16.mxu0 %v8570_v32  ;;  %v584_v53 = vpop.f32.mrb[9].mxu0  ;;  %v6640_v1 = vadd.f32 %v5283_v52, %v6577_v35 }
 0x195   : > { %v5284_v56 = vpop.f32.mrb[10].mxu0  ;;  %v6628_v62 = vadd.f32 %v584_v53, %v6577_v35 }
 0x196   : > { %v587_v57 = vpop.f32.mrb[11].mxu0  ;;  %8622 = vst [vmem:[#allocation27_spill] sm:$0xff] %v6640_v1  ;;  %v6643_v2 = vadd.f32 %v5284_v56, %v6577_v35 }
 0x197   : > { %8620 = vst [vmem:[#allocation25_spill] sm:$0xff] %v6628_v62  ;;  %v6631_v63 = vadd.f32 %v587_v57, %v6577_v35 }
 0x198   : > { %8623 = vst [vmem:[#allocation28_spill] sm:$0xff] %v6643_v2  ;;  %v620_v3 = vpack.c.bf16 %v6643_v2, %v6640_v1 }
 0x199   : > { %8621 = vst [vmem:[#allocation26_spill] sm:$0xff] %v6631_v63  ;;  %v619_v0 = vpack.c.bf16 %v6631_v63, %v6628_v62 }
 0x19b   : > { %4953 = vmatmul.mubr.msk.bf16.gmra.mrb[12].mxu1 %vm766_vm2, %v617_v58  ;;  %4961 = vmatmul.mubr.msk.bf16.gmra.mrb[20].mxu0 %vm766_vm2, %v617_v58 }
 0x19c   : > { %853 = vmatprep.mubr.bf16.mxu1 %v8570_v32  ;;  %966 = vmatprep.mubr.bf16.mxu0 %v8570_v32 }
 0x1a3   : > { %4954 = vmatmul.mubr.msk.bf16.gmra.mrb[16].mxu1 %vm766_vm2, %v618_v61  ;;  %4962 = vmatmul.mubr.msk.bf16.gmra.mrb[24].mxu0 %vm766_vm2, %v618_v61 }
 0x1a4   : > { %976 = vmatprep.mubr.bf16.mxu0 %v8570_v32  ;;  %863 = vmatprep.mubr.bf16.mxu1 %v8570_v32 }
 0x1ab   : > { %4963 = vmatmul.mubr.msk.bf16.gmra.mrb[28].mxu0 %vm766_vm2, %v619_v0  ;;  %4955 = vmatmul.mubr.msk.bf16.gmra.mrb[20].mxu1 %vm766_vm2, %v619_v0 }
 0x1ac   : > { %986 = vmatprep.mubr.bf16.mxu0 %v8570_v32  ;;  %873 = vmatprep.mubr.bf16.mxu1 %v8570_v32 }
 0x1b3   : > { %4964 = vmatmul.mubr.msk.bf16.gmra.mrb[32].mxu0 %vm766_vm2, %v620_v3  ;;  %4956 = vmatmul.mubr.msk.bf16.gmra.mrb[24].mxu1 %vm766_vm2, %v620_v3 }
 0x1b4   : > { %996 = vmatprep.mubr.bf16.mxu0 %v8570_v32  ;;  %883 = vmatprep.mubr.bf16.mxu1 %v8570_v32 }
 0x1bb   : > { %4965 = vmatmul.mubr.msk.bf16.gmra.mrb[36].mxu0 %vm766_vm2, %v621_v6  ;;  %4957 = vmatmul.mubr.msk.bf16.gmra.mrb[28].mxu1 %vm766_vm2, %v621_v6 }
 0x1bc   : > { %1006 = vmatprep.mubr.bf16.mxu0 %v8570_v32  ;;  %893 = vmatprep.mubr.bf16.mxu1 %v8570_v32 }
 0x1c3   : > { %4966 = vmatmul.mubr.msk.bf16.gmra.mrb[40].mxu0 %vm766_vm2, %v622_v9  ;;  %4958 = vmatmul.mubr.msk.bf16.gmra.mrb[32].mxu1 %vm766_vm2, %v622_v9 }
 0x1c4   : > { %5291 = vmatprep.mubr.msk.bf16.mxu1 %vm6283_vm3, %v8572_v10  ;;  %5309 = vmatprep.mubr.msk.bf16.mxu0 %vm6283_vm3, %v8572_v10 }
 0x25e   : > { %v825_v20 = vpop.f32.mrb[4].mxu1  ;;  %v938_v21 = vpop.f32.mrb[12].mxu0 }
 0x25f   : > { %v827_v24 = vpop.f32.mrb[5].mxu1  ;;  %v940_v25 = vpop.f32.mrb[13].mxu0  ;;  %v826_v28 = vadd.f32 %v825_v20, %v6691_v18  ;;  %v939_v29 = vadd.f32 %v938_v21, %v6695_v19 }
 0x260   : > { %v829_v26 = vpop.f32.mrb[6].mxu1  ;;  %v942_v27 = vpop.f32.mrb[14].mxu0  ;;  %v6709_v35 = vadd.f32 %v827_v24, %v6698_v22  ;;  %v941_v36 = vadd.f32 %v940_v25, %v6702_v23 }
 0x261   : > { %v830_v30 = vadd.f32 %v829_v26, %v6691_v18  ;;  %v943_v31 = vadd.f32 %v942_v27, %v6695_v19  ;;  %v831_v33 = vpop.f32.mrb[7].mxu1  ;;  %v944_v34 = vpop.f32.mrb[15].mxu0 }
 0x262   : > { %v6713_v37 = vadd.f32 %v831_v33, %v6698_v22  ;;  %v945_v38 = vadd.f32 %v944_v34, %v6702_v23 }
 0x263   : > { %v1033_v39 = vpack.c.bf16 %v830_v30, %v826_v28  ;;  %v6716_v40 = vpack.c.bf16 %v943_v31, %v939_v29 }
 0x264   : > { %v6720_v44 = vpack.c.bf16 %v945_v38, %v941_v36 }
 0x265   : > { %5290 = vmatpush3.bf16.xpose.msra.mxu1 %v6716_v40 }
 0x266   : > { %v835_v45 = vpop.f32.mrb[8].mxu1  ;;  %v948_v46 = vpop.f32.mrb[16].mxu0  ;;  %5295 = vmatprep.subr.bf16.mxu1 %v8572_v10 }
 0x267   : > { %v837_v48 = vpop.f32.mrb[9].mxu1  ;;  %v950_v49 = vpop.f32.mrb[17].mxu0  ;;  %v836_v53 = vadd.f32 %v835_v45, %v6691_v18  ;;  %v949_v56 = vadd.f32 %v948_v46, %v6695_v19 }
 0x268   : > { %v839_v51 = vpop.f32.mrb[10].mxu1  ;;  %v952_v52 = vpop.f32.mrb[18].mxu0  ;;  %v6729_v3 = vadd.f32 %v837_v48, %v6698_v22  ;;  %v951_v6 = vadd.f32 %v950_v49, %v6702_v23 }
 0x269   : > { %v840_v57 = vadd.f32 %v839_v51, %v6691_v18  ;;  %v953_v58 = vadd.f32 %v952_v52, %v6695_v19  ;;  %v841_v61 = vpop.f32.mrb[11].mxu1  ;;  %v954_v0 = vpop.f32.mrb[19].mxu0 }
 0x26a   : > { %v6733_v9 = vadd.f32 %v841_v61, %v6698_v22  ;;  %v955_v11 = vadd.f32 %v954_v0, %v6702_v23 }
 0x26b   : > { %v1034_v15 = vpack.c.bf16 %v840_v57, %v836_v53  ;;  %v6736_v20 = vpack.c.bf16 %v953_v58, %v949_v56 }
 0x26c   : > { %v6740_v24 = vpack.c.bf16 %v955_v11, %v951_v6  ;;  %5292 = vmatmul.mubr.bf16.vlgmr.msra.gmra.mrb[36].mxu1 %v1033_v39 }
 0x26d   : > { %5296 = vmatpush3.bf16.xpose.msra.mxu1 %v6736_v20  ;;  %5297 = vmatprep.mubr.msk.bf16.mxu1 %vm6283_vm3, %v8572_v10 }
 0x26e   : > { %v845_v25 = vpop.f32.mrb[12].mxu1  ;;  %v958_v26 = vpop.f32.mrb[20].mxu0  ;;  %5301 = vmatprep.subr.bf16.mxu1 %v8572_v10 }
 0x26f   : > { %v847_v27 = vpop.f32.mrb[13].mxu1  ;;  %v960_v28 = vpop.f32.mrb[21].mxu0  ;;  %v846_v33 = vadd.f32 %v845_v25, %v6691_v18  ;;  %v959_v34 = vadd.f32 %v958_v26, %v6695_v19 }
 0x270   : > { %v961_v29 = vadd.f32 %v960_v28, %v6702_v23  ;;  %v849_v30 = vpop.f32.mrb[14].mxu1  ;;  %v962_v31 = vpop.f32.mrb[22].mxu0  ;;  %v6752_v46 = vadd.f32 %v847_v27, %v6698_v22 }
 0x271   : > { %v850_v36 = vadd.f32 %v849_v30, %v6691_v18  ;;  %v963_v38 = vadd.f32 %v962_v31, %v6695_v19  ;;  %v851_v39 = vpop.f32.mrb[15].mxu1  ;;  %v964_v45 = vpop.f32.mrb[23].mxu0 }
 0x272   : > { %v6755_v48 = vadd.f32 %v851_v39, %v6698_v22  ;;  %v965_v49 = vadd.f32 %v964_v45, %v6702_v23 }
 0x273   : > { %v1035_v51 = vpack.c.bf16 %v850_v36, %v846_v33  ;;  %v6758_v52 = vpack.c.bf16 %v963_v38, %v959_v34 }
 0x274   : > { %v6762_v56 = vpack.c.bf16 %v965_v49, %v961_v29  ;;  %5298 = vmatmul.mubr.bf16.vlgmr.msra.gmra.mrb[40].mxu1 %v1034_v15 }
 0x275   : > { %5302 = vmatpush3.bf16.xpose.msra.mxu1 %v6758_v52  ;;  %5303 = vmatprep.mubr.msk.bf16.mxu1 %vm6283_vm3, %v8572_v10 }
 0x276   : > { %v855_v57 = vpop.f32.mrb[16].mxu1  ;;  %v968_v58 = vpop.f32.mrb[24].mxu0  ;;  %5313 = vmatprep.subr.bf16.mxu1 %v8572_v10 }
 0x277   : > { %v857_v61 = vpop.f32.mrb[17].mxu1  ;;  %v970_v0 = vpop.f32.mrb[25].mxu0  ;;  %v856_v26 = vadd.f32 %v855_v57, %v6691_v18  ;;  %v969_v27 = vadd.f32 %v968_v58, %v6695_v19 }
 0x278   : > { %v971_v6 = vadd.f32 %v970_v0, %v6702_v23  ;;  %v859_v11 = vpop.f32.mrb[18].mxu1  ;;  %v972_v25 = vpop.f32.mrb[26].mxu0  ;;  %v6774_v31 = vadd.f32 %v857_v61, %v6698_v22 }
 0x279   : > { %v860_v15 = vadd.f32 %v859_v11, %v6691_v18  ;;  %v973_v28 = vadd.f32 %v972_v25, %v6695_v19  ;;  %v861_v29 = vpop.f32.mrb[19].mxu1  ;;  %v974_v30 = vpop.f32.mrb[27].mxu0 }
 0x27a   : > { %v6777_v33 = vadd.f32 %v861_v29, %v6698_v22  ;;  %v975_v34 = vadd.f32 %v974_v30, %v6702_v23 }
 0x27b   : > { %v1036_v36 = vpack.c.bf16 %v860_v15, %v856_v26  ;;  %v6780_v38 = vpack.c.bf16 %v973_v28, %v969_v27 }
 0x27c   : > { %v6784_v45 = vpack.c.bf16 %v975_v34, %v971_v6  ;;  %5304 = vmatmul.mubr.bf16.vlgmr.msra.gmra.mrb[44].mxu1 %v1035_v51 }
 0x27d   : > { %5308 = vmatpush3.bf16.xpose.msra.mxu0 %v6780_v38  ;;  %5315 = vmatprep.mubr.msk.bf16.mxu1 %vm6283_vm3, %v8572_v10 }
 0x27e   : > { %v978_v49 = vpop.f32.mrb[28].mxu0  ;;  %v865_v57 = vpop.f32.mrb[20].mxu1  ;;  %5319 = vmatprep.subr.bf16.mxu0 %v8572_v10 }
 0x27f   : > { %v980_v58 = vpop.f32.mrb[29].mxu0  ;;  %v867_v61 = vpop.f32.mrb[21].mxu1  ;;  %v979_v26 = vadd.f32 %v978_v49, %v6695_v19  ;;  %v866_v51 = vadd.f32 %v865_v57, %v6691_v18 }
 0x280   : > { %v981_v0 = vadd.f32 %v980_v58, %v6702_v23  ;;  %v982_v11 = vpop.f32.mrb[30].mxu0  ;;  %v869_v25 = vpop.f32.mrb[22].mxu1  ;;  %v6797_v30 = vadd.f32 %v867_v61, %v6698_v22 }
 0x281   : > { %v983_v6 = vadd.f32 %v982_v11, %v6695_v19  ;;  %v984_v27 = vpop.f32.mrb[31].mxu0  ;;  %v870_v15 = vadd.f32 %v869_v25, %v6691_v18  ;;  %v871_v28 = vpop.f32.mrb[23].mxu1 }
 0x282   : > { %v985_v29 = vadd.f32 %v984_v27, %v6702_v23  ;;  %v6800_v34 = vadd.f32 %v871_v28, %v6698_v22 }
 0x283   : > { %v6802_v58 = vpack.c.bf16 %v983_v6, %v979_v26  ;;  %v1037_v17 = vpack.c.bf16 %v870_v15, %v866_v51 }
 0x284   : > { %5310 = vmatmul.mubr.bf16.vlgmr.msra.gmra.mrb[44].mxu0 %v1036_v36  ;;  %v6804_v49 = vpack.c.bf16 %v985_v29, %v981_v0 }
 0x285   : > { %5314 = vmatpush3.bf16.xpose.msra.mxu1 %v6802_v58  ;;  %5321 = vmatprep.mubr.msk.bf16.mxu0 %vm6283_vm3, %v8572_v10 }
 0x286   : > { %v988_v11 = vpop.f32.mrb[32].mxu0  ;;  %v875_v61 = vpop.f32.mrb[24].mxu1  ;;  %5325 = vmatprep.subr.bf16.mxu1 %v8572_v10 }
 0x287   : > { %v990_v25 = vpop.f32.mrb[33].mxu0  ;;  %v877_v27 = vpop.f32.mrb[25].mxu1  ;;  %v989_v0 = vadd.f32 %v988_v11, %v6695_v19  ;;  %v876_v15 = vadd.f32 %v875_v61, %v6691_v18 }
 0x288   : > { %v991_v26 = vadd.f32 %v990_v25, %v6702_v23  ;;  %v992_v6 = vpop.f32.mrb[34].mxu0  ;;  %v879_v36 = vpop.f32.mrb[26].mxu1  ;;  %v6819_v57 = vadd.f32 %v877_v27, %v6698_v22 }
 0x289   : > { %v993_v51 = vadd.f32 %v992_v6, %v6695_v19  ;;  %v994_v28 = vpop.f32.mrb[35].mxu0  ;;  %v880_v29 = vadd.f32 %v879_v36, %v6691_v18  ;;  %v881_v14 = vpop.f32.mrb[27].mxu1 }
 0x28a   : > { %v995_v32 = vadd.f32 %v994_v28, %v6702_v23  ;;  %v6822_v39 = vadd.f32 %v881_v14, %v6698_v22 }
 0x28b   : > { %v6824_v25 = vpack.c.bf16 %v993_v51, %v989_v0  ;;  %v1038_v53 = vpack.c.bf16 %v880_v29, %v876_v15 }
 0x28c   : > { %5316 = vmatmul.mubr.bf16.vlgmr.msra.gmra.mrb[48].mxu1 %v1037_v17  ;;  %v6826_v11 = vpack.c.bf16 %v995_v32, %v991_v26 }
 0x28d   : > { %5320 = vmatpush3.bf16.xpose.msra.mxu0 %v6824_v25  ;;  %5327 = vmatprep.mubr.msk.bf16.mxu1 %vm6283_vm3, %v8572_v10 }
 0x28e   : > { %v998_v6 = vpop.f32.mrb[36].mxu0  ;;  %v885_v27 = vpop.f32.mrb[28].mxu1  ;;  %5331 = vmatprep.subr.bf16.mxu0 %v8572_v10 }
 0x28f   : > { %v1000_v14 = vpop.f32.mrb[37].mxu0  ;;  %v887_v36 = vpop.f32.mrb[29].mxu1  ;;  %v999_v32 = vadd.f32 %v998_v6, %v6695_v19  ;;  %v886_v15 = vadd.f32 %v885_v27, %v6691_v18 }
 0x290   : > { %v1001_v0 = vadd.f32 %v1000_v14, %v6702_v23  ;;  %v1002_v51 = vpop.f32.mrb[38].mxu0  ;;  %v889_v17 = vpop.f32.mrb[30].mxu1  ;;  %v6841_v41 = vadd.f32 %v887_v36, %v6698_v22 }
 0x291   : > { %v1003_v26 = vadd.f32 %v1002_v51, %v6695_v19  ;;  %v1004_v28 = vpop.f32.mrb[39].mxu0  ;;  %v890_v29 = vadd.f32 %v889_v17, %v6691_v18  ;;  %v891_v61 = vpop.f32.mrb[31].mxu1  ;;  %v8631_v51 = vmov 0.0  }
 0x292   : > { %v1005_v21 = vadd.f32 %v1004_v28, %v6702_v23  ;;  %v6844_v10 = vadd.f32 %v891_v61, %v6698_v22 }
 0x293   : > { %v6846_v14 = vpack.c.bf16 %v1003_v26, %v999_v32  ;;  %v1039_v12 = vpack.c.bf16 %v890_v29, %v886_v15 }
 0x294   : > { %5322 = vmatmul.mubr.bf16.vlgmr.msra.gmra.mrb[48].mxu0 %v1038_v53  ;;  %v6848_v6 = vpack.c.bf16 %v1005_v21, %v1001_v0 }
 0x295   : > { %5326 = vmatpush3.bf16.xpose.msra.mxu1 %v6846_v14  ;;  %5333 = vmatprep.mubr.msk.bf16.mxu0 %vm6283_vm3, %v8631_v51 }
 0x296   : > { %v1008_v17 = vpop.f32.mrb[40].mxu0  ;;  %5337 = vmatprep.subr.bf16.mxu1 %v8631_v51  ;;  %v895_v36 = vpop.f32.mrb[32].mxu1 }
 0x297   : > { %v1010_v61 = vpop.f32.mrb[41].mxu0  ;;  %v897_v28 = vpop.f32.mrb[33].mxu1  ;;  %v1009_v21 = vadd.f32 %v1008_v17, %v6695_v19  ;;  %v896_v15 = vadd.f32 %v895_v36, %v6691_v18 }
 0x298   : > { %v1011_v32 = vadd.f32 %v1010_v61, %v6702_v23  ;;  %v1012_v26 = vpop.f32.mrb[42].mxu0  ;;  %v899_v53 = vpop.f32.mrb[34].mxu1  ;;  %v6862_v13 = vadd.f32 %v897_v28, %v6698_v22 }
 0x299   : > { %v1013_v0 = vadd.f32 %v1012_v26, %v6695_v19  ;;  %v900_v29 = vadd.f32 %v899_v53, %v6691_v18  ;;  %v901_v27 = vpop.f32.mrb[35].mxu1  ;;  %v1014_v16 = vpop.f32.mrb[43].mxu0 }
 0x29a   : > { %v6865_v8 = vadd.f32 %v901_v27, %v6698_v22  ;;  %v1015_v61 = vadd.f32 %v1014_v16, %v6702_v23 }
 0x29b   : > { %v6868_v7 = vpack.c.bf16 %v1013_v0, %v1009_v21  ;;  %v1040_v5 = vpack.c.bf16 %v900_v29, %v896_v15 }
 0x29c   : > { %5328 = vmatmul.mubr.bf16.vlgmr.msra.gmra.mrb[52].mxu1 %v1039_v12  ;;  %v6872_v17 = vpack.c.bf16 %v1015_v61, %v1011_v32 }
 0x29d   : > { %5332 = vmatpush3.bf16.xpose.msra.mxu0 %v6868_v7  ;;  %5338 = vmatpush3.bf16.msra.mxu1 %v6720_v44 }
 0x29e   : > { %5343 = vmatprep.subr.bf16.mxu0 %v8631_v51  ;;  %5339 = vmatprep.mubr.msk.bf16.mxu1 %vm6283_vm3, %v8631_v51 }
 0x29f   : > { %5349 = vmatprep.subr.bf16.mxu1 %v8631_v51 }
 0x2a4   : > { %5334 = vmatmul.mubr.bf16.vlgmr.msra.gmra.mrb[52].mxu0 %v1040_v5 }
 0x2a5   : > { %5344 = vmatpush3.bf16.msra.mxu0 %v6740_v24  ;;  %5345 = vmatprep.mubr.msk.bf16.mxu0 %vm6283_vm3, %v8631_v51 }
 0x2a6   : > { %5355 = vmatprep.subr.bf16.mxu0 %v8631_v51 }
 0x33f   : > { %v6884_v12 = vpop.f32.mrb[36].mxu1 }
 0x340   : > { %v5293_v16 = vpop.f32.mrb[37].mxu1  ;;  %v1370_v18 = vsel %vm1369_vm4, %v6884_v12, -inf }
 0x341   : > { %1371 = vmax.xlane.f32.xlu0 %v1370_v18  ;;  %v6888_v22 = vpop.f32.mrb[38].mxu1 }
 0x342   : > { %v5294_v23 = vpop.f32.mrb[39].mxu1  ;;  %v1373_v5 = vsel %vm1369_vm4, %v6888_v22, -inf }
 0x345   : > { %1374 = vmax.xlane.f32.xlu0 %v1373_v5 }
 0x347   : > { %v6892_v27 = vpop.f32.mrb[40].mxu1 }
 0x348   : > { %v5299_v36 = vpop.f32.mrb[41].mxu1  ;;  %v1376_v28 = vsel %vm1369_vm4, %v6892_v27, -inf }
 0x349   : > { %1377 = vmax.xlane.f32.xlu1 %v1376_v28  ;;  %v6896_v32 = vpop.f32.mrb[42].mxu1 }
 0x34a   : > { %v5300_v26 = vpop.f32.mrb[43].mxu1  ;;  %v1379_v53 = vsel %vm1369_vm4, %v6896_v32, -inf }
 0x34d   : > { %1380 = vmax.xlane.f32.xlu1 %v1379_v53 }
 0x34f   : > { %v6900_v21 = vpop.f32.mrb[44].mxu1 }
 0x350   : > { %v5305_v0 = vpop.f32.mrb[45].mxu1  ;;  %v1382_v15 = vsel %vm1369_vm4, %v6900_v21, -inf }
 0x351   : > { %1383 = vmax.xlane.f32.xlu0 %v1382_v15  ;;  %v6904_v29 = vpop.f32.mrb[46].mxu1 }
 0x352   : > { %v5306_v61 = vpop.f32.mrb[47].mxu1  ;;  %v1385_v16 = vsel %vm1369_vm4, %v6904_v29, -inf }
 0x353   : > { %1386 = vmax.xlane.f32.xlu1 %v1385_v16 }
 0x357   : > { %v6908_v18 = vpop.f32.mrb[44].mxu0 }
 0x358   : > { %v5311_v23 = vpop.f32.mrb[45].mxu0  ;;  %v1388_v5 = vsel %vm1369_vm4, %v6908_v18, -inf }
 0x359   : > { %v6912_v36 = vpop.f32.mrb[46].mxu0  ;;  %1389 = vmax.xlane.f32.xlu0 %v1388_v5 }
 0x35a   : > { %v5312_v28 = vpop.f32.mrb[47].mxu0  ;;  %v1391_v26 = vsel %vm1369_vm4, %v6912_v36, -inf }
 0x35b   : > { %1392 = vmax.xlane.f32.xlu1 %v1391_v26 }
 0x35f   : > { %v6916_v53 = vpop.f32.mrb[48].mxu1 }
 0x360   : > { %v5317_v0 = vpop.f32.mrb[49].mxu1  ;;  %v1394_v15 = vsel %vm1369_vm4, %v6916_v53, -inf }
 0x361   : > { %1395 = vmax.xlane.f32.xlu0 %v1394_v15  ;;  %v6920_v61 = vpop.f32.mrb[50].mxu1 }
 0x362   : > { %v1397_v16 = vsel %vm1369_vm4, %v6920_v61, -inf  ;;  %v5318_v23 = vpop.f32.mrb[51].mxu1 }
 0x363   : > { %1398 = vmax.xlane.f32.xlu1 %v1397_v16 }
 0x367   : > { %v6924_v5 = vpop.f32.mrb[48].mxu0 }
 0x368   : > { %v5323_v28 = vpop.f32.mrb[49].mxu0  ;;  %v1400_v26 = vsel %vm1369_vm4, %v6924_v5, -inf }
 0x369   : > { %v6928_v19 = vpop.f32.mrb[50].mxu0  ;;  %1401 = vmax.xlane.f32.xlu0 %v1400_v26 }
 0x36a   : > { %v1403_v0 = vsel %vm1369_vm4, %v6928_v19, -inf  ;;  %v5324_v15 = vpop.f32.mrb[51].mxu0 }
 0x36b   : > { %1404 = vmax.xlane.f32.xlu1 %v1403_v0 }
 0x36f   : > { %v6932_v4 = vpop.f32.mrb[52].mxu1 }
 0x370   : > { %v5329_v2 = vpop.f32.mrb[53].mxu1  ;;  %v1406_v16 = vsel %vm1369_vm4, %v6932_v4, -inf }
 0x371   : > { %1407 = vmax.xlane.f32.xlu0 %v1406_v16  ;;  %v6936_v23 = vpop.f32.mrb[54].mxu1 }
 0x372   : > { %v1409_v28 = vsel %vm1369_vm4, %v6936_v23, -inf  ;;  %v5330_v1 = vpop.f32.mrb[55].mxu1 }
 0x373   : > { %1410 = vmax.xlane.f32.xlu1 %v1409_v28 }
 0x377   : > { %v6940_v26 = vpop.f32.mrb[52].mxu0 }
 0x378   : > { %v5335_v63 = vpop.f32.mrb[53].mxu0  ;;  %v1412_v0 = vsel %vm1369_vm4, %v6940_v26, -inf }
 0x379   : > { %v6944_v15 = vpop.f32.mrb[54].mxu0  ;;  %1413 = vmax.xlane.f32.xlu0 %v1412_v0 }
 0x37a   : > { %v1415_v2 = vsel %vm1369_vm4, %v6944_v15, -inf  ;;  %v5336_v16 = vpop.f32.mrb[55].mxu0 }
 0x37b   : > { %1416 = vmax.xlane.f32.xlu1 %v1415_v2 }
 0x3ce   : > { %v1372_v62 = vpop.xlane.xlu0 %1371 }
 0x3cf   : > { %v1418_v60 = vsub.f32 %v6884_v12, %v1372_v62 }
 0x3d1   : > { %v1434_v59 = vmul.f32 1.442695, %v1418_v60 }
 0x3d2   : > { %v1375_v1 = vpop.xlane.xlu0 %1374 }
 0x3d3   : > { %5794 = vpow2.f32 %v1434_v59  ;;  %v1419_v28 = vsub.f32 %v6888_v22, %v1375_v1 }
 0x3d5   : > { %v1436_v63 = vmul.f32 1.442695, %v1419_v28 }
 0x3d6   : > { %v1378_v55 = vpop.xlane.xlu1 %1377 }
 0x3d7   : > { %5796 = vpow2.f32 %v1436_v63  ;;  %v1420_v54 = vsub.f32 %v6892_v27, %v1378_v55 }
 0x3d9   : > { %v1438_v47 = vmul.f32 1.442695, %v1420_v54 }
 0x3da   : > { %v1381_v0 = vpop.xlane.xlu1 %1380 }
 0x3db   : > { %5798 = vpow2.f32 %v1438_v47  ;;  %v1421_v50 = vsub.f32 %v6896_v32, %v1381_v0 }
 0x3dd   : > { %v6952_v16 = vpop.eup %5794  ;;  %v1440_v2 = vmul.f32 1.442695, %v1421_v50 }
 0x3de   : > { %v1384_v43 = vpop.xlane.xlu0 %1383  ;;  %v1466_v60 = vsel %vm1369_vm4, %v6952_v16, 0.0 }
 0x3df   : > { %5800 = vpow2.f32 %v1440_v2  ;;  %v1422_v59 = vsub.f32 %v6900_v21, %v1384_v43  ;;  %1467 = vadd.xlane.f32.xlu0 %v1466_v60 }
 0x3e0   : > { %v1387_v62 = vpop.xlane.xlu1 %1386 }
 0x3e1   : > { %v6957_v12 = vpop.eup %5796  ;;  %v1442_v55 = vmul.f32 1.442695, %v1422_v59  ;;  %v1423_v54 = vsub.f32 %v6904_v29, %v1387_v62 }
 0x3e2   : > { %v1469_v47 = vsel %vm1369_vm4, %v6957_v12, 0.0 }
 0x3e3   : > { %5802 = vpow2.f32 %v1442_v55  ;;  %v1444_v22 = vmul.f32 1.442695, %v1423_v54  ;;  %1470 = vadd.xlane.f32.xlu1 %v1469_v47 }
 0x3e5   : > { %v6962_v50 = vpop.eup %5798  ;;  %5804 = vpow2.f32 %v1444_v22 }
 0x3e6   : > { %v1390_v27 = vpop.xlane.xlu0 %1389  ;;  %v1472_v43 = vsel %vm1369_vm4, %v6962_v50, 0.0 }
 0x3e7   : > { %v1424_v32 = vsub.f32 %v6908_v18, %v1390_v27  ;;  %1473 = vadd.xlane.f32.xlu0 %v1472_v43 }
 0x3e8   : > { %v1393_v21 = vpop.xlane.xlu1 %1392 }
 0x3e9   : > { %v6967_v1 = vpop.eup %5800  ;;  %v1446_v29 = vmul.f32 1.442695, %v1424_v32  ;;  %v1425_v28 = vsub.f32 %v6912_v36, %v1393_v21 }
 0x3ea   : > { %v1475_v63 = vsel %vm1369_vm4, %v6967_v1, 0.0 }
 0x3eb   : > { %5806 = vpow2.f32 %v1446_v29  ;;  %v1448_v0 = vmul.f32 1.442695, %v1425_v28  ;;  %1476 = vadd.xlane.f32.xlu1 %v1475_v63 }
 0x3ed   : > { %v6972_v2 = vpop.eup %5802  ;;  %5808 = vpow2.f32 %v1448_v0 }
 0x3ee   : > { %v1396_v60 = vpop.xlane.xlu0 %1395  ;;  %v1478_v18 = vsel %vm1369_vm4, %v6972_v2, 0.0 }
 0x3ef   : > { %v6976_v59 = vpop.eup %5804  ;;  %v1426_v62 = vsub.f32 %v6916_v53, %v1396_v60  ;;  %1479 = vadd.xlane.f32.xlu0 %v1478_v18 }
 0x3f0   : > { %v1399_v55 = vpop.xlane.xlu1 %1398  ;;  %v1481_v36 = vsel %vm1369_vm4, %v6976_v59, 0.0 }
 0x3f1   : > { %v1450_v54 = vmul.f32 1.442695, %v1426_v62  ;;  %v1427_v47 = vsub.f32 %v6920_v61, %v1399_v55  ;;  %1482 = vadd.xlane.f32.xlu1 %v1481_v36 }
 0x3f3   : > { %5810 = vpow2.f32 %v1450_v54  ;;  %v1452_v22 = vmul.f32 1.442695, %v1427_v47 }
 0x3f5   : > { %v6982_v27 = vpop.eup %5806  ;;  %5812 = vpow2.f32 %v1452_v22 }
 0x3f6   : > { %v1402_v43 = vpop.xlane.xlu0 %1401  ;;  %v1484_v32 = vsel %vm1369_vm4, %v6982_v27, 0.0 }
 0x3f7   : > { %v6986_v21 = vpop.eup %5808  ;;  %v1428_v53 = vsub.f32 %v6924_v5, %v1402_v43  ;;  %1485 = vadd.xlane.f32.xlu0 %v1484_v32 }
 0x3f8   : > { %v1405_v29 = vpop.xlane.xlu1 %1404  ;;  %v1487_v28 = vsel %vm1369_vm4, %v6986_v21, 0.0 }
 0x3f9   : > { %v1454_v61 = vmul.f32 1.442695, %v1428_v53  ;;  %v1429_v63 = vsub.f32 %v6928_v19, %v1405_v29  ;;  %1488 = vadd.xlane.f32.xlu1 %v1487_v28 }
 0x3fb   : > { %5814 = vpow2.f32 %v1454_v61  ;;  %v1456_v0 = vmul.f32 1.442695, %v1429_v63 }
 0x3fd   : > { %v6992_v60 = vpop.eup %5810  ;;  %5816 = vpow2.f32 %v1456_v0 }
 0x3fe   : > { %v1408_v18 = vpop.xlane.xlu0 %1407  ;;  %v1490_v62 = vsel %vm1369_vm4, %v6992_v60, 0.0 }
 0x3ff   : > { %v6996_v55 = vpop.eup %5812  ;;  %v1430_v5 = vsub.f32 %v6932_v4, %v1408_v18  ;;  %1491 = vadd.xlane.f32.xlu0 %v1490_v62 }
 0x400   : > { %v1411_v36 = vpop.xlane.xlu1 %1410  ;;  %v1493_v54 = vsel %vm1369_vm4, %v6996_v55, 0.0 }
 0x401   : > { %v1458_v19 = vmul.f32 1.442695, %v1430_v5  ;;  %v1431_v47 = vsub.f32 %v6936_v23, %v1411_v36  ;;  %1494 = vadd.xlane.f32.xlu1 %v1493_v54 }
 0x403   : > { %5818 = vpow2.f32 %v1458_v19  ;;  %v1460_v22 = vmul.f32 1.442695, %v1431_v47 }
 0x405   : > { %v7002_v43 = vpop.eup %5814  ;;  %5820 = vpow2.f32 %v1460_v22 }
 0x406   : > { %v1414_v32 = vpop.xlane.xlu0 %1413  ;;  %v1496_v53 = vsel %vm1369_vm4, %v7002_v43, 0.0 }
 0x407   : > { %v7006_v29 = vpop.eup %5816  ;;  %v1432_v4 = vsub.f32 %v6940_v26, %v1414_v32  ;;  %1497 = vadd.xlane.f32.xlu0 %v1496_v53 }
 0x408   : > { %v1417_v28 = vpop.xlane.xlu1 %1416  ;;  %v1499_v61 = vsel %vm1369_vm4, %v7006_v29, 0.0 }
 0x409   : > { %v1462_v23 = vmul.f32 1.442695, %v1432_v4  ;;  %v1433_v63 = vsub.f32 %v6944_v15, %v1417_v28  ;;  %1500 = vadd.xlane.f32.xlu1 %v1499_v61 }
 0x40b   : > { %5822 = vpow2.f32 %v1462_v23  ;;  %v1464_v0 = vmul.f32 1.442695, %v1433_v63 }
 0x40d   : > { %v7012_v18 = vpop.eup %5818  ;;  %5824 = vpow2.f32 %v1464_v0 }
 0x40e   : > { %v1502_v62 = vsel %vm1369_vm4, %v7012_v18, 0.0 }
 0x40f   : > { %v7016_v5 = vpop.eup %5820  ;;  %1503 = vadd.xlane.f32.xlu0 %v1502_v62 }
 0x410   : > { %v1505_v26 = vsel %vm1369_vm4, %v7016_v5, 0.0 }
 0x411   : > { %1506 = vadd.xlane.f32.xlu1 %v1505_v26 }
 0x415   : > { %v7020_v36 = vpop.eup %5822 }
 0x416   : > { %v1508_v15 = vsel %vm1369_vm4, %v7020_v36, 0.0 }
 0x417   : > { %v7024_v54 = vpop.eup %5824  ;;  %1509 = vadd.xlane.f32.xlu0 %v1508_v15 }
 0x418   : > { %v1511_v19 = vsel %vm1369_vm4, %v7024_v54, 0.0 }
 0x419   : > { %1512 = vadd.xlane.f32.xlu1 %v1511_v19 }
 0x46c   : > { %v1468_v47 = vpop.xlane.xlu0 %1467 }
 0x46d   : > { %5826 = vrcp.f32 %v1468_v47 }
 0x470   : > { %v1471_v22 = vpop.xlane.xlu1 %1470 }
 0x471   : > { %5828 = vrcp.f32 %v1471_v22 }
 0x474   : > { %v1474_v32 = vpop.xlane.xlu0 %1473 }
 0x475   : > { %5830 = vrcp.f32 %v1474_v32 }
 0x477   : > { %v5827_v4 = vpop.eup %5826 }
 0x478   : > { %v1477_v53 = vpop.xlane.xlu1 %1476  ;;  %v1515_v61 = vmul.f32 %v5827_v4, %v6952_v16 }
 0x479   : > { %5832 = vrcp.f32 %v1477_v53 }
 0x47b   : > { %v5829_v28 = vpop.eup %5828 }
 0x47c   : > { %v1517_v23 = vmul.f32 %v5829_v28, %v6957_v12  ;;  %v1480_v63 = vpop.xlane.xlu0 %1479 }
 0x47d   : > { %5834 = vrcp.f32 %v1480_v63 }
 0x47e   : > { %v1483_v0 = vpop.xlane.xlu1 %1482  ;;  %v1546_v62 = vpack.c.bf16 %v1517_v23, %v1515_v61 }
 0x47f   : > { %5836 = vrcp.f32 %v1483_v0  ;;  %v5831_v26 = vpop.eup %5830 }
 0x480   : > { %5340 = vmatmul.mubr.msk.bf16.vlgmr.msra.gmra.mrb[56].mxu1 %vm1369_vm4, %v1546_v62  ;;  %v1519_v16 = vmul.f32 %v5831_v26, %v6962_v50 }
 0x481   : > { %5350 = vmatpush3.bf16.msra.mxu1 %v6762_v56  ;;  %5351 = vmatprep.mubr.msk.bf16.mxu1 %vm6283_vm3, %v8631_v51 }
 0x482   : > { %5361 = vmatprep.subr.bf16.mxu1 %v8631_v51 }
 0x483   : > { %v5833_v15 = vpop.eup %5832 }
 0x484   : > { %v1521_v12 = vmul.f32 %v5833_v15, %v6967_v1  ;;  %v1486_v19 = vpop.xlane.xlu0 %1485 }
 0x485   : > { %5838 = vrcp.f32 %v1486_v19 }
 0x486   : > { %v1489_v47 = vpop.xlane.xlu1 %1488  ;;  %v1547_v22 = vpack.c.bf16 %v1521_v12, %v1519_v16 }
 0x487   : > { %v5835_v32 = vpop.eup %5834  ;;  %5840 = vrcp.f32 %v1489_v47 }
 0x488   : > { %5346 = vmatmul.mubr.msk.bf16.vlgmr.msra.gmra.mrb[56].mxu0 %vm1369_vm4, %v1547_v22  ;;  %v1523_v4 = vmul.f32 %v5835_v32, %v6972_v2 }
 0x489   : > { %v5837_v53 = vpop.eup %5836  ;;  %5356 = vmatpush3.bf16.msra.mxu0 %v6784_v45  ;;  %5357 = vmatprep.mubr.msk.bf16.mxu0 %vm6283_vm3, %v8631_v51 }
 0x48a   : > { %v1525_v50 = vmul.f32 %v5837_v53, %v6976_v59  ;;  %5367 = vmatprep.subr.bf16.mxu0 %v8631_v51 }
 0x48c   : > { %v1492_v1 = vpop.xlane.xlu0 %1491  ;;  %v1548_v28 = vpack.c.bf16 %v1525_v50, %v1523_v4 }
 0x48d   : > { %5842 = vrcp.f32 %v1492_v1 }
 0x48e   : > { %5352 = vmatmul.mubr.msk.bf16.vlgmr.msra.gmra.mrb[60].mxu1 %vm1369_vm4, %v1548_v28  ;;  %v1495_v61 = vpop.xlane.xlu1 %1494 }
 0x48f   : > { %v5839_v23 = vpop.eup %5838  ;;  %5362 = vmatpush3.bf16.msra.mxu1 %v6804_v49  ;;  %5844 = vrcp.f32 %v1495_v61  ;;  %5363 = vmatprep.mubr.msk.bf16.mxu1 %vm6283_vm3, %v8631_v51 }
 0x490   : > { %5373 = vmatprep.subr.bf16.mxu1 %v8631_v51  ;;  %v1527_v59 = vmul.f32 %v5839_v23, %v6982_v27 }
 0x491   : > { %v5841_v2 = vpop.eup %5840 }
 0x492   : > { %v1529_v63 = vmul.f32 %v5841_v2, %v6986_v21 }
 0x494   : > { %v1498_v0 = vpop.xlane.xlu0 %1497  ;;  %v1549_v62 = vpack.c.bf16 %v1529_v63, %v1527_v59 }
 0x495   : > { %5846 = vrcp.f32 %v1498_v0 }
 0x496   : > { %5358 = vmatmul.mubr.msk.bf16.vlgmr.msra.gmra.mrb[60].mxu0 %vm1369_vm4, %v1549_v62  ;;  %v1501_v26 = vpop.xlane.xlu1 %1500 }
 0x497   : > { %v5843_v15 = vpop.eup %5842  ;;  %5368 = vmatpush3.bf16.msra.mxu0 %v6826_v11  ;;  %5848 = vrcp.f32 %v1501_v26  ;;  %5369 = vmatprep.mubr.msk.bf16.mxu0 %vm6283_vm3, %v8631_v51 }
 0x498   : > { %5379 = vmatprep.subr.bf16.mxu0 %v8631_v51  ;;  %v1531_v27 = vmul.f32 %v5843_v15, %v6992_v60 }
 0x499   : > { %v5845_v16 = vpop.eup %5844 }
 0x49a   : > { %v1533_v21 = vmul.f32 %v5845_v16, %v6996_v55 }
 0x49c   : > { %v1504_v12 = vpop.xlane.xlu0 %1503  ;;  %v1550_v19 = vpack.c.bf16 %v1533_v21, %v1531_v27 }
 0x49d   : > { %5850 = vrcp.f32 %v1504_v12 }
 0x49e   : > { %5364 = vmatmul.mubr.msk.bf16.vlgmr.msra.gmra.mrb[64].mxu1 %vm1369_vm4, %v1550_v19  ;;  %v1507_v47 = vpop.xlane.xlu1 %1506 }
 0x49f   : > { %v5847_v22 = vpop.eup %5846  ;;  %5374 = vmatpush3.bf16.msra.mxu1 %v6848_v6  ;;  %5852 = vrcp.f32 %v1507_v47  ;;  %5375 = vmatprep.mubr.msk.bf16.mxu1 %vm6283_vm3, %v8631_v51 }
 0x4a0   : > { %5385 = vmatprep.subr.bf16.mxu1 %v8631_v51  ;;  %v1535_v60 = vmul.f32 %v5847_v22, %v7002_v43 }
 0x4a1   : > { %v5849_v32 = vpop.eup %5848 }
 0x4a2   : > { %v1537_v55 = vmul.f32 %v5849_v32, %v7006_v29 }
 0x4a4   : > { %v1510_v53 = vpop.xlane.xlu0 %1509  ;;  %v1551_v4 = vpack.c.bf16 %v1537_v55, %v1535_v60 }
 0x4a5   : > { %5854 = vrcp.f32 %v1510_v53 }
 0x4a6   : > { %5370 = vmatmul.mubr.msk.bf16.vlgmr.msra.gmra.mrb[64].mxu0 %vm1369_vm4, %v1551_v4  ;;  %v1513_v50 = vpop.xlane.xlu1 %1512 }
 0x4a7   : > { %v5851_v1 = vpop.eup %5850  ;;  %5380 = vmatpush3.bf16.msra.mxu0 %v6872_v17  ;;  %5856 = vrcp.f32 %v1513_v50  ;;  %5381 = vmatprep.mubr.msk.bf16.mxu0 %vm6283_vm3, %v8631_v51 }
 0x4a8   : > { %5391 = vmatprep.subr.bf16.mxu0 %v8631_v51  ;;  %v1539_v43 = vmul.f32 %v5851_v1, %v7012_v18  ;;  %v8632_v18 = vpack.c.bf16 %v6713_v37, %v6709_v35  ;;  %v8634_v35 = vpack.c.bf16 %v6755_v48, %v6752_v46  ;;  %v8635_v37 = vpack.c.bf16 %v6777_v33, %v6774_v31 }
 0x4a9   : > { %v5853_v28 = vpop.eup %5852  ;;  %v8639_v46 = vpack.c.bf16 %v6865_v8, %v6862_v13 }
 0x4aa   : > { %v1541_v29 = vmul.f32 %v5853_v28, %v7016_v5 }
 0x4ac   : > { %v1552_v61 = vpack.c.bf16 %v1541_v29, %v1539_v43 }
 0x4ae   : > { %5376 = vmatmul.mubr.msk.bf16.vlgmr.msra.gmra.mrb[68].mxu1 %vm1369_vm4, %v1552_v61 }
 0x4af   : > { %v5855_v23 = vpop.eup %5854  ;;  %5386 = vmatpush3.bf16.xpose.msra.mxu1 %v6716_v40  ;;  %5387 = vmatprep.mubr.msk.bf16.mxu1 %vm6283_vm3, %v8631_v51  ;;  %v8633_v40 = vpack.c.bf16 %v6733_v9, %v6729_v3  ;;  %v8636_v3 = vpack.c.bf16 %v6800_v34, %v6797_v30  ;;  %v8637_v9 = vpack.c.bf16 %v6822_v39, %v6819_v57 }
 0x4b0   : > { %5397 = vmatprep.subr.bf16.mxu1 %v8631_v51  ;;  %v1543_v59 = vmul.f32 %v5855_v23, %v7020_v36 }
 0x4b1   : > { %v5857_v2 = vpop.eup %5856 }
 0x4b2   : > { %v1545_v63 = vmul.f32 %v5857_v2, %v7024_v54 }
 0x4b4   : > { %v1553_v0 = vpack.c.bf16 %v1545_v63, %v1543_v59 }
 0x4b6   : > { %5382 = vmatmul.mubr.msk.bf16.vlgmr.msra.gmra.mrb[68].mxu0 %vm1369_vm4, %v1553_v0  ;;  %5388 = vmatmul.mubr.bf16.vlgmr.msra.gmra.mrb[72].mxu1 %v8632_v18 }
 0x4b7   : > { %5392 = vmatpush3.bf16.xpose.msra.mxu0 %v6736_v20  ;;  %5398 = vmatpush3.bf16.xpose.msra.mxu1 %v6758_v52  ;;  %v8638_v20 = vpack.c.bf16 %v6844_v10, %v6841_v41 }
 0x4b8   : > { %5393 = vmatprep.mubr.msk.bf16.mxu0 %vm6283_vm3, %v8631_v51  ;;  %5399 = vmatprep.mubr.msk.bf16.mxu1 %vm6283_vm3, %v8631_v51 }
 0x4b9   : > { %5403 = vmatprep.subr.bf16.mxu0 %v8631_v51  ;;  %5409 = vmatprep.subr.bf16.mxu1 %v8631_v51 }
 0x4be   : > { %5394 = vmatmul.mubr.bf16.vlgmr.msra.gmra.mrb[72].mxu0 %v8633_v40  ;;  %5400 = vmatmul.mubr.bf16.vlgmr.msra.gmra.mrb[76].mxu1 %v8634_v35 }
 0x4bf   : > { %5404 = vmatpush3.bf16.xpose.msra.mxu0 %v6780_v38  ;;  %5410 = vmatpush3.bf16.xpose.msra.mxu1 %v6802_v58 }
 0x4c0   : > { %5405 = vmatprep.mubr.msk.bf16.mxu0 %vm6283_vm3, %v8631_v51  ;;  %5411 = vmatprep.mubr.msk.bf16.mxu1 %vm6283_vm3, %v8631_v51 }
 0x4c1   : > { %5415 = vmatprep.subr.bf16.mxu0 %v8631_v51  ;;  %5421 = vmatprep.subr.bf16.mxu1 %v8631_v51 }
 0x4c6   : > { %5406 = vmatmul.mubr.bf16.vlgmr.msra.gmra.mrb[76].mxu0 %v8635_v37  ;;  %5412 = vmatmul.mubr.bf16.vlgmr.msra.gmra.mrb[80].mxu1 %v8636_v3 }
 0x4c7   : > { %5416 = vmatpush3.bf16.xpose.msra.mxu0 %v6824_v25  ;;  %5422 = vmatpush3.bf16.xpose.msra.mxu1 %v6846_v14 }
 0x4c8   : > { %5417 = vmatprep.mubr.msk.bf16.mxu0 %vm6283_vm3, %v8631_v51  ;;  %5423 = vmatprep.mubr.msk.bf16.mxu1 %vm6283_vm3, %v8631_v51 }
 0x4c9   : > { %5427 = vmatprep.subr.bf16.mxu0 %v8631_v51  ;;  %5433 = vmatprep.subr.bf16.mxu1 %v8631_v51 }
 0x4ce   : > { %5418 = vmatmul.mubr.bf16.vlgmr.msra.gmra.mrb[80].mxu0 %v8637_v9  ;;  %5424 = vmatmul.mubr.bf16.vlgmr.msra.gmra.mrb[84].mxu1 %v8638_v20 }
 0x4cf   : > { %5428 = vmatpush3.bf16.xpose.msra.mxu0 %v6868_v7  ;;  %5434 = vmatpush3.bf16.msra.mxu1 %v6720_v44 }
 0x4d0   : > { %5429 = vmatprep.mubr.msk.bf16.mxu0 %vm6283_vm3, %v8631_v51  ;;  %5439 = vmatprep.subr.bf16.mxu0 %v8631_v51 }
 0x4d1   : > { %5435 = vmatprep.mubr.msk.bf16.mxu1 %vm6283_vm3, %v8631_v51  ;;  %5445 = vmatprep.subr.bf16.mxu1 %v8631_v51 }
 0x4d6   : > { %5430 = vmatmul.mubr.bf16.vlgmr.msra.gmra.mrb[84].mxu0 %v8639_v46 }
 0x4d7   : > { %5440 = vmatpush3.bf16.msra.mxu0 %v6740_v24  ;;  %5441 = vmatprep.mubr.msk.bf16.mxu0 %vm6283_vm3, %v8631_v51 }
 0x4d8   : > { %5451 = vmatprep.subr.bf16.mxu0 %v8631_v51 }
 0x553   : > { %v7140_v7 = vpop.f32.mrb[56].mxu1 }
 0x554   : > { %v5341_v10 = vpop.f32.mrb[57].mxu1 }
 0x555   : > { %v7142_v41 = vpop.f32.mrb[58].mxu1 }
 0x556   : > { %v2778_v44 = vpack.c.bf16 %v7142_v41, %v7140_v7  ;;  %v5342_v48 = vpop.f32.mrb[59].mxu1 }
 0x55b   : > { %v7146_v52 = vpop.f32.mrb[56].mxu0 }
 0x55c   : > { %v5347_v8 = vpop.f32.mrb[57].mxu0 }
 0x55d   : > { %v7148_v13 = vpop.f32.mrb[58].mxu0 }
 0x55e   : > { %v2780_v24 = vpack.c.bf16 %v7148_v13, %v7146_v52  ;;  %v5348_v31 = vpop.f32.mrb[59].mxu0 }
 0x561   : > { %v7152_v33 = vpop.f32.mrb[60].mxu1 }
 0x562   : > { %v5353_v38 = vpop.f32.mrb[61].mxu1 }
 0x563   : > { %v7154_v39 = vpop.f32.mrb[62].mxu1 }
 0x564   : > { %v2782_v30 = vpack.c.bf16 %v7154_v39, %v7152_v33  ;;  %v5354_v34 = vpop.f32.mrb[63].mxu1 }
 0x569   : > { %v7158_v58 = vpop.f32.mrb[60].mxu0 }
 0x56a   : > { %v5359_v57 = vpop.f32.mrb[61].mxu0 }
 0x56b   : > { %v7160_v25 = vpop.f32.mrb[62].mxu0 }
 0x56c   : > { %v2784_v14 = vpack.c.bf16 %v7160_v25, %v7158_v58  ;;  %v5360_v5 = vpop.f32.mrb[63].mxu0  ;;  %v7453_v25 = vld [vmem:[#allocation10 + $0x2] ss:$0 sm:$0xff] }
 0x571   : > { %v7164_v36 = vpop.f32.mrb[64].mxu1 }
 0x572   : > { %v5365_v54 = vpop.f32.mrb[65].mxu1 }
 0x573   : > { %v7166_v62 = vpop.f32.mrb[66].mxu1 }
 0x574   : > { %v2786_v26 = vpack.c.bf16 %v7166_v62, %v7164_v36  ;;  %v5366_v15 = vpop.f32.mrb[67].mxu1 }
 0x579   : > { %v7170_v16 = vpop.f32.mrb[64].mxu0 }
 0x57a   : > { %v5371_v27 = vpop.f32.mrb[65].mxu0 }
 0x57b   : > { %v7172_v21 = vpop.f32.mrb[66].mxu0 }
 0x57c   : > { %v2788_v12 = vpack.c.bf16 %v7172_v21, %v7170_v16  ;;  %v5372_v19 = vpop.f32.mrb[67].mxu0 }
 0x581   : > { %v7176_v47 = vpop.f32.mrb[68].mxu1 }
 0x582   : > { %v5377_v22 = vpop.f32.mrb[69].mxu1 }
 0x583   : > { %v7178_v32 = vpop.f32.mrb[70].mxu1 }
 0x584   : > { %v2790_v60 = vpack.c.bf16 %v7178_v32, %v7176_v47  ;;  %v5378_v55 = vpop.f32.mrb[71].mxu1 }
 0x589   : > { %v7182_v53 = vpop.f32.mrb[68].mxu0  ;;  %v7184_v4 = vpop.f32.mrb[72].mxu1 }
 0x58a   : > { %v5383_v50 = vpop.f32.mrb[69].mxu0  ;;  %v5389_v1 = vpop.f32.mrb[73].mxu1  ;;  %v2242_v28 = vsel %vm1369_vm4, %v7184_v4, -inf }
 0x58b   : > { %v7188_v43 = vpop.f32.mrb[70].mxu0  ;;  %2243 = vmax.xlane.f32.xlu0 %v2242_v28  ;;  %v7190_v29 = vpop.f32.mrb[74].mxu1 }
 0x58c   : > { %v2792_v61 = vpack.c.bf16 %v7188_v43, %v7182_v53  ;;  %v5384_v23 = vpop.f32.mrb[71].mxu0  ;;  %v5390_v2 = vpop.f32.mrb[75].mxu1  ;;  %v2245_v59 = vsel %vm1369_vm4, %v7190_v29, -inf  ;;  %v8641_v53 = vld [vmem:[#allocation18_spill] sm:$0xff] }
 0x58d   : > { %2246 = vmax.xlane.f32.xlu1 %v2245_v59 }
 0x591   : > { %v7196_v63 = vpop.f32.mrb[72].mxu0  ;;  %v7198_v0 = vpop.f32.mrb[76].mxu1 }
 0x592   : > { %v5395_v18 = vpop.f32.mrb[73].mxu0  ;;  %v5401_v40 = vpop.f32.mrb[77].mxu1  ;;  %v2248_v35 = vsel %vm1369_vm4, %v7196_v63, -inf  ;;  %v2254_v10 = vsel %vm1369_vm4, %v7198_v0, -inf }
 0x593   : > { %v7202_v37 = vpop.f32.mrb[74].mxu0  ;;  %2249 = vmax.xlane.f32.xlu0 %v2248_v35  ;;  %v7204_v3 = vpop.f32.mrb[78].mxu1 }
 0x594   : > { %v5396_v9 = vpop.f32.mrb[75].mxu0  ;;  %v5402_v20 = vpop.f32.mrb[79].mxu1  ;;  %v2251_v46 = vsel %vm1369_vm4, %v7202_v37, -inf  ;;  %v2257_v48 = vsel %vm1369_vm4, %v7204_v3, -inf }
 0x595   : > { %2252 = vmax.xlane.f32.xlu1 %v2251_v46 }
 0x597   : > { %2255 = vmax.xlane.f32.xlu0 %v2254_v10 }
 0x599   : > { %v7212_v8 = vpop.f32.mrb[76].mxu0  ;;  %2258 = vmax.xlane.f32.xlu1 %v2257_v48  ;;  %v7214_v31 = vpop.f32.mrb[80].mxu1 }
 0x59a   : > { %v5407_v38 = vpop.f32.mrb[77].mxu0  ;;  %v5413_v34 = vpop.f32.mrb[81].mxu1  ;;  %v2260_v57 = vsel %vm1369_vm4, %v7212_v8, -inf  ;;  %v2266_v22 = vsel %vm1369_vm4, %v7214_v31, -inf }
 0x59b   : > { %v7218_v5 = vpop.f32.mrb[78].mxu0  ;;  %2261 = vmax.xlane.f32.xlu0 %v2260_v57  ;;  %v7220_v54 = vpop.f32.mrb[82].mxu1 }
 0x59c   : > { %v5408_v15 = vpop.f32.mrb[79].mxu0  ;;  %v5414_v27 = vpop.f32.mrb[83].mxu1  ;;  %v2263_v19 = vsel %vm1369_vm4, %v7218_v5, -inf  ;;  %v2269_v55 = vsel %vm1369_vm4, %v7220_v54, -inf }
 0x59d   : > { %2264 = vmax.xlane.f32.xlu1 %v2263_v19 }
 0x59f   : > { %2267 = vmax.xlane.f32.xlu0 %v2266_v22 }
 0x5a1   : > { %v7228_v50 = vpop.f32.mrb[80].mxu0  ;;  %2270 = vmax.xlane.f32.xlu1 %v2269_v55  ;;  %v7230_v1 = vpop.f32.mrb[84].mxu1 }
 0x5a2   : > { %v5419_v28 = vpop.f32.mrb[81].mxu0  ;;  %v5425_v23 = vpop.f32.mrb[85].mxu1  ;;  %v2272_v2 = vsel %vm1369_vm4, %v7228_v50, -inf  ;;  %v2278_v20 = vsel %vm1369_vm4, %v7230_v1, -inf }
 0x5a3   : > { %v7234_v59 = vpop.f32.mrb[82].mxu0  ;;  %2273 = vmax.xlane.f32.xlu0 %v2272_v2  ;;  %v7236_v18 = vpop.f32.mrb[86].mxu1 }
 0x5a4   : > { %v5420_v40 = vpop.f32.mrb[83].mxu0  ;;  %v5426_v35 = vpop.f32.mrb[87].mxu1  ;;  %v2275_v9 = vsel %vm1369_vm4, %v7234_v59, -inf  ;;  %v2281_v46 = vsel %vm1369_vm4, %v7236_v18, -inf }
 0x5a5   : > { %2276 = vmax.xlane.f32.xlu1 %v2275_v9 }
 0x5a7   : > { %2279 = vmax.xlane.f32.xlu0 %v2278_v20 }
 0x5a9   : > { %v7244_v10 = vpop.f32.mrb[84].mxu0  ;;  %2282 = vmax.xlane.f32.xlu1 %v2281_v46 }
 0x5aa   : > { %v5431_v48 = vpop.f32.mrb[85].mxu0  ;;  %v2284_v38 = vsel %vm1369_vm4, %v7244_v10, -inf }
 0x5ab   : > { %v7248_v34 = vpop.f32.mrb[86].mxu0  ;;  %2285 = vmax.xlane.f32.xlu0 %v2284_v38 }
 0x5ac   : > { %v5432_v57 = vpop.f32.mrb[87].mxu0  ;;  %v2287_v15 = vsel %vm1369_vm4, %v7248_v34, -inf }
 0x5ad   : > { %2288 = vmax.xlane.f32.xlu1 %v2287_v15 }
 0x618   : > { %v2244_v27 = vpop.xlane.xlu0 %2243 }
 0x619   : > { %v2290_v19 = vsub.f32 %v7184_v4, %v2244_v27 }
 0x61a   : > { %v2247_v22 = vpop.xlane.xlu1 %2246 }
 0x61b   : > { %v2306_v55 = vmul.f32 1.442695, %v2290_v19  ;;  %v2291_v28 = vsub.f32 %v7190_v29, %v2247_v22 }
 0x61d   : > { %5858 = vpow2.f32 %v2306_v55  ;;  %v2308_v23 = vmul.f32 1.442695, %v2291_v28 }
 0x61f   : > { %5860 = vpow2.f32 %v2308_v23 }
 0x620   : > { %v2250_v2 = vpop.xlane.xlu0 %2249 }
 0x621   : > { %v2292_v40 = vsub.f32 %v7196_v63, %v2250_v2 }
 0x622   : > { %v2253_v35 = vpop.xlane.xlu1 %2252 }
 0x623   : > { %v2310_v9 = vmul.f32 1.442695, %v2292_v40  ;;  %v2293_v20 = vsub.f32 %v7202_v37, %v2253_v35 }
 0x624   : > { %v2256_v46 = vpop.xlane.xlu0 %2255 }
 0x625   : > { %5862 = vpow2.f32 %v2310_v9  ;;  %v2312_v48 = vmul.f32 1.442695, %v2293_v20  ;;  %v2294_v38 = vsub.f32 %v7198_v0, %v2256_v46 }
 0x626   : > { %v2259_v4 = vpop.xlane.xlu1 %2258 }
 0x627   : > { %v7257_v57 = vpop.eup %5858  ;;  %5864 = vpow2.f32 %v2312_v48  ;;  %v2314_v29 = vmul.f32 1.442695, %v2294_v38  ;;  %v2295_v15 = vsub.f32 %v7204_v3, %v2259_v4 }
 0x628   : > { %v2262_v27 = vpop.xlane.xlu0 %2261  ;;  %v2338_v63 = vsel %vm1369_vm4, %v7257_v57, 0.0 }
 0x629   : > { %v7262_v19 = vpop.eup %5860  ;;  %5866 = vpow2.f32 %v2314_v29  ;;  %v2316_v37 = vmul.f32 1.442695, %v2295_v15  ;;  %v2296_v22 = vsub.f32 %v7212_v8, %v2262_v27  ;;  %2339 = vadd.xlane.f32.xlu0 %v2338_v63 }
 0x62a   : > { %v2265_v55 = vpop.xlane.xlu1 %2264  ;;  %v2341_v0 = vsel %vm1369_vm4, %v7262_v19, 0.0 }
 0x62b   : > { %5868 = vpow2.f32 %v2316_v37  ;;  %v2318_v28 = vmul.f32 1.442695, %v2296_v22  ;;  %v2297_v23 = vsub.f32 %v7218_v5, %v2265_v55  ;;  %2342 = vadd.xlane.f32.xlu1 %v2341_v0 }
 0x62c   : > { %v2268_v3 = vpop.xlane.xlu0 %2267 }
 0x62d   : > { %5870 = vpow2.f32 %v2318_v28  ;;  %v2320_v2 = vmul.f32 1.442695, %v2297_v23  ;;  %v2298_v40 = vsub.f32 %v7214_v31, %v2268_v3 }
 0x62e   : > { %v2271_v35 = vpop.xlane.xlu1 %2270 }
 0x62f   : > { %v7269_v9 = vpop.eup %5862  ;;  %5872 = vpow2.f32 %v2320_v2  ;;  %v2322_v8 = vmul.f32 1.442695, %v2298_v40  ;;  %v2299_v20 = vsub.f32 %v7220_v54, %v2271_v35 }
 0x630   : > { %v2274_v46 = vpop.xlane.xlu0 %2273  ;;  %v2344_v48 = vsel %vm1369_vm4, %v7269_v9, 0.0 }
 0x631   : > { %v7274_v38 = vpop.eup %5864  ;;  %5874 = vpow2.f32 %v2322_v8  ;;  %v2324_v5 = vmul.f32 1.442695, %v2299_v20  ;;  %v2300_v4 = vsub.f32 %v7228_v50, %v2274_v46  ;;  %2345 = vadd.xlane.f32.xlu0 %v2344_v48 }
 0x632   : > { %v2277_v29 = vpop.xlane.xlu1 %2276  ;;  %v2347_v31 = vsel %vm1369_vm4, %v7274_v38, 0.0 }
 0x633   : > { %v7279_v15 = vpop.eup %5866  ;;  %5876 = vpow2.f32 %v2324_v5  ;;  %v2326_v27 = vmul.f32 1.442695, %v2300_v4  ;;  %v2301_v54 = vsub.f32 %v7234_v59, %v2277_v29  ;;  %2348 = vadd.xlane.f32.xlu1 %v2347_v31 }
 0x634   : > { %v2280_v63 = vpop.xlane.xlu0 %2279  ;;  %v2350_v37 = vsel %vm1369_vm4, %v7279_v15, 0.0 }
 0x635   : > { %v7284_v22 = vpop.eup %5868  ;;  %5878 = vpow2.f32 %v2326_v27  ;;  %v2328_v50 = vmul.f32 1.442695, %v2301_v54  ;;  %v2302_v55 = vsub.f32 %v7230_v1, %v2280_v63  ;;  %2351 = vadd.xlane.f32.xlu0 %v2350_v37 }
 0x636   : > { %v2283_v0 = vpop.xlane.xlu1 %2282  ;;  %v2353_v28 = vsel %vm1369_vm4, %v7284_v22, 0.0 }
 0x637   : > { %v7289_v23 = vpop.eup %5870  ;;  %5880 = vpow2.f32 %v2328_v50  ;;  %v2330_v59 = vmul.f32 1.442695, %v2302_v55  ;;  %v2303_v3 = vsub.f32 %v7236_v18, %v2283_v0  ;;  %2354 = vadd.xlane.f32.xlu1 %v2353_v28 }
 0x638   : > { %v2286_v2 = vpop.xlane.xlu0 %2285  ;;  %v2356_v40 = vsel %vm1369_vm4, %v7289_v23, 0.0 }
 0x639   : > { %v7294_v35 = vpop.eup %5872  ;;  %5882 = vpow2.f32 %v2330_v59  ;;  %v2332_v1 = vmul.f32 1.442695, %v2303_v3  ;;  %v2304_v8 = vsub.f32 %v7244_v10, %v2286_v2  ;;  %2357 = vadd.xlane.f32.xlu0 %v2356_v40 }
 0x63a   : > { %v2289_v20 = vpop.xlane.xlu1 %2288  ;;  %v2359_v46 = vsel %vm1369_vm4, %v7294_v35, 0.0 }
 0x63b   : > { %v7299_v48 = vpop.eup %5874  ;;  %5884 = vpow2.f32 %v2332_v1  ;;  %v2334_v18 = vmul.f32 1.442695, %v2304_v8  ;;  %v2305_v5 = vsub.f32 %v7248_v34, %v2289_v20  ;;  %2360 = vadd.xlane.f32.xlu1 %v2359_v46 }
 0x63c   : > { %v2362_v4 = vsel %vm1369_vm4, %v7299_v48, 0.0 }
 0x63d   : > { %v7304_v29 = vpop.eup %5876  ;;  %5886 = vpow2.f32 %v2334_v18  ;;  %v2336_v31 = vmul.f32 1.442695, %v2305_v5  ;;  %2363 = vadd.xlane.f32.xlu0 %v2362_v4 }
 0x63e   : > { %v2365_v10 = vsel %vm1369_vm4, %v7304_v29, 0.0 }
 0x63f   : > { %v7308_v27 = vpop.eup %5878  ;;  %5888 = vpow2.f32 %v2336_v31  ;;  %2366 = vadd.xlane.f32.xlu1 %v2365_v10 }
 0x640   : > { %v2368_v54 = vsel %vm1369_vm4, %v7308_v27, 0.0 }
 0x641   : > { %v7312_v34 = vpop.eup %5880  ;;  %2369 = vadd.xlane.f32.xlu0 %v2368_v54 }
 0x642   : > { %v2371_v63 = vsel %vm1369_vm4, %v7312_v34, 0.0 }
 0x643   : > { %v7316_v37 = vpop.eup %5882  ;;  %2372 = vadd.xlane.f32.xlu1 %v2371_v63 }
 0x644   : > { %v2374_v50 = vsel %vm1369_vm4, %v7316_v37, 0.0 }
 0x645   : > { %v7320_v55 = vpop.eup %5884  ;;  %2375 = vadd.xlane.f32.xlu0 %v2374_v50 }
 0x646   : > { %v2377_v0 = vsel %vm1369_vm4, %v7320_v55, 0.0 }
 0x647   : > { %v7324_v28 = vpop.eup %5886  ;;  %2378 = vadd.xlane.f32.xlu1 %v2377_v0 }
 0x648   : > { %v2380_v59 = vsel %vm1369_vm4, %v7324_v28, 0.0 }
 0x649   : > { %v7328_v3 = vpop.eup %5888  ;;  %2381 = vadd.xlane.f32.xlu0 %v2380_v59 }
 0x64a   : > { %v2383_v2 = vsel %vm1369_vm4, %v7328_v3, 0.0 }
 0x64b   : > { %2384 = vadd.xlane.f32.xlu1 %v2383_v2 }
 0x6b6   : > { %v2340_v40 = vpop.xlane.xlu0 %2339 }
 0x6b7   : > { %5890 = vrcp.f32 %v2340_v40 }
 0x6b8   : > { %v2343_v1 = vpop.xlane.xlu1 %2342 }
 0x6b9   : > { %5892 = vrcp.f32 %v2343_v1 }
 0x6be   : > { %v2346_v8 = vpop.xlane.xlu0 %2345 }
 0x6bf   : > { %5894 = vrcp.f32 %v2346_v8 }
 0x6c0   : > { %v2349_v20 = vpop.xlane.xlu1 %2348 }
 0x6c1   : > { %v5891_v46 = vpop.eup %5890  ;;  %5896 = vrcp.f32 %v2349_v20 }
 0x6c2   : > { %v2352_v18 = vpop.xlane.xlu0 %2351  ;;  %v2387_v4 = vmul.f32 %v5891_v46, %v7257_v57 }
 0x6c3   : > { %v5893_v5 = vpop.eup %5892  ;;  %5898 = vrcp.f32 %v2352_v18 }
 0x6c4   : > { %v2389_v31 = vmul.f32 %v5893_v5, %v7262_v19  ;;  %v2355_v10 = vpop.xlane.xlu1 %2354 }
 0x6c5   : > { %5900 = vrcp.f32 %v2355_v10 }
 0x6c6   : > { %v2358_v54 = vpop.xlane.xlu0 %2357  ;;  %v2418_v63 = vpack.c.bf16 %v2389_v31, %v2387_v4 }
 0x6c7   : > { %5902 = vrcp.f32 %v2358_v54 }
 0x6c8   : > { %5436 = vmatmul.mubr.msk.bf16.vlgmr.msra.gmra.mrb[88].mxu1 %vm1369_vm4, %v2418_v63  ;;  %v2361_v50 = vpop.xlane.xlu1 %2360 }
 0x6c9   : > { %v5895_v0 = vpop.eup %5894  ;;  %5446 = vmatpush3.bf16.msra.mxu1 %v6762_v56  ;;  %5904 = vrcp.f32 %v2361_v50  ;;  %5447 = vmatprep.mubr.msk.bf16.mxu1 %vm6283_vm3, %v8631_v51 }
 0x6ca   : > { %v2364_v59 = vpop.xlane.xlu0 %2363  ;;  %5457 = vmatprep.subr.bf16.mxu1 %v8631_v51  ;;  %v2391_v19 = vmul.f32 %v5895_v0, %v7269_v9 }
 0x6cb   : > { %v5897_v57 = vpop.eup %5896  ;;  %5906 = vrcp.f32 %v2364_v59 }
 0x6cc   : > { %v2393_v2 = vmul.f32 %v5897_v57, %v7274_v38  ;;  %v2367_v40 = vpop.xlane.xlu1 %2366  ;;  %v5747_v57 = vld [vmem:[%s8554_s3 + $0x40] sm:$0xff]  }
 0x6cd   : > { %v5899_v1 = vpop.eup %5898  ;;  %5908 = vrcp.f32 %v2367_v40 }
 0x6ce   : > { %v2370_v8 = vpop.xlane.xlu0 %2369  ;;  %v2419_v20 = vpack.c.bf16 %v2393_v2, %v2391_v19  ;;  %v2395_v56 = vmul.f32 %v5899_v1, %v7279_v15 }
 0x6cf   : > { %v5901_v46 = vpop.eup %5900  ;;  %5910 = vrcp.f32 %v2370_v8 }
 0x6d0   : > { %v2397_v18 = vmul.f32 %v5901_v46, %v7284_v22  ;;  %5442 = vmatmul.mubr.msk.bf16.vlgmr.msra.gmra.mrb[88].mxu0 %vm1369_vm4, %v2419_v20  ;;  %v2373_v5 = vpop.xlane.xlu1 %2372  ;;  %v5749_v20 = vld [vmem:[%s8554_s3 + $0x48] sm:$0xff]  }
 0x6d1   : > { %v5903_v4 = vpop.eup %5902  ;;  %5452 = vmatpush3.bf16.msra.mxu0 %v6784_v45  ;;  %5912 = vrcp.f32 %v2373_v5  ;;  %5453 = vmatprep.mubr.msk.bf16.mxu0 %vm6283_vm3, %v8631_v51  ;;  %v5753_v5 = vld [vmem:[%s8554_s3 + $0x58] sm:$0xff]  }
 0x6d2   : > { %v2376_v9 = vpop.xlane.xlu0 %2375  ;;  %v2420_v38 = vpack.c.bf16 %v2397_v18, %v2395_v56  ;;  %5463 = vmatprep.subr.bf16.mxu0 %v8631_v51  ;;  %v2399_v15 = vmul.f32 %v5903_v4, %v7289_v23  ;;  %v5751_v18 = vld [vmem:[%s8554_s3 + $0x50] sm:$0xff]   ;;  %v5754_v4 = vld [vmem:[%s8554_s3 + $0x18] sm:$0xff]  }
 0x6d3   : > { %v5905_v31 = vpop.eup %5904  ;;  %5914 = vrcp.f32 %v2376_v9  ;;  %v5755_v9 = vld [vmem:[%s8554_s3 + $0x60] sm:$0xff]  }
 0x6d4   : > { %v2401_v22 = vmul.f32 %v5905_v31, %v7294_v35  ;;  %5448 = vmatmul.mubr.msk.bf16.vlgmr.msra.gmra.mrb[92].mxu1 %vm1369_vm4, %v2420_v38  ;;  %v2379_v10 = vpop.xlane.xlu1 %2378  ;;  %v5756_v38 = vld [vmem:[%s8554_s3 + $0x20] sm:$0xff]   ;;  %v5757_v31 = vld [vmem:[%s8554_s3 + $0x68] sm:$0xff]  }
 0x6d5   : > { %v5907_v54 = vpop.eup %5906  ;;  %5458 = vmatpush3.bf16.msra.mxu1 %v6804_v49  ;;  %5916 = vrcp.f32 %v2379_v10  ;;  %5459 = vmatprep.mubr.msk.bf16.mxu1 %vm6283_vm3, %v8631_v51  ;;  %v5760_v10 = vld [vmem:[%s8554_s3 + $0x30] sm:$0xff]  }
 0x6d6   : > { %v2382_v45 = vpop.xlane.xlu0 %2381  ;;  %v2421_v63 = vpack.c.bf16 %v2401_v22, %v2399_v15  ;;  %5469 = vmatprep.subr.bf16.mxu1 %v8631_v51  ;;  %v2403_v23 = vmul.f32 %v5907_v54, %v7299_v48  ;;  %v5758_v15 = vld [vmem:[%s8554_s3 + $0x28] sm:$0xff]   ;;  %v5759_v22 = vld [vmem:[%s8554_s3 + $0x70] sm:$0xff]   ;;  %v5761_v54 = vld [vmem:[%s8554_s3 + $0x78] sm:$0xff]  }
 0x6d7   : > { %v5909_v50 = vpop.eup %5908  ;;  %5918 = vrcp.f32 %v2382_v45  ;;  %v5762_v45 = vld [vmem:[%s8554_s3 + $0x38] sm:$0xff]  }
 0x6d8   : > { %v2405_v35 = vmul.f32 %v5909_v50, %v7304_v29  ;;  %5454 = vmatmul.mubr.msk.bf16.vlgmr.msra.gmra.mrb[92].mxu0 %vm1369_vm4, %v2421_v63  ;;  %v2385_v0 = vpop.xlane.xlu1 %2384 }
 0x6d9   : > { %v5911_v59 = vpop.eup %5910  ;;  %5464 = vmatpush3.bf16.msra.mxu0 %v6826_v11  ;;  %5920 = vrcp.f32 %v2385_v0  ;;  %5465 = vmatprep.mubr.msk.bf16.mxu0 %vm6283_vm3, %v8631_v51 }
 0x6da   : > { %v2422_v49 = vpack.c.bf16 %v2405_v35, %v2403_v23  ;;  %5475 = vmatprep.subr.bf16.mxu0 %v8631_v51  ;;  %v2407_v29 = vmul.f32 %v5911_v59, %v7308_v27 }
 0x6db   : > { %v5913_v48 = vpop.eup %5912 }
 0x6dc   : > { %v2409_v19 = vmul.f32 %v5913_v48, %v7312_v34  ;;  %5460 = vmatmul.mubr.msk.bf16.vlgmr.msra.gmra.mrb[96].mxu1 %vm1369_vm4, %v2422_v49 }
 0x6dd   : > { %v5915_v2 = vpop.eup %5914  ;;  %5470 = vmatpush3.bf16.msra.mxu1 %v6848_v6  ;;  %5471 = vmatprep.mubr.msk.bf16.mxu1 %vm6283_vm3, %v8631_v51  ;;  %v5748_v6 = vld [vmem:[%s8554_s3] sm:$0xff]  }
 0x6de   : > { %v2423_v11 = vpack.c.bf16 %v2409_v19, %v2407_v29  ;;  %5117 = vmatprep.subr.bf16.mxu1 %v5747_v57  ;;  %v2411_v1 = vmul.f32 %v5915_v2, %v7316_v37 }
 0x6df   : > { %v5917_v40 = vpop.eup %5916 }
 0x6e0   : > { %v2413_v8 = vmul.f32 %v5917_v40, %v7320_v55  ;;  %5466 = vmatmul.mubr.msk.bf16.vlgmr.msra.gmra.mrb[96].mxu0 %vm1369_vm4, %v2423_v11 }
 0x6e1   : > { %v5919_v27 = vpop.eup %5918  ;;  %5476 = vmatpush3.bf16.msra.mxu0 %v6872_v17  ;;  %5477 = vmatprep.mubr.msk.bf16.mxu0 %vm6283_vm3, %v8631_v51  ;;  %v5750_v17 = vld [vmem:[%s8554_s3 + $0x8] sm:$0xff]  }
 0x6e2   : > { %v2424_v34 = vpack.c.bf16 %v2413_v8, %v2411_v1  ;;  %v2415_v55 = vmul.f32 %v5919_v27, %v7324_v28  ;;  %v5752_v28 = vld [vmem:[%s8554_s3 + $0x10] sm:$0xff]  }
 0x6e3   : > { %v5921_v37 = vpop.eup %5920 }
 0x6e4   : > { %v2417_v46 = vmul.f32 %v5921_v37, %v7328_v3  ;;  %5472 = vmatmul.mubr.msk.bf16.vlgmr.msra.gmra.mrb[100].mxu1 %vm1369_vm4, %v2424_v34  ;;  %v8640_v3 = vmov 0  }
 0x6e5   : > { %5118 = vmatpush3.bf16.msra.mxu1 %v5748_v6 }
 0x6e6   : > { %v2425_v56 = vpack.c.bf16 %v2417_v46, %v2415_v55  ;;  %5119 = vmatprep.subr.bf16.mxu1 %v5749_v20 }
 0x6e8   : > { %5478 = vmatmul.mubr.msk.bf16.vlgmr.msra.gmra.mrb[100].mxu0 %vm1369_vm4, %v2425_v56 }
 0x6e9   : > { %5120 = vmatpush3.bf16.msra.mxu1 %v5750_v17  ;;  %3416 = vmatprep.mubr.bf16.mxu0 %v8640_v3 }
 0x6ea   : > { %5121 = vmatprep.subr.bf16.mxu1 %v5751_v18 }
 0x6ed   : > { %5122 = vmatpush3.bf16.msra.mxu1 %v5752_v28 }
 0x6ee   : > { %5123 = vmatprep.subr.bf16.mxu1 %v5753_v5 }
 0x6f1   : > { %5124 = vmatpush3.bf16.msra.mxu1 %v5754_v4 }
 0x6f2   : > { %5125 = vmatprep.subr.bf16.mxu1 %v5755_v9 }
 0x6f5   : > { %5126 = vmatpush3.bf16.msra.mxu1 %v5756_v38 }
 0x6f6   : > { %5127 = vmatprep.subr.bf16.mxu1 %v5757_v31 }
 0x6f9   : > { %5128 = vmatpush3.bf16.msra.mxu1 %v5758_v15 }
 0x6fa   : > { %5129 = vmatprep.subr.bf16.mxu1 %v5759_v22 }
 0x6fd   : > { %5130 = vmatpush3.bf16.msra.mxu1 %v5760_v10 }
 0x6fe   : > { %5131 = vmatprep.subr.bf16.mxu1 %v5761_v54 }
 0x701   : > { %5132 = vmatpush3.bf16.msra.mxu1 %v5762_v45 }
 0x79b   : > { %v2463_v63 = vpop.f32.mrb[88].mxu1 }
 0x79c   : > { %v5437_v50 = vpop.f32.mrb[89].mxu1 }
 0x79d   : > { %v2466_v23 = vpop.f32.mrb[90].mxu1 }
 0x79e   : > { %v2779_v35 = vpack.c.bf16 %v2466_v23, %v2463_v63  ;;  %v5438_v0 = vpop.f32.mrb[91].mxu1  ;;  %v8642_v63 = vld [vmem:[#allocation20_spill] sm:$0xff] }
 0x79f   : > { %v8643_v0 = vld [vmem:[#allocation19_spill] sm:$0xff] }
 0x7a0   : > { %2955 = vmatprep.mubr.bf16.mxu1 %v2779_v35 }
 0x7a1   : > { %2956 = vmatmul.mubr.bf16.vlgmr.msra.gmra.mrb[104].mxu1 %v2778_v44 }
 0x7a3   : > { %v2507_v59 = vpop.f32.mrb[88].mxu0 }
 0x7a4   : > { %v5443_v49 = vpop.f32.mrb[89].mxu0 }
 0x7a5   : > { %v2510_v57 = vpop.f32.mrb[90].mxu0 }
 0x7a6   : > { %v2781_v48 = vpack.c.bf16 %v2510_v57, %v2507_v59  ;;  %v5444_v29 = vpop.f32.mrb[91].mxu0 }
 0x7a7   : > { %v2551_v19 = vpop.f32.mrb[92].mxu1 }
 0x7a8   : > { %v5449_v2 = vpop.f32.mrb[93].mxu1  ;;  %2963 = vmatprep.mubr.bf16.mxu1 %v2781_v48 }
 0x7a9   : > { %v2554_v11 = vpop.f32.mrb[94].mxu1  ;;  %2964 = vmatmul.mubr.bf16.gmra.mrb[108].mxu1 %v2780_v24 }
 0x7aa   : > { %v2783_v40 = vpack.c.bf16 %v2554_v11, %v2551_v19  ;;  %v5450_v1 = vpop.f32.mrb[95].mxu1 }
 0x7ab   : > { %v2595_v8 = vpop.f32.mrb[92].mxu0  ;;  %v8644_v1 = vld [vmem:[#allocation21_spill] sm:$0xff] }
 0x7ac   : > { %v5455_v27 = vpop.f32.mrb[93].mxu0  ;;  %2971 = vmatprep.mubr.bf16.mxu1 %v2783_v40 }
 0x7ad   : > { %v2598_v7 = vpop.f32.mrb[94].mxu0 }
 0x7ae   : > { %v2785_v41 = vpack.c.bf16 %v2598_v7, %v2595_v8  ;;  %v5456_v44 = vpop.f32.mrb[95].mxu0 }
 0x7af   : > { %v2639_v6 = vpop.f32.mrb[96].mxu1 }
 0x7b0   : > { %v5461_v34 = vpop.f32.mrb[97].mxu1 }
 0x7b1   : > { %v2642_v20 = vpop.f32.mrb[98].mxu1  ;;  %2972 = vmatmul.mubr.bf16.gmra.mrb[112].mxu1 %v2782_v30 }
 0x7b2   : > { %v2787_v37 = vpack.c.bf16 %v2642_v20, %v2639_v6  ;;  %v5462_v55 = vpop.f32.mrb[99].mxu1  ;;  %2979 = vmatprep.mubr.bf16.mxu1 %v2785_v41  ;;  %v8645_v41 = vld [vmem:[#allocation22_spill] sm:$0xff] }
 0x7b3   : > { %v2683_v52 = vpop.f32.mrb[96].mxu0 }
 0x7b4   : > { %v5467_v13 = vpop.f32.mrb[97].mxu0 }
 0x7b5   : > { %v2686_v24 = vpop.f32.mrb[98].mxu0 }
 0x7b6   : > { %v2789_v46 = vpack.c.bf16 %v2686_v24, %v2683_v52  ;;  %v5468_v17 = vpop.f32.mrb[99].mxu0 }
 0x7b7   : > { %v2727_v56 = vpop.f32.mrb[100].mxu1 }
 0x7b8   : > { %v5473_v18 = vpop.f32.mrb[101].mxu1 }
 0x7b9   : > { %v2730_v28 = vpop.f32.mrb[102].mxu1  ;;  %2980 = vmatmul.mubr.bf16.gmra.mrb[116].mxu1 %v2784_v14 }
 0x7ba   : > { %v2791_v5 = vpack.c.bf16 %v2730_v28, %v2727_v56  ;;  %v5474_v4 = vpop.f32.mrb[103].mxu1  ;;  %2987 = vmatprep.mubr.bf16.mxu1 %v2787_v37  ;;  %v8647_v28 = vld [vmem:[#allocation24_spill] sm:$0xff] }
 0x7bb   : > { %v2771_v33 = vpop.f32.mrb[100].mxu0 }
 0x7bc   : > { %v5479_v39 = vpop.f32.mrb[101].mxu0 }
 0x7bd   : > { %v2774_v30 = vpop.f32.mrb[102].mxu0 }
 0x7be   : > { %v2793_v9 = vpack.c.bf16 %v2774_v30, %v2771_v33  ;;  %v5480_v38 = vpop.f32.mrb[103].mxu0 }
 0x7c1   : > { %2988 = vmatmul.mubr.bf16.gmra.mrb[120].mxu1 %v2786_v26 }
 0x7c2   : > { %2995 = vmatprep.mubr.bf16.mxu1 %v2789_v46  ;;  %v8646_v46 = vld [vmem:[#allocation23_spill] sm:$0xff] }
 0x7c9   : > { %2996 = vmatmul.mubr.bf16.gmra.mrb[124].mxu1 %v2788_v12 }
 0x7ca   : > { %3003 = vmatprep.mubr.bf16.mxu1 %v2791_v5 }
 0x7d1   : > { %3004 = vmatmul.mubr.bf16.gmra.mrb[128].mxu1 %v2790_v60 }
 0x7d2   : > { %3011 = vmatprep.mubr.bf16.mxu1 %v2793_v9 }
 0x7d9   : > { %3012 = vmatmul.mubr.bf16.gmra.mrb[132].mxu1 %v2792_v61 }
 0x7da   : > { %5501 = vmatprep.mubr.msk.f32.mxu1 %vm6283_vm3, %v8631_v51 }
 0x874   : > { %v5133_v58 = vpop.f32.mrb[104].mxu1 }
 0x875   : > { %v5134_v14 = vpop.f32.mrb[105].mxu1 }
 0x876   : > { %v5135_v36 = vadd.f32 %v5134_v14, %v5133_v58  ;;  %v5136_v62 = vpop.f32.mrb[106].mxu1 }
 0x877   : > { %v5137_v26 = vpop.f32.mrb[107].mxu1 }
 0x878   : > { %v2958_v16 = vadd.f32 %v5135_v36, %v7453_v25  ;;  %v5138_v21 = vadd.f32 %v5137_v26, %v5136_v62  ;;  %v8648_v36 = vld [vmem:[#allocation25_spill] sm:$0xff] }
 0x87a   : > { %v2961_v12 = vadd.f32 %v5138_v21, %v7453_v25  ;;  %v7458_v47 = vadd.f32 %v2958_v16, %v6580_v42  ;;  %v8649_v21 = vld [vmem:[#allocation26_spill] sm:$0xff] }
 0x87c   : > { %v5139_v32 = vpop.f32.mrb[108].mxu1  ;;  %v3036_v60 = vsel %vm766_vm2, %v7458_v47, 0.0  ;;  %v7463_v43 = vadd.f32 %v2961_v12, %v8641_v53 }
 0x87d   : > { %v5140_v61 = vpop.f32.mrb[109].mxu1  ;;  %3037 = vadd.xlane.f32.xlu0 %v3036_v60 }
 0x87e   : > { %v5141_v31 = vadd.f32 %v5140_v61, %v5139_v32  ;;  %v5142_v15 = vpop.f32.mrb[110].mxu1  ;;  %v3039_v22 = vsel %vm766_vm2, %v7463_v43, 0.0 }
 0x87f   : > { %v5143_v10 = vpop.f32.mrb[111].mxu1  ;;  %3040 = vadd.xlane.f32.xlu1 %v3039_v22 }
 0x880   : > { %v2966_v54 = vadd.f32 %v5141_v31, %v7453_v25  ;;  %v5144_v42 = vadd.f32 %v5143_v10, %v5142_v15 }
 0x882   : > { %v2969_v45 = vadd.f32 %v5144_v42, %v7453_v25  ;;  %v7470_v50 = vadd.f32 %v2966_v54, %v8642_v63  ;;  %v8650_v54 = vld [vmem:[#allocation27_spill] sm:$0xff] }
 0x884   : > { %v5145_v23 = vpop.f32.mrb[112].mxu1  ;;  %v3042_v35 = vsel %vm766_vm2, %v7470_v50, 0.0  ;;  %v7475_v59 = vadd.f32 %v2969_v45, %v8643_v0 }
 0x885   : > { %v5146_v49 = vpop.f32.mrb[113].mxu1  ;;  %3043 = vadd.xlane.f32.xlu0 %v3042_v35 }
 0x886   : > { %v5147_v57 = vadd.f32 %v5146_v49, %v5145_v23  ;;  %v5148_v48 = vpop.f32.mrb[114].mxu1  ;;  %v3045_v29 = vsel %vm766_vm2, %v7475_v59, 0.0  ;;  %v8651_v23 = vld [vmem:[#allocation28_spill] sm:$0xff] }
 0x887   : > { %v5149_v19 = vpop.f32.mrb[115].mxu1  ;;  %3046 = vadd.xlane.f32.xlu1 %v3045_v29 }
 0x888   : > { %v2974_v2 = vadd.f32 %v5147_v57, %v7453_v25  ;;  %v5150_v11 = vadd.f32 %v5149_v19, %v5148_v48 }
 0x88a   : > { %v2977_v40 = vadd.f32 %v5150_v11, %v7453_v25  ;;  %v7482_v8 = vadd.f32 %v2974_v2, %v8644_v1 }
 0x88c   : > { %v5151_v27 = vpop.f32.mrb[116].mxu1  ;;  %v3048_v7 = vsel %vm766_vm2, %v7482_v8, 0.0  ;;  %v7487_v44 = vadd.f32 %v2977_v40, %v8645_v41  ;;  %v8652_v40 = vld [vmem:[#allocation29_spill] sm:$0xff]  ;;  %v8653_v41 = vld [vmem:[#allocation30_spill] sm:$0xff] }
 0x88d   : > { %v5152_v6 = vpop.f32.mrb[117].mxu1  ;;  %3049 = vadd.xlane.f32.xlu0 %v3048_v7 }
 0x88e   : > { %v5153_v34 = vadd.f32 %v5152_v6, %v5151_v27  ;;  %v5154_v20 = vpop.f32.mrb[118].mxu1  ;;  %v3051_v37 = vsel %vm766_vm2, %v7487_v44, 0.0 }
 0x88f   : > { %v5155_v55 = vpop.f32.mrb[119].mxu1  ;;  %3052 = vadd.xlane.f32.xlu1 %v3051_v37 }
 0x890   : > { %v2982_v52 = vadd.f32 %v5153_v34, %v7453_v25  ;;  %v5156_v13 = vadd.f32 %v5155_v55, %v5154_v20 }
 0x892   : > { %v2985_v24 = vadd.f32 %v5156_v13, %v7453_v25  ;;  %v7494_v17 = vadd.f32 %v2982_v52, %v8646_v46 }
 0x894   : > { %v5157_v56 = vpop.f32.mrb[120].mxu1  ;;  %v3054_v18 = vsel %vm766_vm2, %v7494_v17, 0.0  ;;  %v7499_v5 = vadd.f32 %v2985_v24, %v8647_v28 }
 0x895   : > { %v5158_v4 = vpop.f32.mrb[121].mxu1  ;;  %3055 = vadd.xlane.f32.xlu0 %v3054_v18 }
 0x896   : > { %v5159_v33 = vadd.f32 %v5158_v4, %v5157_v56  ;;  %v5160_v39 = vpop.f32.mrb[122].mxu1  ;;  %v3057_v30 = vsel %vm766_vm2, %v7499_v5, 0.0  ;;  %v8654_v56 = vld [vmem:[#allocation31_spill] sm:$0xff]  ;;  %v8655_v4 = vld [vmem:[#allocation32_spill] sm:$0xff] }
 0x897   : > { %v5161_v9 = vpop.f32.mrb[123].mxu1  ;;  %3058 = vadd.xlane.f32.xlu1 %v3057_v30 }
 0x898   : > { %v2990_v38 = vadd.f32 %v5159_v33, %v7453_v25  ;;  %v5162_v58 = vadd.f32 %v5161_v9, %v5160_v39 }
 0x89a   : > { %v2993_v14 = vadd.f32 %v5162_v58, %v7453_v25  ;;  %v7506_v62 = vadd.f32 %v2990_v38, %v8648_v36 }
 0x89c   : > { %v5163_v26 = vpop.f32.mrb[124].mxu1  ;;  %v3060_v16 = vsel %vm766_vm2, %v7506_v62, 0.0  ;;  %v7511_v12 = vadd.f32 %v2993_v14, %v8649_v21 }
 0x89d   : > { %v5164_v32 = vpop.f32.mrb[125].mxu1  ;;  %3061 = vadd.xlane.f32.xlu0 %v3060_v16 }
 0x89e   : > { %v5165_v60 = vadd.f32 %v5164_v32, %v5163_v26  ;;  %v5166_v53 = vpop.f32.mrb[126].mxu1  ;;  %v3063_v61 = vsel %vm766_vm2, %v7511_v12, 0.0 }
 0x89f   : > { %v5167_v31 = vpop.f32.mrb[127].mxu1  ;;  %3064 = vadd.xlane.f32.xlu1 %v3063_v61 }
 0x8a0   : > { %v2998_v15 = vadd.f32 %v5165_v60, %v7453_v25  ;;  %v5168_v22 = vadd.f32 %v5167_v31, %v5166_v53 }
 0x8a2   : > { %v3001_v10 = vadd.f32 %v5168_v22, %v7453_v25  ;;  %v7518_v42 = vadd.f32 %v2998_v15, %v8650_v54 }
 0x8a4   : > { %v5169_v45 = vpop.f32.mrb[128].mxu1  ;;  %v3066_v63 = vsel %vm766_vm2, %v7518_v42, 0.0  ;;  %v7523_v35 = vadd.f32 %v3001_v10, %v8651_v23 }
 0x8a5   : > { %v5170_v0 = vpop.f32.mrb[129].mxu1  ;;  %3067 = vadd.xlane.f32.xlu0 %v3066_v63 }
 0x8a6   : > { %v5171_v49 = vadd.f32 %v5170_v0, %v5169_v45  ;;  %v5172_v57 = vpop.f32.mrb[130].mxu1  ;;  %v3069_v48 = vsel %vm766_vm2, %v7523_v35, 0.0 }
 0x8a7   : > { %v5173_v29 = vpop.f32.mrb[131].mxu1  ;;  %3070 = vadd.xlane.f32.xlu1 %v3069_v48 }
 0x8a8   : > { %v3006_v19 = vadd.f32 %v5171_v49, %v7453_v25  ;;  %v5174_v2 = vadd.f32 %v5173_v29, %v5172_v57 }
 0x8aa   : > { %v3009_v11 = vadd.f32 %v5174_v2, %v7453_v25  ;;  %v7530_v1 = vadd.f32 %v3006_v19, %v8652_v40  ;;  %v5765_v2 = vld [vmem:[#allocation7 + $0x4] ss:$8 sps:$4 sm:$0xff]   ;;  %v5763_v40 = vld [vmem:[#allocation7] ss:$8 sps:$4 sm:$0xff]  }
 0x8ab   : > { %3384 = vmatprep.subr.bf16.mxu0 %v5765_v2 }
 0x8ac   : > { %v5175_v27 = vpop.f32.mrb[132].mxu1  ;;  %v3072_v7 = vsel %vm766_vm2, %v7530_v1, 0.0  ;;  %v7535_v6 = vadd.f32 %v3009_v11, %v8653_v41  ;;  %3385 = vmatpush1.bf16.msra.mxu0 %v5763_v40  ;;  %v5768_v41 = vld [vmem:[#allocation7 + $0x14] ss:$8 sps:$4 sm:$0xff]  }
 0x8ad   : > { %v5176_v34 = vpop.f32.mrb[133].mxu1  ;;  %3073 = vadd.xlane.f32.xlu0 %v3072_v7  ;;  %3386 = vmatprep.subr.bf16.mxu0 %v5768_v41 }
 0x8ae   : > { %v5177_v20 = vadd.f32 %v5176_v34, %v5175_v27  ;;  %v5178_v37 = vpop.f32.mrb[134].mxu1  ;;  %v3075_v55 = vsel %vm766_vm2, %v7535_v6, 0.0 }
 0x8af   : > { %v5179_v52 = vpop.f32.mrb[135].mxu1  ;;  %3076 = vadd.xlane.f32.xlu1 %v3075_v55 }
 0x8b0   : > { %v3014_v13 = vadd.f32 %v5177_v20, %v7453_v25  ;;  %v5180_v24 = vadd.f32 %v5179_v52, %v5178_v37  ;;  %v5766_v37 = vld [vmem:[#allocation7 + $0x10] ss:$8 sps:$4 sm:$0xff]  }
 0x8b1   : > { %3387 = vmatpush1.bf16.msra.mxu0 %v5766_v37 }
 0x8b2   : > { %v3017_v46 = vadd.f32 %v5180_v24, %v7453_v25  ;;  %v7542_v18 = vadd.f32 %v3014_v13, %v8654_v56  ;;  %v5771_v13 = vld [vmem:[#allocation7 + $0x24] ss:$8 sps:$4 sm:$0xff]   ;;  %v5769_v56 = vld [vmem:[#allocation7 + $0x20] ss:$8 sps:$4 sm:$0xff]  }
 0x8b3   : > { %3388 = vmatprep.subr.bf16.mxu0 %v5771_v13 }
 0x8b4   : > { %v3078_v28 = vsel %vm766_vm2, %v7542_v18, 0.0  ;;  %v7547_v33 = vadd.f32 %v3017_v46, %v8655_v4 }
 0x8b5   : > { %3079 = vadd.xlane.f32.xlu0 %v3078_v28  ;;  %3389 = vmatpush1.bf16.msra.mxu0 %v5769_v56  ;;  %v7647_v56 = vld [vmem:[#allocation10 + $0x3] ss:$0 sm:$0xff] }
 0x8b6   : > { %v3081_v39 = vsel %vm766_vm2, %v7547_v33, 0.0 }
 0x8b7   : > { %3082 = vadd.xlane.f32.xlu1 %v3081_v39  ;;  %v5774_v39 = vld [vmem:[#allocation7 + $0x34] ss:$8 sps:$4 sm:$0xff]  }
 0x8b8   : > { %3390 = vmatprep.subr.bf16.mxu0 %v5774_v39 }
 0x90a   : > { %v3038_v30 = vpop.xlane.xlu0 %3037 }
 0x90b   : > { %v3085_v9 = vmul.f32 0.0125, %v3038_v30 }
 0x90c   : > { %v3041_v38 = vpop.xlane.xlu1 %3040 }
 0x90d   : > { %v7552_v58 = vsub.f32 %v7458_v47, %v3085_v9  ;;  %v3086_v25 = vmul.f32 0.0125, %v3041_v38  ;;  %v5772_v38 = vld [vmem:[#allocation7 + $0x30] ss:$8 sps:$4 sm:$0xff]  }
 0x90e   : > { %3391 = vmatpush1.bf16.msra.mxu0 %v5772_v38 }
 0x90f   : > { %v7555_v14 = vsub.f32 %v7463_v43, %v3086_v25  ;;  %v3117_v36 = vmul.f32 %v7552_v58, %v7552_v58 }
 0x911   : > { %v3133_v26 = vsel %vm766_vm2, %v3117_v36, 0.0  ;;  %v3118_v16 = vmul.f32 %v7555_v14, %v7555_v14 }
 0x912   : > { %3134 = vadd.xlane.f32.xlu0 %v3133_v26  ;;  %v3044_v21 = vpop.xlane.xlu0 %3043  ;;  %v5777_v26 = vld [vmem:[#allocation7 + $0x44] ss:$8 sps:$4 sm:$0xff]  }
 0x913   : > { %v3087_v32 = vmul.f32 0.0125, %v3044_v21  ;;  %v3136_v60 = vsel %vm766_vm2, %v3118_v16, 0.0  ;;  %3392 = vmatprep.subr.bf16.mxu0 %v5777_v26  ;;  %v7652_v26 = vld [vmem:[#allocation10 + $0x4] ss:$0 sm:$0xff] }
 0x914   : > { %3137 = vadd.xlane.f32.xlu1 %v3136_v60  ;;  %v3047_v47 = vpop.xlane.xlu1 %3046 }
 0x915   : > { %v7564_v53 = vsub.f32 %v7470_v50, %v3087_v32  ;;  %v3088_v43 = vmul.f32 0.0125, %v3047_v47  ;;  %v5775_v32 = vld [vmem:[#allocation7 + $0x40] ss:$8 sps:$4 sm:$0xff]  }
 0x916   : > { %3393 = vmatpush1.bf16.msra.mxu0 %v5775_v32 }
 0x917   : > { %v7567_v61 = vsub.f32 %v7475_v59, %v3088_v43  ;;  %v3119_v31 = vmul.f32 %v7564_v53, %v7564_v53 }
 0x919   : > { %v3139_v15 = vsel %vm766_vm2, %v3119_v31, 0.0  ;;  %v3120_v22 = vmul.f32 %v7567_v61, %v7567_v61 }
 0x91a   : > { %3140 = vadd.xlane.f32.xlu0 %v3139_v15  ;;  %v3050_v10 = vpop.xlane.xlu0 %3049 }
 0x91b   : > { %v3089_v54 = vmul.f32 0.0125, %v3050_v10  ;;  %v3142_v45 = vsel %vm766_vm2, %v3120_v22, 0.0 }
 0x91c   : > { %3143 = vadd.xlane.f32.xlu1 %v3142_v45  ;;  %v3053_v50 = vpop.xlane.xlu1 %3052 }
 0x91d   : > { %v7576_v63 = vsub.f32 %v7482_v8, %v3089_v54  ;;  %v3090_v59 = vmul.f32 0.0125, %v3053_v50 }
 0x91f   : > { %v7579_v23 = vsub.f32 %v7487_v44, %v3090_v59  ;;  %v3121_v0 = vmul.f32 %v7576_v63, %v7576_v63 }
 0x921   : > { %v3145_v49 = vsel %vm766_vm2, %v3121_v0, 0.0  ;;  %v3122_v57 = vmul.f32 %v7579_v23, %v7579_v23 }
 0x922   : > { %3146 = vadd.xlane.f32.xlu0 %v3145_v49  ;;  %v3056_v48 = vpop.xlane.xlu0 %3055 }
 0x923   : > { %v3091_v29 = vmul.f32 0.0125, %v3056_v48  ;;  %v3148_v19 = vsel %vm766_vm2, %v3122_v57, 0.0 }
 0x924   : > { %3149 = vadd.xlane.f32.xlu1 %v3148_v19  ;;  %v3059_v8 = vpop.xlane.xlu1 %3058 }
 0x925   : > { %v7588_v11 = vsub.f32 %v7494_v17, %v3091_v29  ;;  %v3092_v44 = vmul.f32 0.0125, %v3059_v8 }
 0x927   : > { %v7591_v27 = vsub.f32 %v7499_v5, %v3092_v44  ;;  %v3123_v7 = vmul.f32 %v7588_v11, %v7588_v11 }
 0x929   : > { %v3151_v34 = vsel %vm766_vm2, %v3123_v7, 0.0  ;;  %v3124_v20 = vmul.f32 %v7591_v27, %v7591_v27 }
 0x92a   : > { %3152 = vadd.xlane.f32.xlu0 %v3151_v34  ;;  %v3062_v17 = vpop.xlane.xlu0 %3061 }
 0x92b   : > { %v3093_v55 = vmul.f32 0.0125, %v3062_v17  ;;  %v3154_v52 = vsel %vm766_vm2, %v3124_v20, 0.0 }
 0x92c   : > { %3155 = vadd.xlane.f32.xlu1 %v3154_v52  ;;  %v3065_v5 = vpop.xlane.xlu1 %3064 }
 0x92d   : > { %v7600_v24 = vsub.f32 %v7506_v62, %v3093_v55  ;;  %v3094_v46 = vmul.f32 0.0125, %v3065_v5 }
 0x92f   : > { %v7603_v28 = vsub.f32 %v7511_v12, %v3094_v46  ;;  %v3125_v4 = vmul.f32 %v7600_v24, %v7600_v24 }
 0x931   : > { %v3157_v30 = vsel %vm766_vm2, %v3125_v4, 0.0  ;;  %v3126_v9 = vmul.f32 %v7603_v28, %v7603_v28 }
 0x932   : > { %3158 = vadd.xlane.f32.xlu0 %v3157_v30  ;;  %v3068_v62 = vpop.xlane.xlu0 %3067 }
 0x933   : > { %v3095_v25 = vmul.f32 0.0125, %v3068_v62  ;;  %v3160_v36 = vsel %vm766_vm2, %v3126_v9, 0.0 }
 0x934   : > { %3161 = vadd.xlane.f32.xlu1 %v3160_v36  ;;  %v3071_v12 = vpop.xlane.xlu1 %3070 }
 0x935   : > { %v7612_v16 = vsub.f32 %v7518_v42, %v3095_v25  ;;  %v3096_v21 = vmul.f32 0.0125, %v3071_v12 }
 0x937   : > { %v7615_v60 = vsub.f32 %v7523_v35, %v3096_v21  ;;  %v3127_v47 = vmul.f32 %v7612_v16, %v7612_v16 }
 0x939   : > { %v3163_v43 = vsel %vm766_vm2, %v3127_v47, 0.0  ;;  %v3128_v31 = vmul.f32 %v7615_v60, %v7615_v60 }
 0x93a   : > { %3164 = vadd.xlane.f32.xlu0 %v3163_v43  ;;  %v3074_v15 = vpop.xlane.xlu0 %3073 }
 0x93b   : > { %v3097_v22 = vmul.f32 0.0125, %v3074_v15  ;;  %v3166_v42 = vsel %vm766_vm2, %v3128_v31, 0.0 }
 0x93c   : > { %3167 = vadd.xlane.f32.xlu1 %v3166_v42  ;;  %v3077_v10 = vpop.xlane.xlu1 %3076 }
 0x93d   : > { %v7624_v54 = vsub.f32 %v7530_v1, %v3097_v22  ;;  %v3098_v35 = vmul.f32 0.0125, %v3077_v10 }
 0x93f   : > { %v7627_v45 = vsub.f32 %v7535_v6, %v3098_v35  ;;  %v3129_v50 = vmul.f32 %v7624_v54, %v7624_v54 }
 0x941   : > { %v3169_v59 = vsel %vm766_vm2, %v3129_v50, 0.0  ;;  %v3130_v0 = vmul.f32 %v7627_v45, %v7627_v45 }
 0x942   : > { %3170 = vadd.xlane.f32.xlu0 %v3169_v59  ;;  %v3080_v49 = vpop.xlane.xlu0 %3079 }
 0x943   : > { %v3099_v57 = vmul.f32 0.0125, %v3080_v49  ;;  %v3172_v48 = vsel %vm766_vm2, %v3130_v0, 0.0 }
 0x944   : > { %3173 = vadd.xlane.f32.xlu1 %v3172_v48  ;;  %v3083_v1 = vpop.xlane.xlu1 %3082 }
 0x945   : > { %v7636_v29 = vsub.f32 %v7542_v18, %v3099_v57  ;;  %v3100_v6 = vmul.f32 0.0125, %v3083_v1 }
 0x947   : > { %v7639_v19 = vsub.f32 %v7547_v33, %v3100_v6  ;;  %v3131_v8 = vmul.f32 %v7636_v29, %v7636_v29 }
 0x949   : > { %v3175_v2 = vsel %vm766_vm2, %v3131_v8, 0.0  ;;  %v3132_v44 = vmul.f32 %v7639_v19, %v7639_v19 }
 0x94a   : > { %3176 = vadd.xlane.f32.xlu0 %v3175_v2 }
 0x94b   : > { %v3178_v40 = vsel %vm766_vm2, %v3132_v44, 0.0 }
 0x94c   : > { %3179 = vadd.xlane.f32.xlu1 %v3178_v40 }
 0x99f   : > { %v3135_v7 = vpop.xlane.xlu0 %3134 }
 0x9a0   : > { %v3181_v41 = vmul.f32 0.0125, %v3135_v7 }
 0x9a1   : > { %v3138_v18 = vpop.xlane.xlu1 %3137 }
 0x9a2   : > { %v3197_v34 = vadd.f32 1e-05, %v3181_v41  ;;  %v3182_v20 = vmul.f32 0.0125, %v3138_v18 }
 0x9a4   : > { %5922 = vrsqrt.f32 %v3197_v34  ;;  %v3198_v33 = vadd.f32 1e-05, %v3182_v20 }
 0x9a6   : > { %5924 = vrsqrt.f32 %v3198_v33 }
 0x9a7   : > { %v3141_v37 = vpop.xlane.xlu0 %3140 }
 0x9a8   : > { %v3183_v17 = vmul.f32 0.0125, %v3141_v37 }
 0x9a9   : > { %v3144_v55 = vpop.xlane.xlu1 %3143 }
 0x9aa   : > { %v3199_v52 = vadd.f32 1e-05, %v3183_v17  ;;  %v3184_v5 = vmul.f32 0.0125, %v3144_v55 }
 0x9ac   : > { %5926 = vrsqrt.f32 %v3199_v52  ;;  %v3200_v13 = vadd.f32 1e-05, %v3184_v5 }
 0x9ae   : > { %v5923_v46 = vpop.eup %5922  ;;  %5928 = vrsqrt.f32 %v3200_v13 }
 0x9af   : > { %v3229_v4 = vmul.f32 %v5923_v46, %v7552_v58  ;;  %v3147_v39 = vpop.xlane.xlu0 %3146 }
 0x9b0   : > { %v5925_v30 = vpop.eup %5924  ;;  %v3185_v9 = vmul.f32 0.0125, %v3147_v39 }
 0x9b1   : > { %v3246_v38 = vmul.f32 %v7647_v56, %v3229_v4  ;;  %v3230_v62 = vmul.f32 %v5925_v30, %v7555_v14  ;;  %v3150_v25 = vpop.xlane.xlu1 %3149 }
 0x9b2   : > { %v3201_v36 = vadd.f32 1e-05, %v3185_v9  ;;  %v3186_v12 = vmul.f32 0.0125, %v3150_v25 }
 0x9b3   : > { %v3247_v21 = vmul.f32 %v7647_v56, %v3230_v62  ;;  %v7656_v47 = vadd.f32 %v7652_v26, %v3246_v38 }
 0x9b4   : > { %5930 = vrsqrt.f32 %v3201_v36  ;;  %v3202_v32 = vadd.f32 1e-05, %v3186_v12 }
 0x9b5   : > { %v7659_v58 = vadd.f32 %v7652_v26, %v3247_v21 }
 0x9b6   : > { %v5927_v43 = vpop.eup %5926  ;;  %5932 = vrsqrt.f32 %v3202_v32 }
 0x9b7   : > { %v3231_v31 = vmul.f32 %v5927_v43, %v7564_v53  ;;  %v3153_v14 = vpop.xlane.xlu0 %3152  ;;  %v3279_v15 = vpack.c.bf16 %v7659_v58, %v7656_v47 }
 0x9b8   : > { %v5929_v22 = vpop.eup %5928  ;;  %v3187_v42 = vmul.f32 0.0125, %v3153_v14 }
 0x9b9   : > { %v3232_v10 = vmul.f32 %v5929_v22, %v7567_v61  ;;  %v3156_v35 = vpop.xlane.xlu1 %3155  ;;  %5009 = vmatmul.mubr.msk.bf16.vlgmr.msra.gmra.mrb[104].mxu0 %vm766_vm2, %v3279_v15  ;;  %v3248_v50 = vmul.f32 %v7647_v56, %v3231_v31 }
 0x9ba   : > { %v3203_v59 = vadd.f32 1e-05, %v3187_v42  ;;  %v3188_v0 = vmul.f32 0.0125, %v3156_v35  ;;  %3426 = vmatprep.mubr.bf16.mxu0 %v8640_v3 }
 0x9bb   : > { %v3249_v49 = vmul.f32 %v7647_v56, %v3232_v10  ;;  %v7670_v57 = vadd.f32 %v7652_v26, %v3248_v50 }
 0x9bc   : > { %5934 = vrsqrt.f32 %v3203_v59  ;;  %v3204_v53 = vadd.f32 1e-05, %v3188_v0 }
 0x9bd   : > { %v7673_v48 = vadd.f32 %v7652_v26, %v3249_v49 }
 0x9be   : > { %v5931_v61 = vpop.eup %5930  ;;  %5936 = vrsqrt.f32 %v3204_v53 }
 0x9bf   : > { %v3233_v1 = vmul.f32 %v5931_v61, %v7576_v63  ;;  %v3159_v6 = vpop.xlane.xlu0 %3158  ;;  %v3280_v8 = vpack.c.bf16 %v7673_v48, %v7670_v57 }
 0x9c0   : > { %v5933_v2 = vpop.eup %5932  ;;  %v3189_v44 = vmul.f32 0.0125, %v3159_v6 }
 0x9c1   : > { %v3234_v40 = vmul.f32 %v5933_v2, %v7579_v23  ;;  %v3162_v7 = vpop.xlane.xlu1 %3161  ;;  %5010 = vmatmul.mubr.msk.bf16.gmra.mrb[108].mxu0 %vm766_vm2, %v3280_v8  ;;  %v3250_v41 = vmul.f32 %v7647_v56, %v3233_v1 }
 0x9c2   : > { %v3205_v18 = vadd.f32 1e-05, %v3189_v44  ;;  %v3190_v34 = vmul.f32 0.0125, %v3162_v7  ;;  %3436 = vmatprep.mubr.bf16.mxu0 %v8640_v3 }
 0x9c3   : > { %v3251_v20 = vmul.f32 %v7647_v56, %v3234_v40  ;;  %v7684_v33 = vadd.f32 %v7652_v26, %v3250_v41 }
 0x9c4   : > { %5938 = vrsqrt.f32 %v3205_v18  ;;  %v3206_v63 = vadd.f32 1e-05, %v3190_v34 }
 0x9c5   : > { %v7687_v37 = vadd.f32 %v7652_v26, %v3251_v20 }
 0x9c6   : > { %v5935_v23 = vpop.eup %5934  ;;  %5940 = vrsqrt.f32 %v3206_v63 }
 0x9c7   : > { %v3235_v17 = vmul.f32 %v5935_v23, %v7588_v11  ;;  %v3165_v55 = vpop.xlane.xlu0 %3164  ;;  %v3281_v52 = vpack.c.bf16 %v7687_v37, %v7684_v33 }
 0x9c8   : > { %v5937_v5 = vpop.eup %5936  ;;  %v3191_v13 = vmul.f32 0.0125, %v3165_v55 }
 0x9c9   : > { %v3236_v46 = vmul.f32 %v5937_v5, %v7591_v27  ;;  %v3168_v4 = vpop.xlane.xlu1 %3167  ;;  %5011 = vmatmul.mubr.msk.bf16.gmra.mrb[112].mxu0 %vm766_vm2, %v3281_v52  ;;  %v3252_v39 = vmul.f32 %v7647_v56, %v3235_v17 }
 0x9ca   : > { %v3207_v30 = vadd.f32 1e-05, %v3191_v13  ;;  %v3192_v9 = vmul.f32 0.0125, %v3168_v4  ;;  %3446 = vmatprep.mubr.bf16.mxu0 %v8640_v3 }
 0x9cb   : > { %v3253_v38 = vmul.f32 %v7647_v56, %v3236_v46  ;;  %v7698_v62 = vadd.f32 %v7652_v26, %v3252_v39 }
 0x9cc   : > { %5942 = vrsqrt.f32 %v3207_v30  ;;  %v3208_v11 = vadd.f32 1e-05, %v3192_v9 }
 0x9cd   : > { %v7701_v25 = vadd.f32 %v7652_v26, %v3253_v38  ;;  %v5782_v38 = vld [vmem:[%s8556_s5 + $0x50] sm:$0xff]  }
 0x9ce   : > { %v5939_v27 = vpop.eup %5938  ;;  %5944 = vrsqrt.f32 %v3208_v11  ;;  %v5783_v11 = vld [vmem:[%s8556_s5 + $0x10] sm:$0xff]  }
 0x9cf   : > { %v3237_v36 = vmul.f32 %v5939_v27, %v7600_v24  ;;  %v3171_v12 = vpop.xlane.xlu0 %3170  ;;  %v3282_v21 = vpack.c.bf16 %v7701_v25, %v7698_v62  ;;  %v5784_v27 = vld [vmem:[%s8556_s5 + $0x58] sm:$0xff]  }
 0x9d0   : > { %v5941_v32 = vpop.eup %5940  ;;  %v3193_v43 = vmul.f32 0.0125, %v3171_v12  ;;  %v5786_v12 = vld [vmem:[%s8556_s5 + $0x60] sm:$0xff]  }
 0x9d1   : > { %v3238_v31 = vmul.f32 %v5941_v32, %v7603_v28  ;;  %v3174_v14 = vpop.xlane.xlu1 %3173  ;;  %5012 = vmatmul.mubr.msk.bf16.gmra.mrb[116].mxu0 %vm766_vm2, %v3282_v21  ;;  %v3254_v15 = vmul.f32 %v7647_v56, %v3237_v36  ;;  %v5785_v36 = vld [vmem:[%s8556_s5 + $0x18] sm:$0xff]   ;;  %v5787_v21 = vld [vmem:[%s8556_s5 + $0x20] sm:$0xff]   ;;  %v5788_v32 = vld [vmem:[%s8556_s5 + $0x68] sm:$0xff]  }
 0x9d2   : > { %v3209_v22 = vadd.f32 1e-05, %v3193_v43  ;;  %v3194_v42 = vmul.f32 0.0125, %v3174_v14  ;;  %3456 = vmatprep.mubr.bf16.mxu0 %v8640_v3  ;;  %v5789_v43 = vld [vmem:[%s8556_s5 + $0x28] sm:$0xff]   ;;  %v5791_v14 = vld [vmem:[%s8556_s5 + $0x30] sm:$0xff]  }
 0x9d3   : > { %v3255_v10 = vmul.f32 %v7647_v56, %v3238_v31  ;;  %v7712_v35 = vadd.f32 %v7652_v26, %v3254_v15  ;;  %v5790_v31 = vld [vmem:[%s8556_s5 + $0x70] sm:$0xff]   ;;  %v5792_v15 = vld [vmem:[%s8556_s5 + $0x78] sm:$0xff]  }
 0x9d4   : > { %5946 = vrsqrt.f32 %v3209_v22  ;;  %v3210_v24 = vadd.f32 1e-05, %v3194_v42  ;;  %v5793_v22 = vld [vmem:[%s8556_s5 + $0x38] sm:$0xff]   ;;  %v3298_v42 = vld [vmem:[#allocation10 + $0x5] ss:$8 sm:$0x3] }
 0x9d5   : > { %v7715_v50 = vadd.f32 %v7652_v26, %v3255_v10  ;;  %v8656_v10 = vld [vmem:[#allocation34_spill] sm:$0xff] }
 0x9d6   : > { %v5943_v28 = vpop.eup %5942  ;;  %5948 = vrsqrt.f32 %v3210_v24  ;;  %v7811_v24 = vrot.slane %v3298_v42, %v8656_v10 }
 0x9d7   : > { %v3239_v59 = vmul.f32 %v5943_v28, %v7612_v16  ;;  %v3177_v0 = vpop.xlane.xlu0 %3176  ;;  %v3283_v49 = vpack.c.bf16 %v7715_v50, %v7712_v35  ;;  %v8657_v28 = vld [vmem:[#allocation35_spill] sm:$0xff] }
 0x9d8   : > { %v5945_v53 = vpop.eup %5944  ;;  %v3195_v61 = vmul.f32 0.0125, %v3177_v0 }
 0x9d9   : > { %v3240_v1 = vmul.f32 %v5945_v53, %v7615_v60  ;;  %v3180_v6 = vpop.xlane.xlu1 %3179  ;;  %5013 = vmatmul.mubr.msk.bf16.gmra.mrb[120].mxu0 %vm766_vm2, %v3283_v49  ;;  %v3256_v8 = vmul.f32 %v7647_v56, %v3239_v59  ;;  %v7814_v59 = vrot.slane %v3298_v42, %v8657_v28 }
 0x9da   : > { %v3211_v2 = vadd.f32 1e-05, %v3195_v61  ;;  %v3196_v44 = vmul.f32 0.0125, %v3180_v6  ;;  %3466 = vmatprep.mubr.bf16.mxu0 %v8640_v3 }
 0x9db   : > { %v3257_v40 = vmul.f32 %v7647_v56, %v3240_v1  ;;  %v7726_v7 = vadd.f32 %v7652_v26, %v3256_v8 }
 0x9dc   : > { %5950 = vrsqrt.f32 %v3211_v2  ;;  %v3212_v16 = vadd.f32 1e-05, %v3196_v44 }
 0x9dd   : > { %v7729_v41 = vadd.f32 %v7652_v26, %v3257_v40 }
 0x9de   : > { %v5947_v60 = vpop.eup %5946  ;;  %5952 = vrsqrt.f32 %v3212_v16 }
 0x9df   : > { %v3241_v18 = vmul.f32 %v5947_v60, %v7624_v54  ;;  %v3284_v34 = vpack.c.bf16 %v7729_v41, %v7726_v7 }
 0x9e0   : > { %v5949_v20 = vpop.eup %5948 }
 0x9e1   : > { %v3242_v63 = vmul.f32 %v5949_v20, %v7627_v45  ;;  %5014 = vmatmul.mubr.msk.bf16.gmra.mrb[124].mxu0 %vm766_vm2, %v3284_v34  ;;  %v3258_v23 = vmul.f32 %v7647_v56, %v3241_v18 }
 0x9e2   : > { %3476 = vmatprep.mubr.bf16.mxu0 %v8640_v3 }
 0x9e3   : > { %v3259_v17 = vmul.f32 %v7647_v56, %v3242_v63  ;;  %v7740_v55 = vadd.f32 %v7652_v26, %v3258_v23 }
 0x9e5   : > { %v7743_v52 = vadd.f32 %v7652_v26, %v3259_v17 }
 0x9e6   : > { %v5951_v54 = vpop.eup %5950 }
 0x9e7   : > { %v3243_v5 = vmul.f32 %v5951_v54, %v7636_v29  ;;  %v3285_v45 = vpack.c.bf16 %v7743_v52, %v7740_v55 }
 0x9e8   : > { %v5953_v13 = vpop.eup %5952 }
 0x9e9   : > { %v3244_v46 = vmul.f32 %v5953_v13, %v7639_v19  ;;  %5015 = vmatmul.mubr.msk.bf16.gmra.mrb[128].mxu0 %vm766_vm2, %v3285_v45  ;;  %v3260_v4 = vmul.f32 %v7647_v56, %v3243_v5  ;;  %v5778_v19 = vld [vmem:[%s8556_s5 + $0x40] sm:$0xff]  }
 0x9ea   : > { %3486 = vmatprep.mubr.bf16.mxu0 %v8640_v3  ;;  %v5779_v3 = vld [vmem:[%s8556_s5] sm:$0xff]   ;;  %5181 = vmatprep.subr.bf16.mxu0 %v5778_v19 }
 0x9eb   : > { %v3261_v39 = vmul.f32 %v7647_v56, %v3244_v46  ;;  %v7754_v30 = vadd.f32 %v7652_v26, %v3260_v4  ;;  %5182 = vmatpush3.bf16.msra.mxu0 %v5779_v3  ;;  %v5780_v56 = vld [vmem:[%s8556_s5 + $0x48] sm:$0xff]  }
 0x9ec   : > { %5183 = vmatprep.subr.bf16.mxu0 %v5780_v56 }
 0x9ed   : > { %v7757_v9 = vadd.f32 %v7652_v26, %v3261_v39  ;;  %v5781_v26 = vld [vmem:[%s8556_s5 + $0x8] sm:$0xff]  }
 0x9ef   : > { %v3286_v29 = vpack.c.bf16 %v7757_v9, %v7754_v30  ;;  %5184 = vmatpush3.bf16.msra.mxu0 %v5781_v26 }
 0x9f0   : > { %5185 = vmatprep.subr.bf16.mxu0 %v5782_v38 }
 0x9f1   : > { %5016 = vmatmul.mubr.msk.bf16.gmra.mrb[132].mxu0 %vm766_vm2, %v3286_v29 }
 0x9f3   : > { %5186 = vmatpush3.bf16.msra.mxu0 %v5783_v11 }
 0x9f4   : > { %5187 = vmatprep.subr.bf16.mxu0 %v5784_v27 }
 0x9f7   : > { %5188 = vmatpush3.bf16.msra.mxu0 %v5785_v36 }
 0x9f8   : > { %5189 = vmatprep.subr.bf16.mxu0 %v5786_v12 }
 0x9fb   : > { %5190 = vmatpush3.bf16.msra.mxu0 %v5787_v21 }
 0x9fc   : > { %5191 = vmatprep.subr.bf16.mxu0 %v5788_v32 }
 0x9ff   : > { %5192 = vmatpush3.bf16.msra.mxu0 %v5789_v43 }
 0xa00   : > { %5193 = vmatprep.subr.bf16.mxu0 %v5790_v31 }
 0xa03   : > { %5194 = vmatpush3.bf16.msra.mxu0 %v5791_v14 }
 0xa04   : > { %5195 = vmatprep.subr.bf16.mxu0 %v5792_v15 }
 0xa07   : > { %5196 = vmatpush3.bf16.msra.mxu0 %v5793_v22 }
 0xa8c   : > { %v3418_v0 = vpop.f32.mrb[104].mxu0 }
 0xa8d   : > { %v3419_v49 = vadd.f32 %v3418_v0, %v7811_v24  ;;  %v3420_v53 = vpop.f32.mrb[105].mxu0 }
 0xa8e   : > { %v7818_v61 = vadd.f32 %v3420_v53, %v7814_v59  ;;  %v3422_v1 = vpop.f32.mrb[106].mxu0 }
 0xa8f   : > { %v3529_v6 = vmul.f32 0.044715, %v3419_v49  ;;  %v7821_v8 = vadd.f32 %v3422_v1, %v7811_v24  ;;  %v3424_v2 = vpop.f32.mrb[107].mxu0 }
 0xa90   : > { %v3530_v44 = vmul.f32 0.044715, %v7818_v61  ;;  %v7825_v40 = vadd.f32 %v3424_v2, %v7814_v59 }
 0xa91   : > { %v3561_v16 = vmul.f32 %v3529_v6, %v3419_v49  ;;  %v3531_v60 = vmul.f32 0.044715, %v7821_v8 }
 0xa92   : > { %v3562_v18 = vmul.f32 %v3530_v44, %v7818_v61  ;;  %v3532_v34 = vmul.f32 0.044715, %v7825_v40 }
 0xa93   : > { %v3593_v20 = vmul.f32 %v3561_v16, %v3419_v49  ;;  %v3563_v63 = vmul.f32 %v3531_v60, %v7821_v8 }
 0xa94   : > { %v3594_v23 = vmul.f32 %v3562_v18, %v7818_v61  ;;  %v3564_v17 = vmul.f32 %v3532_v34, %v7825_v40  ;;  %v3428_v54 = vpop.f32.mrb[108].mxu0 }
 0xa95   : > { %v3625_v5 = vadd.f32 %v3593_v20, %v3419_v49  ;;  %v3595_v45 = vmul.f32 %v3563_v63, %v7821_v8  ;;  %v7835_v13 = vadd.f32 %v3428_v54, %v7811_v24  ;;  %v3430_v46 = vpop.f32.mrb[109].mxu0  ;;  %v3497_v63 = vmul.f32 0.5, %v3419_v49 }
 0xa96   : > { %v3596_v4 = vmul.f32 %v3564_v17, %v7825_v40  ;;  %v3431_v39 = vadd.f32 %v3430_v46, %v7814_v59  ;;  %v3432_v29 = vpop.f32.mrb[110].mxu0  ;;  %v3626_v19 = vadd.f32 %v3594_v23, %v7818_v61 }
 0xa97   : > { %v3657_v3 = vmul.f32 0.7978846, %v3625_v5  ;;  %v3627_v56 = vadd.f32 %v3595_v45, %v7821_v8  ;;  %v3533_v26 = vmul.f32 0.044715, %v7835_v13  ;;  %v7843_v38 = vadd.f32 %v3432_v29, %v7811_v24  ;;  %v3434_v11 = vpop.f32.mrb[111].mxu0 }
 0xa98   : > { %v3534_v27 = vmul.f32 0.044715, %v3431_v39  ;;  %v3435_v36 = vadd.f32 %v3434_v11, %v7814_v59  ;;  %v3628_v12 = vadd.f32 %v3596_v4, %v7825_v40  ;;  %v3658_v21 = vmul.f32 0.7978846, %v3626_v19 }
 0xa99   : > { %5954 = vtanh.f32 %v3657_v3  ;;  %v3659_v32 = vmul.f32 0.7978846, %v3627_v56  ;;  %v3565_v43 = vmul.f32 %v3533_v26, %v7835_v13  ;;  %v3535_v31 = vmul.f32 0.044715, %v7843_v38 }
 0xa9a   : > { %v3566_v14 = vmul.f32 %v3534_v27, %v3431_v39  ;;  %v3536_v15 = vmul.f32 0.044715, %v3435_v36  ;;  %v3660_v22 = vmul.f32 0.7978846, %v3628_v12  ;;  %5956 = vtanh.f32 %v3658_v21 }
 0xa9b   : > { %5958 = vtanh.f32 %v3659_v32  ;;  %v3597_v42 = vmul.f32 %v3565_v43, %v7835_v13  ;;  %v3567_v0 = vmul.f32 %v3535_v31, %v7843_v38  ;;  %v3498_v19 = vmul.f32 0.5, %v7818_v61 }
 0xa9c   : > { %v3598_v53 = vmul.f32 %v3566_v14, %v3431_v39  ;;  %v3568_v1 = vmul.f32 %v3536_v15, %v3435_v36  ;;  %v3438_v6 = vpop.f32.mrb[112].mxu0  ;;  %5960 = vtanh.f32 %v3660_v22  ;;  %v3499_v12 = vmul.f32 0.5, %v7821_v8 }
 0xa9d   : > { %v3599_v2 = vmul.f32 %v3567_v0, %v7843_v38  ;;  %v3440_v44 = vpop.f32.mrb[113].mxu0  ;;  %v3629_v20 = vadd.f32 %v3597_v42, %v7835_v13  ;;  %v7857_v23 = vadd.f32 %v3438_v6, %v7811_v24  ;;  %v3500_v32 = vmul.f32 0.5, %v7825_v40 }
 0xa9e   : > { %v3600_v16 = vmul.f32 %v3568_v1, %v3435_v36  ;;  %v7853_v60 = vadd.f32 %v3440_v44, %v7814_v59  ;;  %v3442_v18 = vpop.f32.mrb[114].mxu0  ;;  %v3630_v34 = vadd.f32 %v3598_v53, %v3431_v39  ;;  %v7874_v15 = vmul.f32 0.5, %v3431_v39 }
 0xa9f   : > { %v3444_v17 = vpop.f32.mrb[115].mxu0  ;;  %v3631_v54 = vadd.f32 %v3599_v2, %v7843_v38  ;;  %v7865_v29 = vadd.f32 %v3442_v18, %v7811_v24  ;;  %v3661_v3 = vmul.f32 0.7978846, %v3629_v20  ;;  %v3537_v21 = vmul.f32 0.044715, %v7857_v23 }
 0xaa0   : > { %v3538_v5 = vmul.f32 0.044715, %v7853_v60  ;;  %v7862_v45 = vadd.f32 %v3444_v17, %v7814_v59  ;;  %v3632_v46 = vadd.f32 %v3600_v16, %v3435_v36  ;;  %v3662_v4 = vmul.f32 0.7978846, %v3630_v34 }
 0xaa1   : > { %v3663_v49 = vmul.f32 0.7978846, %v3631_v54  ;;  %v3504_v1 = vmul.f32 0.5, %v3435_v36  ;;  %v3539_v6 = vmul.f32 0.044715, %v7865_v29  ;;  %v3569_v39 = vmul.f32 %v3537_v21, %v7857_v23 }
 0xaa2   : > { %v3570_v56 = vmul.f32 %v3538_v5, %v7853_v60  ;;  %v3540_v26 = vmul.f32 0.044715, %v7862_v45  ;;  %v3664_v11 = vmul.f32 0.7978846, %v3632_v46  ;;  %5962 = vtanh.f32 %v3662_v4 }
 0xaa3   : > { %v5955_v27 = vpop.eup %5954  ;;  %5964 = vtanh.f32 %v3661_v3  ;;  %v3501_v36 = vmul.f32 0.5, %v7835_v13  ;;  %v7896_v13 = vmul.f32 0.5, %v7857_v23 }
 0xaa4   : > { %v5957_v43 = vpop.eup %5956  ;;  %v3572_v31 = vmul.f32 %v3540_v26, %v7862_v45  ;;  %v3448_v61 = vpop.f32.mrb[116].mxu0  ;;  %v3721_v14 = vadd.f32 1.0, %v5955_v27  ;;  %5966 = vtanh.f32 %v3664_v11  ;;  %v3602_v42 = vmul.f32 %v3570_v56, %v7853_v60 }
 0xaa5   : > { %v5959_v22 = vpop.eup %5958  ;;  %v3450_v0 = vpop.f32.mrb[117].mxu0  ;;  %v3722_v53 = vadd.f32 1.0, %v5957_v43  ;;  %5968 = vtanh.f32 %v3663_v49  ;;  %v7884_v18 = vadd.f32 %v3448_v61, %v7811_v24  ;;  %v3503_v49 = vmul.f32 0.5, %v7843_v38 }
 0xaa6   : > { %v5961_v8 = vpop.eup %5960  ;;  %v3604_v40 = vmul.f32 %v3572_v31, %v7862_v45  ;;  %v7880_v2 = vadd.f32 %v3450_v0, %v7814_v59  ;;  %v3452_v44 = vpop.f32.mrb[118].mxu0  ;;  %v3723_v16 = vadd.f32 1.0, %v5959_v22  ;;  %v3753_v5 = vmul.f32 %v3721_v14, %v3497_v63 }
 0xaa7   : > { %v3454_v34 = vpop.f32.mrb[119].mxu0  ;;  %v3724_v20 = vadd.f32 1.0, %v5961_v8  ;;  %v3754_v4 = vmul.f32 %v3722_v53, %v3498_v19  ;;  %v3634_v56 = vadd.f32 %v3602_v42, %v7853_v60  ;;  %v3571_v26 = vmul.f32 %v3539_v6, %v7865_v29 }
 0xaa8   : > { %v3542_v17 = vmul.f32 0.044715, %v7880_v2  ;;  %v7889_v54 = vadd.f32 %v3454_v34, %v7814_v59  ;;  %v3755_v46 = vmul.f32 %v3723_v16, %v3499_v12  ;;  %v3636_v27 = vadd.f32 %v3604_v40, %v7862_v45 }
 0xaa9   : > { %v3756_v3 = vmul.f32 %v3724_v20, %v3500_v32  ;;  %v3541_v21 = vmul.f32 0.044715, %v7884_v18  ;;  %v3666_v12 = vmul.f32 0.7978846, %v3634_v56  ;;  %v3601_v32 = vmul.f32 %v3569_v39, %v7857_v23 }
 0xaaa   : > { %v3785_v11 = vpack.c.bf16 %v3755_v46, %v3753_v5  ;;  %v3544_v43 = vmul.f32 0.044715, %v7889_v54  ;;  %v3574_v38 = vmul.f32 %v3542_v17, %v7880_v2  ;;  %v7903_v31 = vadd.f32 %v3452_v44, %v7811_v24 }
 0xaab   : > { %v3786_v63 = vpack.c.bf16 %v3756_v3, %v3754_v4  ;;  %v3668_v14 = vmul.f32 0.7978846, %v3636_v27  ;;  %v7909_v8 = vmul.f32 0.5, %v7853_v60  ;;  %5970 = vtanh.f32 %v3666_v12 }
 0xaac   : > { %v5963_v19 = vpop.eup %5962  ;;  %v3458_v61 = vpop.f32.mrb[120].mxu0  ;;  %v3603_v40 = vmul.f32 %v3571_v26, %v7865_v29  ;;  %v3573_v20 = vmul.f32 %v3541_v21, %v7884_v18  ;;  %v3576_v17 = vmul.f32 %v3544_v43, %v7889_v54  ;;  %v3606_v4 = vmul.f32 %v3574_v38, %v7880_v2 }
 0xaad   : > { %v5965_v22 = vpop.eup %5964  ;;  %v7906_v42 = vadd.f32 %v3458_v61, %v7811_v24  ;;  %v3460_v0 = vpop.f32.mrb[121].mxu0  ;;  %3962 = vmatprep.mubr.bf16.mxu0 %v3786_v63  ;;  %v3726_v53 = vadd.f32 1.0, %v5963_v19  ;;  %5972 = vtanh.f32 %v3668_v14  ;;  %v3543_v3 = vmul.f32 0.044715, %v7903_v31 }
 0xaae   : > { %v5967_v6 = vpop.eup %5966  ;;  %v7913_v16 = vadd.f32 %v3460_v0, %v7814_v59  ;;  %v3462_v44 = vpop.f32.mrb[122].mxu0  ;;  %3963 = vmatmul.mubr.bf16.vlgmr.msra.gmra.mrb[136].mxu0 %v3785_v11  ;;  %v3725_v39 = vadd.f32 1.0, %v5965_v22  ;;  %v3633_v21 = vadd.f32 %v3601_v32, %v7857_v23  ;;  %v3635_v61 = vadd.f32 %v3603_v40, %v7865_v29 }
 0xaaf   : > { %v5969_v34 = vpop.eup %5968  ;;  %v7918_v5 = vadd.f32 %v3462_v44, %v7811_v24  ;;  %v3464_v60 = vpop.f32.mrb[123].mxu0  ;;  %v3728_v46 = vadd.f32 1.0, %v5967_v6  ;;  %v3545_v56 = vmul.f32 0.044715, %v7906_v42  ;;  %v3758_v27 = vmul.f32 %v3726_v53, %v7874_v15 }
 0xab0   : > { %v3727_v26 = vadd.f32 1.0, %v5969_v34  ;;  %v3546_v11 = vmul.f32 0.044715, %v7913_v16  ;;  %v7927_v43 = vadd.f32 %v3464_v60, %v7814_v59  ;;  %v3757_v12 = vmul.f32 %v3725_v39, %v3501_v36 }
 0xab1   : > { %v3760_v63 = vmul.f32 %v3728_v46, %v3504_v1  ;;  %v3608_v38 = vmul.f32 %v3576_v17, %v7889_v54  ;;  %v3547_v14 = vmul.f32 0.044715, %v7918_v5  ;;  %v3665_v0 = vmul.f32 0.7978846, %v3633_v21 }
 0xab2   : > { %v3759_v19 = vmul.f32 %v3727_v26, %v3503_v49  ;;  %v3575_v6 = vmul.f32 %v3543_v3, %v7903_v31  ;;  %v3508_v1 = vmul.f32 0.5, %v7862_v45  ;;  %v3667_v23 = vmul.f32 0.7978846, %v3635_v61 }
 0xab3   : > { %v3788_v22 = vpack.c.bf16 %v3760_v63, %v3758_v27  ;;  %v3605_v32 = vmul.f32 %v3573_v20, %v7884_v18  ;;  %v3577_v36 = vmul.f32 %v3545_v56, %v7906_v42  ;;  %5974 = vtanh.f32 %v3665_v0 }
 0xab4   : > { %v3468_v44 = vpop.f32.mrb[124].mxu0  ;;  %v3787_v15 = vpack.c.bf16 %v3759_v19, %v3757_v12  ;;  %v3578_v40 = vmul.f32 %v3546_v11, %v7913_v16  ;;  %v3548_v39 = vmul.f32 0.044715, %v7927_v43  ;;  %5976 = vtanh.f32 %v3667_v23 }
 0xab5   : > { %v7937_v49 = vadd.f32 %v3468_v44, %v7811_v24  ;;  %v3470_v53 = vpop.f32.mrb[125].mxu0  ;;  %3970 = vmatprep.mubr.bf16.mxu0 %v3788_v22  ;;  %v5971_v45 = vpop.eup %5970  ;;  %v3579_v20 = vmul.f32 %v3547_v14, %v7918_v5  ;;  %v3507_v46 = vmul.f32 0.5, %v7865_v29  ;;  %v3638_v3 = vadd.f32 %v3606_v4, %v7880_v2 }
 0xab6   : > { %v7942_v34 = vadd.f32 %v3470_v53, %v7814_v59  ;;  %v3472_v17 = vpop.f32.mrb[126].mxu0  ;;  %3971 = vmatmul.mubr.bf16.gmra.mrb[140].mxu0 %v3787_v15  ;;  %v3640_v56 = vadd.f32 %v3608_v38, %v7889_v54  ;;  %v3607_v11 = vmul.f32 %v3575_v6, %v7903_v31  ;;  %v3730_v21 = vadd.f32 1.0, %v5971_v45 }
 0xab7   : > { %v3474_v60 = vpop.f32.mrb[127].mxu0  ;;  %v5973_v26 = vpop.eup %5972  ;;  %v7950_v27 = vadd.f32 %v3472_v17, %v7811_v24  ;;  %v7956_v12 = vmul.f32 %v3577_v36, %v7906_v42  ;;  %v3549_v19 = vmul.f32 0.044715, %v7937_v49  ;;  %v3670_v61 = vmul.f32 0.7978846, %v3638_v3 }
 0xab8   : > { %v7953_v63 = vadd.f32 %v3474_v60, %v7814_v59  ;;  %v3732_v29 = vadd.f32 1.0, %v5973_v26  ;;  %v3610_v4 = vmul.f32 %v3578_v40, %v7913_v16  ;;  %v3580_v38 = vmul.f32 %v3548_v39, %v7927_v43 }
 0xab9   : > { %v3550_v14 = vmul.f32 0.044715, %v7942_v34  ;;  %v3672_v22 = vmul.f32 0.7978846, %v3640_v56  ;;  %v7963_v0 = vmul.f32 %v3579_v20, %v7918_v5  ;;  %v3762_v6 = vmul.f32 %v3730_v21, %v7909_v8 }
 0xaba   : > { %v3764_v44 = vmul.f32 %v3732_v29, %v3508_v1  ;;  %5978 = vtanh.f32 %v3670_v61  ;;  %v3551_v15 = vmul.f32 0.044715, %v7950_v27  ;;  %v3552_v23 = vmul.f32 0.044715, %v7953_v63 }
 0xabb   : > { %v7969_v53 = vmul.f32 0.5, %v7880_v2  ;;  %5980 = vtanh.f32 %v3672_v22  ;;  %v3581_v40 = vmul.f32 %v3549_v19, %v7937_v49  ;;  %v3637_v8 = vadd.f32 %v3605_v32, %v7884_v18 }
 0xabc   : > { %v3478_v36 = vpop.f32.mrb[128].mxu0  ;;  %v3790_v45 = vpack.c.bf16 %v3764_v44, %v3762_v6  ;;  %v3612_v1 = vmul.f32 %v3580_v38, %v7927_v43  ;;  %v3582_v20 = vmul.f32 %v3550_v14, %v7942_v34  ;;  %v3512_v3 = vmul.f32 0.5, %v7889_v54 }
 0xabd   : > { %v7973_v39 = vadd.f32 %v3478_v36, %v7811_v24  ;;  %v3480_v17 = vpop.f32.mrb[129].mxu0  ;;  %v3639_v2 = vadd.f32 %v3607_v11, %v7903_v31  ;;  %v5975_v56 = vpop.eup %5974  ;;  %v7987_v32 = vmul.f32 0.5, %v7884_v18  ;;  %v3669_v29 = vmul.f32 0.7978846, %v3637_v8 }
 0xabe   : > { %v3482_v60 = vpop.f32.mrb[130].mxu0  ;;  %v7981_v26 = vadd.f32 %v3480_v17, %v7814_v59  ;;  %3978 = vmatprep.mubr.bf16.mxu0 %v3790_v45  ;;  %v5977_v61 = vpop.eup %5976  ;;  %v3583_v38 = vmul.f32 %v3551_v15, %v7950_v27  ;;  %v3584_v54 = vmul.f32 %v3552_v23, %v7953_v63  ;;  %v3729_v14 = vadd.f32 1.0, %v5975_v56 }
 0xabf   : > { %v7984_v21 = vadd.f32 %v3482_v60, %v7811_v24  ;;  %v3484_v19 = vpop.f32.mrb[131].mxu0  ;;  %v3671_v11 = vmul.f32 0.7978846, %v3639_v2  ;;  %v7992_v22 = vmul.f32 %v3581_v40, %v7937_v49  ;;  %v3731_v6 = vadd.f32 1.0, %v5977_v61 }
 0xac0   : > { %v7995_v44 = vadd.f32 %v3484_v19, %v7814_v59  ;;  %5982 = vtanh.f32 %v3669_v29  ;;  %v3614_v36 = vmul.f32 %v3582_v20, %v7942_v34  ;;  %v3553_v18 = vmul.f32 0.044715, %v7973_v39 }
 0xac1   : > { %v3511_v17 = vmul.f32 0.5, %v7903_v31  ;;  %5984 = vtanh.f32 %v3671_v11  ;;  %v3554_v15 = vmul.f32 0.044715, %v7981_v26  ;;  %v3761_v23 = vmul.f32 %v3729_v14, %v7896_v13 }
 0xac2   : > { %v3763_v45 = vmul.f32 %v3731_v6, %v3507_v46  ;;  %v3642_v40 = vadd.f32 %v3610_v4, %v7913_v16  ;;  %v3615_v8 = vmul.f32 %v3583_v38, %v7950_v27  ;;  %v3616_v60 = vmul.f32 %v3584_v54, %v7953_v63 }
 0xac3   : > { %v3555_v2 = vmul.f32 0.044715, %v7984_v21  ;;  %v3644_v20 = vadd.f32 %v3612_v1, %v7927_v43  ;;  %v3556_v31 = vmul.f32 0.044715, %v7995_v44  ;;  %v3585_v4 = vmul.f32 %v3553_v18, %v7973_v39 }
 0xac4   : > { %v3488_v56 = vpop.f32.mrb[132].mxu0  ;;  %v5979_v19 = vpop.eup %5978  ;;  %v3789_v29 = vpack.c.bf16 %v3763_v45, %v3761_v23  ;;  %v3674_v46 = vmul.f32 0.7978846, %v3642_v40  ;;  %v3586_v1 = vmul.f32 %v3554_v15, %v7981_v26  ;;  %v3514_v18 = vmul.f32 0.5, %v7913_v16 }
 0xac5   : > { %v8009_v61 = vadd.f32 %v3488_v56, %v7811_v24  ;;  %v3490_v13 = vpop.f32.mrb[133].mxu0  ;;  %v5981_v14 = vpop.eup %5980  ;;  %v3734_v54 = vadd.f32 1.0, %v5979_v19  ;;  %v3676_v6 = vmul.f32 0.7978846, %v3644_v20  ;;  %v3587_v40 = vmul.f32 %v3555_v2, %v7984_v21 }
 0xac6   : > { %v8013_v38 = vadd.f32 %v3490_v13, %v7814_v59  ;;  %v3492_v11 = vpop.f32.mrb[134].mxu0  ;;  %3979 = vmatmul.mubr.bf16.gmra.mrb[144].mxu0 %v3789_v29  ;;  %v3736_v23 = vadd.f32 1.0, %v5981_v14  ;;  %5986 = vtanh.f32 %v3674_v46  ;;  %v3588_v19 = vmul.f32 %v3556_v31, %v7995_v44 }
 0xac7   : > { %v8017_v45 = vadd.f32 %v3492_v11, %v7811_v24  ;;  %v3494_v56 = vpop.f32.mrb[135].mxu0  ;;  %5988 = vtanh.f32 %v3676_v6  ;;  %v3766_v15 = vmul.f32 %v3734_v54, %v7969_v53  ;;  %v3557_v24 = vmul.f32 0.044715, %v8009_v61 }
 0xac8   : > { %v8021_v28 = vadd.f32 %v3494_v56, %v7814_v59  ;;  %v3558_v20 = vmul.f32 0.044715, %v8013_v38  ;;  %v3768_v29 = vmul.f32 %v3736_v23, %v3512_v3  ;;  %v3641_v2 = vadd.f32 %v7956_v12, %v7906_v42 }
 0xac9   : > { %v3643_v59 = vadd.f32 %v7963_v0, %v7918_v5  ;;  %v3617_v16 = vmul.f32 %v3585_v4, %v7973_v39  ;;  %v3618_v31 = vmul.f32 %v3586_v1, %v7981_v26  ;;  %v3516_v11 = vmul.f32 0.5, %v7927_v43 }
 0xaca   : > { %v3560_v13 = vmul.f32 0.044715, %v8021_v28  ;;  %v5983_v46 = vpop.eup %5982  ;;  %v3792_v14 = vpack.c.bf16 %v3768_v29, %v3766_v15  ;;  %v3619_v3 = vmul.f32 %v3587_v40, %v7984_v21  ;;  %v3559_v54 = vmul.f32 0.044715, %v8017_v45 }
 0xacb   : > { %v5985_v53 = vpop.eup %5984  ;;  %v3733_v6 = vadd.f32 1.0, %v5983_v46  ;;  %v3673_v23 = vmul.f32 0.7978846, %v3641_v2  ;;  %v3590_v12 = vmul.f32 %v3558_v20, %v8013_v38  ;;  %v3675_v10 = vmul.f32 0.7978846, %v3643_v59 }
 0xacc   : > { %3986 = vmatprep.mubr.bf16.mxu0 %v3792_v14  ;;  %v3735_v56 = vadd.f32 1.0, %v5985_v53  ;;  %v3592_v0 = vmul.f32 %v3560_v13, %v8021_v28  ;;  %v3620_v4 = vmul.f32 %v3588_v19, %v7995_v44  ;;  %v3589_v1 = vmul.f32 %v3557_v24, %v8009_v61 }
 0xacd   : > { %5990 = vtanh.f32 %v3673_v23  ;;  %v3646_v43 = vadd.f32 %v3614_v36, %v7942_v34  ;;  %v3765_v40 = vmul.f32 %v3733_v6, %v7987_v32  ;;  %v3648_v29 = vadd.f32 %v3616_v60, %v7953_v63 }
 0xace   : > { %v3767_v15 = vmul.f32 %v3735_v56, %v3511_v17  ;;  %5992 = vtanh.f32 %v3675_v10  ;;  %v3591_v20 = vmul.f32 %v3559_v54, %v8017_v45  ;;  %v3645_v13 = vadd.f32 %v7992_v22, %v7937_v49 }
 0xacf   : > { %v3678_v2 = vmul.f32 0.7978846, %v3646_v43  ;;  %v3647_v59 = vadd.f32 %v3615_v8, %v7950_v27  ;;  %v3622_v24 = vmul.f32 %v3590_v12, %v8013_v38  ;;  %v3624_v36 = vmul.f32 %v3592_v0, %v8021_v28 }
 0xad0   : > { %v5987_v19 = vpop.eup %5986  ;;  %v3791_v46 = vpack.c.bf16 %v3767_v15, %v3765_v40  ;;  %v3680_v14 = vmul.f32 0.7978846, %v3648_v29  ;;  %v3677_v10 = vmul.f32 0.7978846, %v3645_v13  ;;  %v3650_v54 = vadd.f32 %v3618_v31, %v7981_v26 }
 0xad1   : > { %v5989_v32 = vpop.eup %5988  ;;  %v3738_v17 = vadd.f32 1.0, %v5987_v19  ;;  %5994 = vtanh.f32 %v3678_v2  ;;  %v3679_v60 = vmul.f32 0.7978846, %v3647_v59  ;;  %v3652_v22 = vadd.f32 %v3620_v4, %v7995_v44 }
 0xad2   : > { %3987 = vmatmul.mubr.bf16.gmra.mrb[148].mxu0 %v3791_v46  ;;  %v3740_v53 = vadd.f32 1.0, %v5989_v32  ;;  %5996 = vtanh.f32 %v3680_v14  ;;  %v3682_v23 = vmul.f32 0.7978846, %v3650_v54  ;;  %v3621_v56 = vmul.f32 %v3589_v1, %v8009_v61 }
 0xad3   : > { %v3770_v8 = vmul.f32 %v3738_v17, %v3514_v18  ;;  %5998 = vtanh.f32 %v3677_v10  ;;  %v3684_v12 = vmul.f32 0.7978846, %v3652_v22  ;;  %v3623_v0 = vmul.f32 %v3591_v20, %v8017_v45 }
 0xad4   : > { %v3772_v6 = vmul.f32 %v3740_v53, %v3516_v11  ;;  %6000 = vtanh.f32 %v3679_v60  ;;  %v3649_v43 = vadd.f32 %v3617_v16, %v7973_v39  ;;  %v3651_v40 = vadd.f32 %v3619_v3, %v7984_v21 }
 0xad5   : > { %6002 = vtanh.f32 %v3682_v23  ;;  %v3654_v31 = vadd.f32 %v3622_v24, %v8013_v38  ;;  %v3656_v4 = vadd.f32 %v3624_v36, %v8021_v28  ;;  %v3513_v11 = vmul.f32 0.5, %v7906_v42 }
 0xad6   : > { %v3794_v15 = vpack.c.bf16 %v3772_v6, %v3770_v8  ;;  %6004 = vtanh.f32 %v3684_v12  ;;  %v3681_v29 = vmul.f32 0.7978846, %v3649_v43  ;;  %v3683_v2 = vmul.f32 0.7978846, %v3651_v40 }
 0xad7   : > { %v5991_v18 = vpop.eup %5990  ;;  %v3515_v1 = vmul.f32 0.5, %v7918_v5  ;;  %v3686_v16 = vmul.f32 0.7978846, %v3654_v31  ;;  %v3688_v59 = vmul.f32 0.7978846, %v3656_v4  ;;  %v3653_v19 = vadd.f32 %v3621_v56, %v8009_v61 }
 0xad8   : > { %v5993_v13 = vpop.eup %5992  ;;  %3994 = vmatprep.mubr.bf16.mxu0 %v3794_v15  ;;  %v3737_v20 = vadd.f32 1.0, %v5991_v18  ;;  %6006 = vtanh.f32 %v3681_v29  ;;  %v3655_v24 = vadd.f32 %v3623_v0, %v8017_v45  ;;  %v3518_v10 = vmul.f32 0.5, %v7942_v34 }
 0xad9   : > { %v3739_v3 = vadd.f32 1.0, %v5993_v13  ;;  %6008 = vtanh.f32 %v3683_v2  ;;  %v3685_v14 = vmul.f32 0.7978846, %v3653_v19  ;;  %v3520_v54 = vmul.f32 0.5, %v7953_v63 }
 0xada   : > { %v3769_v46 = vmul.f32 %v3737_v20, %v3513_v11  ;;  %6010 = vtanh.f32 %v3686_v16  ;;  %v3687_v32 = vmul.f32 0.7978846, %v3655_v24  ;;  %v3517_v6 = vmul.f32 0.5, %v7937_v49 }
 0xadb   : > { %v5995_v36 = vpop.eup %5994  ;;  %v3771_v42 = vmul.f32 %v3739_v3, %v3515_v1  ;;  %6012 = vtanh.f32 %v3688_v59  ;;  %v3519_v0 = vmul.f32 0.5, %v7950_v27  ;;  %v3522_v63 = vmul.f32 0.5, %v7981_v26 }
 0xadc   : > { %v5997_v17 = vpop.eup %5996  ;;  %v3742_v5 = vadd.f32 1.0, %v5995_v36  ;;  %6014 = vtanh.f32 %v3685_v14  ;;  %v3524_v11 = vmul.f32 0.5, %v7995_v44  ;;  %v3521_v59 = vmul.f32 0.5, %v7973_v39 }
 0xadd   : > { %v5999_v60 = vpop.eup %5998  ;;  %v3793_v53 = vpack.c.bf16 %v3771_v42, %v3769_v46  ;;  %v3744_v22 = vadd.f32 1.0, %v5997_v17  ;;  %6016 = vtanh.f32 %v3687_v32  ;;  %v3523_v3 = vmul.f32 0.5, %v7984_v21 }
 0xade   : > { %v6001_v8 = vpop.eup %6000  ;;  %v3741_v23 = vadd.f32 1.0, %v5999_v60  ;;  %v3774_v12 = vmul.f32 %v3742_v5, %v3518_v10  ;;  %v3526_v26 = vmul.f32 0.5, %v8013_v38  ;;  %v3528_v32 = vmul.f32 0.5, %v8021_v28 }
 0xadf   : > { %3995 = vmatmul.mubr.bf16.gmra.mrb[152].mxu0 %v3793_v53  ;;  %v3776_v56 = vmul.f32 %v3744_v22, %v3520_v54  ;;  %v3743_v43 = vadd.f32 1.0, %v6001_v8  ;;  %v6003_v34 = vpop.eup %6002  ;;  %v3525_v5 = vmul.f32 0.5, %v8009_v61  ;;  %v3527_v39 = vmul.f32 0.5, %v8017_v45 }
 0xae0   : > { %v6005_v40 = vpop.eup %6004  ;;  %v3773_v31 = vmul.f32 %v3741_v23, %v3517_v6  ;;  %v3746_v18 = vadd.f32 1.0, %v6003_v34 }
 0xae1   : > { %v3796_v15 = vpack.c.bf16 %v3776_v56, %v3774_v12  ;;  %v3775_v4 = vmul.f32 %v3743_v43, %v3519_v0  ;;  %v3748_v29 = vadd.f32 1.0, %v6005_v40  ;;  %v8077_v12 = vld [vmem:[#allocation10 + $0x6] ss:$0 sm:$0xff] }
 0xae2   : > { %v6007_v49 = vpop.eup %6006  ;;  %v3778_v1 = vmul.f32 %v3746_v18, %v3522_v63 }
 0xae3   : > { %4002 = vmatprep.mubr.bf16.mxu0 %v3796_v15  ;;  %v3795_v2 = vpack.c.bf16 %v3775_v4, %v3773_v31  ;;  %v6009_v13 = vpop.eup %6008  ;;  %v3780_v20 = vmul.f32 %v3748_v29, %v3524_v11  ;;  %v3745_v16 = vadd.f32 1.0, %v6007_v49 }
 0xae4   : > { %v6011_v27 = vpop.eup %6010  ;;  %v3747_v19 = vadd.f32 1.0, %v6009_v13 }
 0xae5   : > { %v6013_v24 = vpop.eup %6012  ;;  %v3798_v46 = vpack.c.bf16 %v3780_v20, %v3778_v1  ;;  %v3750_v36 = vadd.f32 1.0, %v6011_v27  ;;  %v3777_v42 = vmul.f32 %v3745_v16, %v3521_v59 }
 0xae6   : > { %v6015_v44 = vpop.eup %6014  ;;  %v3779_v14 = vmul.f32 %v3747_v19, %v3523_v3  ;;  %v3752_v17 = vadd.f32 1.0, %v6013_v24 }
 0xae7   : > { %4003 = vmatmul.mubr.bf16.gmra.mrb[156].mxu0 %v3795_v2  ;;  %v6017_v10 = vpop.eup %6016  ;;  %v3749_v21 = vadd.f32 1.0, %v6015_v44  ;;  %v3782_v53 = vmul.f32 %v3750_v36, %v3526_v26 }
 0xae8   : > { %4010 = vmatprep.mubr.bf16.mxu0 %v3798_v46  ;;  %v3797_v60 = vpack.c.bf16 %v3779_v14, %v3777_v42  ;;  %v3784_v54 = vmul.f32 %v3752_v17, %v3528_v32  ;;  %v3751_v22 = vadd.f32 1.0, %v6017_v10 }
 0xae9   : > { %v3781_v8 = vmul.f32 %v3749_v21, %v3525_v5 }
 0xaea   : > { %v3800_v38 = vpack.c.bf16 %v3784_v54, %v3782_v53  ;;  %v3783_v6 = vmul.f32 %v3751_v22, %v3527_v39 }
 0xaec   : > { %v3799_v23 = vpack.c.bf16 %v3783_v6, %v3781_v8 }
 0xaef   : > { %4011 = vmatmul.mubr.bf16.gmra.mrb[160].mxu0 %v3797_v60 }
 0xaf0   : > { %4018 = vmatprep.mubr.bf16.mxu0 %v3800_v38 }
 0xaf7   : > { %4019 = vmatmul.mubr.bf16.gmra.mrb[164].mxu0 %v3799_v23 }
 0xaf8   : > { %5524 = vmatprep.mubr.msk.f32.mxu0 %vm6283_vm3, %v8631_v51 }
 0xb81   : > { %v5197_v28 = vpop.f32.mrb[136].mxu0 }
 0xb82   : > { %v5198_v61 = vpop.f32.mrb[137].mxu0 }
 0xb83   : > { %v5199_v45 = vadd.f32 %v5198_v61, %v5197_v28  ;;  %v5200_v56 = vpop.f32.mrb[138].mxu0 }
 0xb84   : > { %v5201_v0 = vpop.f32.mrb[139].mxu0 }
 0xb85   : > { %v3965_v43 = vadd.f32 %v5199_v45, %v8077_v12  ;;  %v5202_v34 = vadd.f32 %v5201_v0, %v5200_v56 }
 0xb87   : > { %v3968_v40 = vadd.f32 %v5202_v34, %v8077_v12  ;;  %v8082_v15 = vadd.f32 %v3965_v43, %v7656_v47 }
 0xb89   : > { %v5203_v31 = vpop.f32.mrb[140].mxu0  ;;  %v4043_v4 = vsel %vm766_vm2, %v8082_v15, 0.0  ;;  %v8087_v18 = vadd.f32 %v3968_v40, %v7659_v58 }
 0xb8a   : > { %v5204_v63 = vpop.f32.mrb[141].mxu0  ;;  %4044 = vadd.xlane.f32.xlu0 %v4043_v4 }
 0xb8b   : > { %v5205_v11 = vadd.f32 %v5204_v63, %v5203_v31  ;;  %v5206_v29 = vpop.f32.mrb[142].mxu0  ;;  %v4046_v49 = vsel %vm766_vm2, %v8087_v18, 0.0 }
 0xb8c   : > { %v5207_v2 = vpop.f32.mrb[143].mxu0  ;;  %4047 = vadd.xlane.f32.xlu1 %v4046_v49 }
 0xb8d   : > { %v3973_v13 = vadd.f32 %v5205_v11, %v8077_v12  ;;  %v5208_v47 = vadd.f32 %v5207_v2, %v5206_v29 }
 0xb8f   : > { %v3976_v1 = vadd.f32 %v5208_v47, %v8077_v12  ;;  %v8094_v20 = vadd.f32 %v3973_v13, %v7670_v57 }
 0xb91   : > { %v4049_v58 = vsel %vm766_vm2, %v8094_v20, 0.0  ;;  %v8099_v16 = vadd.f32 %v3976_v1, %v7673_v48 }
 0xb92   : > { %4050 = vadd.xlane.f32.xlu0 %v4049_v58 }
 0xb93   : > { %v4052_v27 = vsel %vm766_vm2, %v8099_v16, 0.0 }
 0xb94   : > { %4053 = vadd.xlane.f32.xlu1 %v4052_v27 }
 0xb99   : > { %v5209_v59 = vpop.f32.mrb[144].mxu0 }
 0xb9a   : > { %v5210_v3 = vpop.f32.mrb[145].mxu0 }
 0xb9b   : > { %v5211_v19 = vadd.f32 %v5210_v3, %v5209_v59  ;;  %v5212_v24 = vpop.f32.mrb[146].mxu0 }
 0xb9c   : > { %v5213_v46 = vpop.f32.mrb[147].mxu0 }
 0xb9d   : > { %v3981_v26 = vadd.f32 %v5211_v19, %v8077_v12  ;;  %v5214_v57 = vadd.f32 %v5213_v46, %v5212_v24 }
 0xb9f   : > { %v3984_v36 = vadd.f32 %v5214_v57, %v8077_v12  ;;  %v8106_v44 = vadd.f32 %v3981_v26, %v7684_v33 }
 0xba1   : > { %v4055_v48 = vsel %vm766_vm2, %v8106_v44, 0.0  ;;  %v8111_v42 = vadd.f32 %v3984_v36, %v7687_v37 }
 0xba2   : > { %4056 = vadd.xlane.f32.xlu0 %v4055_v48 }
 0xba3   : > { %v4058_v14 = vsel %vm766_vm2, %v8111_v42, 0.0 }
 0xba4   : > { %4059 = vadd.xlane.f32.xlu1 %v4058_v14 }
 0xba5   : > { %v5215_v32 = vpop.f32.mrb[148].mxu0 }
 0xba6   : > { %v5216_v17 = vpop.f32.mrb[149].mxu0 }
 0xba7   : > { %v5217_v10 = vadd.f32 %v5216_v17, %v5215_v32  ;;  %v5218_v5 = vpop.f32.mrb[150].mxu0 }
 0xba8   : > { %v5219_v39 = vpop.f32.mrb[151].mxu0 }
 0xba9   : > { %v3989_v21 = vadd.f32 %v5217_v10, %v8077_v12  ;;  %v5220_v33 = vadd.f32 %v5219_v39, %v5218_v5 }
 0xbab   : > { %v3992_v60 = vadd.f32 %v5220_v33, %v8077_v12  ;;  %v8118_v53 = vadd.f32 %v3989_v21, %v7698_v62 }
 0xbad   : > { %v4061_v37 = vsel %vm766_vm2, %v8118_v53, 0.0  ;;  %v8123_v54 = vadd.f32 %v3992_v60, %v7701_v25 }
 0xbae   : > { %4062 = vadd.xlane.f32.xlu0 %v4061_v37 }
 0xbaf   : > { %v4064_v22 = vsel %vm766_vm2, %v8123_v54, 0.0 }
 0xbb0   : > { %4065 = vadd.xlane.f32.xlu1 %v4064_v22 }
 0xbb2   : > { %v5221_v38 = vpop.f32.mrb[152].mxu0 }
 0xbb3   : > { %v5222_v8 = vpop.f32.mrb[153].mxu0 }
 0xbb4   : > { %v5223_v6 = vadd.f32 %v5222_v8, %v5221_v38  ;;  %v5224_v23 = vpop.f32.mrb[154].mxu0 }
 0xbb5   : > { %v5225_v28 = vpop.f32.mrb[155].mxu0 }
 0xbb6   : > { %v3997_v61 = vadd.f32 %v5223_v6, %v8077_v12  ;;  %v5226_v62 = vadd.f32 %v5225_v28, %v5224_v23 }
 0xbb8   : > { %v4000_v45 = vadd.f32 %v5226_v62, %v8077_v12  ;;  %v8130_v56 = vadd.f32 %v3997_v61, %v7712_v35 }
 0xbba   : > { %v5227_v25 = vpop.f32.mrb[156].mxu0  ;;  %v4067_v0 = vsel %vm766_vm2, %v8130_v56, 0.0  ;;  %v8135_v43 = vadd.f32 %v4000_v45, %v7715_v50 }
 0xbbb   : > { %v5228_v34 = vpop.f32.mrb[157].mxu0  ;;  %4068 = vadd.xlane.f32.xlu0 %v4067_v0 }
 0xbbc   : > { %v5229_v40 = vadd.f32 %v5228_v34, %v5227_v25  ;;  %v5230_v31 = vpop.f32.mrb[158].mxu0  ;;  %v4070_v4 = vsel %vm766_vm2, %v8135_v43, 0.0 }
 0xbbd   : > { %v5231_v63 = vpop.f32.mrb[159].mxu0  ;;  %4071 = vadd.xlane.f32.xlu1 %v4070_v4 }
 0xbbe   : > { %v4005_v11 = vadd.f32 %v5229_v40, %v8077_v12  ;;  %v5232_v35 = vadd.f32 %v5231_v63, %v5230_v31 }
 0xbc0   : > { %v4008_v29 = vadd.f32 %v5232_v35, %v8077_v12  ;;  %v8142_v49 = vadd.f32 %v4005_v11, %v7726_v7 }
 0xbc2   : > { %v5233_v2 = vpop.f32.mrb[160].mxu0  ;;  %v4073_v50 = vsel %vm766_vm2, %v8142_v49, 0.0  ;;  %v8147_v13 = vadd.f32 %v4008_v29, %v7729_v41 }
 0xbc3   : > { %v5234_v47 = vpop.f32.mrb[161].mxu0  ;;  %4074 = vadd.xlane.f32.xlu0 %v4073_v50 }
 0xbc4   : > { %v5235_v1 = vadd.f32 %v5234_v47, %v5233_v2  ;;  %v5236_v58 = vpop.f32.mrb[162].mxu0  ;;  %v4076_v27 = vsel %vm766_vm2, %v8147_v13, 0.0 }
 0xbc5   : > { %v5237_v59 = vpop.f32.mrb[163].mxu0  ;;  %4077 = vadd.xlane.f32.xlu1 %v4076_v27 }
 0xbc6   : > { %v4013_v3 = vadd.f32 %v5235_v1, %v8077_v12  ;;  %v5238_v7 = vadd.f32 %v5237_v59, %v5236_v58 }
 0xbc8   : > { %v4016_v19 = vadd.f32 %v5238_v7, %v8077_v12  ;;  %v8154_v24 = vadd.f32 %v4013_v3, %v7740_v55 }
 0xbca   : > { %v5239_v46 = vpop.f32.mrb[164].mxu0  ;;  %v4079_v41 = vsel %vm766_vm2, %v8154_v24, 0.0  ;;  %v8159_v26 = vadd.f32 %v4016_v19, %v7743_v52 }
 0xbcb   : > { %4080 = vadd.xlane.f32.xlu0 %v4079_v41  ;;  %v5240_v57 = vpop.f32.mrb[165].mxu0 }
 0xbcc   : > { %v5241_v36 = vadd.f32 %v5240_v57, %v5239_v46  ;;  %v5242_v48 = vpop.f32.mrb[166].mxu0  ;;  %v4082_v14 = vsel %vm766_vm2, %v8159_v26, 0.0 }
 0xbcd   : > { %4083 = vadd.xlane.f32.xlu1 %v4082_v14  ;;  %v5243_v32 = vpop.f32.mrb[167].mxu0 }
 0xbce   : > { %v4021_v17 = vadd.f32 %v5241_v36, %v8077_v12  ;;  %v5244_v55 = vadd.f32 %v5243_v32, %v5242_v48 }
 0xbd0   : > { %v4024_v10 = vadd.f32 %v5244_v55, %v8077_v12  ;;  %v8166_v5 = vadd.f32 %v4021_v17, %v7754_v30 }
 0xbd2   : > { %v4085_v52 = vsel %vm766_vm2, %v8166_v5, 0.0  ;;  %v8171_v39 = vadd.f32 %v4024_v10, %v7757_v9 }
 0xbd3   : > { %4086 = vadd.xlane.f32.xlu0 %v4085_v52 }
 0xbd4   : > { %v4088_v21 = vsel %vm766_vm2, %v8171_v39, 0.0 }
 0xbd5   : > { %4089 = vadd.xlane.f32.xlu1 %v4088_v21 }
 0xc17   : > { %v4045_v33 = vpop.xlane.xlu0 %4044 }
 0xc18   : > { %v4091_v60 = vmul.f32 0.0125, %v4045_v33 }
 0xc19   : > { %v4048_v37 = vpop.xlane.xlu1 %4047 }
 0xc1a   : > { %v8176_v22 = vsub.f32 %v8082_v15, %v4091_v60  ;;  %v4092_v12 = vmul.f32 0.0125, %v4048_v37 }
 0xc1c   : > { %v8179_v30 = vsub.f32 %v8087_v18, %v4092_v12  ;;  %v4123_v38 = vmul.f32 %v8176_v22, %v8176_v22 }
 0xc1e   : > { %v4139_v9 = vsel %vm766_vm2, %v4123_v38, 0.0  ;;  %v4124_v8 = vmul.f32 %v8179_v30, %v8179_v30 }
 0xc1f   : > { %v4051_v6 = vpop.xlane.xlu0 %4050  ;;  %4140 = vadd.xlane.f32.xlu0 %v4139_v9 }
 0xc20   : > { %v4093_v23 = vmul.f32 0.0125, %v4051_v6  ;;  %v4142_v28 = vsel %vm766_vm2, %v4124_v8, 0.0 }
 0xc21   : > { %v4054_v61 = vpop.xlane.xlu1 %4053  ;;  %4143 = vadd.xlane.f32.xlu1 %v4142_v28 }
 0xc22   : > { %v8188_v15 = vsub.f32 %v8094_v20, %v4093_v23  ;;  %v4094_v18 = vmul.f32 0.0125, %v4054_v61 }
 0xc24   : > { %v8191_v62 = vsub.f32 %v8099_v16, %v4094_v18  ;;  %v4125_v45 = vmul.f32 %v8188_v15, %v8188_v15 }
 0xc26   : > { %v4145_v25 = vsel %vm766_vm2, %v4125_v45, 0.0  ;;  %v4126_v0 = vmul.f32 %v8191_v62, %v8191_v62 }
 0xc27   : > { %4146 = vadd.xlane.f32.xlu0 %v4145_v25 }
 0xc28   : > { %v4148_v34 = vsel %vm766_vm2, %v4126_v0, 0.0 }
 0xc29   : > { %4149 = vadd.xlane.f32.xlu1 %v4148_v34 }
 0xc2f   : > { %v4057_v40 = vpop.xlane.xlu0 %4056 }
 0xc30   : > { %v4095_v31 = vmul.f32 0.0125, %v4057_v40 }
 0xc31   : > { %v4060_v20 = vpop.xlane.xlu1 %4059 }
 0xc32   : > { %v8200_v4 = vsub.f32 %v8106_v44, %v4095_v31  ;;  %v4096_v16 = vmul.f32 0.0125, %v4060_v20 }
 0xc34   : > { %v8203_v63 = vsub.f32 %v8111_v42, %v4096_v16  ;;  %v4127_v11 = vmul.f32 %v8200_v4, %v8200_v4  ;;  %v4366_v16 = vld [vmem:[#allocation8] sm:$0xff] }
 0xc36   : > { %v4151_v35 = vsel %vm766_vm2, %v4127_v11, 0.0  ;;  %v4128_v29 = vmul.f32 %v8203_v63, %v8203_v63  ;;  %v4367_v11 = vld [vmem:[#allocation8 + $0x8] sm:$0xff] }
 0xc37   : > { %4152 = vadd.xlane.f32.xlu0 %v4151_v35  ;;  %v6284_v35 = vmov 0.0|0.0  }
 0xc38   : > { %v4154_v2 = vsel %vm766_vm2, %v4128_v29, 0.0  ;;  %5527 = vmatprep.subr.bf16.mxu1 %v6284_v35  ;;  %v5528_v29 = vpack.c.bf16 %v4367_v11, %v4366_v16  ;;  %5582 = vmatprep.subr.bf16.mxu0 %v6284_v35 }
 0xc39   : > { %4155 = vadd.xlane.f32.xlu1 %v4154_v2 }
 0xc3a   : > { %5529 = vmatpush3.bf16.msra.mxu1 %v5528_v29 }
 0xc3b   : > { %v4063_v50 = vpop.xlane.xlu0 %4062  ;;  %5530 = vmatprep.subr.bf16.mxu1 %v6284_v35 }
 0xc3c   : > { %v4097_v47 = vmul.f32 0.0125, %v4063_v50  ;;  %v4370_v50 = vld [vmem:[#allocation8 + $0x20] sm:$0xff] }
 0xc3d   : > { %v4066_v44 = vpop.xlane.xlu1 %4065 }
 0xc3e   : > { %v8212_v1 = vsub.f32 %v8118_v53, %v4097_v47  ;;  %v4098_v42 = vmul.f32 0.0125, %v4066_v44  ;;  %v4371_v47 = vld [vmem:[#allocation8 + $0x28] sm:$0xff] }
 0xc3f   : > { %v5534_v44 = vpack.c.bf16 %v4371_v47, %v4370_v50 }
 0xc40   : > { %v8215_v58 = vsub.f32 %v8123_v54, %v4098_v42  ;;  %v4129_v27 = vmul.f32 %v8212_v1, %v8212_v1  ;;  %v4372_v42 = vld [vmem:[#allocation8 + $0x30] sm:$0xff] }
 0xc42   : > { %v4157_v59 = vsel %vm766_vm2, %v4129_v27, 0.0  ;;  %v4130_v3 = vmul.f32 %v8215_v58, %v8215_v58  ;;  %v4373_v27 = vld [vmem:[#allocation8 + $0x38] sm:$0xff] }
 0xc43   : > { %4158 = vadd.xlane.f32.xlu0 %v4157_v59  ;;  %v5537_v59 = vpack.c.bf16 %v4373_v27, %v4372_v42 }
 0xc44   : > { %v4160_v7 = vsel %vm766_vm2, %v4130_v3, 0.0  ;;  %v4374_v3 = vld [vmem:[#allocation8 + $0x40] sm:$0xff] }
 0xc45   : > { %4161 = vadd.xlane.f32.xlu1 %v4160_v7  ;;  %v4375_v7 = vld [vmem:[#allocation8 + $0x48] sm:$0xff] }
 0xc48   : > { %v4069_v19 = vpop.xlane.xlu0 %4068 }
 0xc49   : > { %v4099_v46 = vmul.f32 0.0125, %v4069_v19  ;;  %v5540_v19 = vpack.c.bf16 %v4375_v7, %v4374_v3 }
 0xc4a   : > { %v4072_v53 = vpop.xlane.xlu1 %4071 }
 0xc4b   : > { %v8224_v41 = vsub.f32 %v8130_v56, %v4099_v46  ;;  %v4100_v54 = vmul.f32 0.0125, %v4072_v53  ;;  %v4473_v46 = vld [vmem:[%s8658_s7 + $0x8] sm:$0xff]  ;;  %v4478_v53 = vld [vmem:[%s8658_s7 + $0x30] sm:$0xff] }
 0xc4d   : > { %v8227_v57 = vsub.f32 %v8135_v43, %v4100_v54  ;;  %v4131_v36 = vmul.f32 %v8224_v41, %v8224_v41  ;;  %v5542_v54 = vpack.c.bf16 %v4478_v53, %v4473_v46 }
 0xc4f   : > { %v4163_v48 = vsel %vm766_vm2, %v4131_v36, 0.0  ;;  %v4132_v14 = vmul.f32 %v8227_v57, %v8227_v57  ;;  %v4476_v36 = vld [vmem:[%s8658_s7 + $0x20] sm:$0xff] }
 0xc50   : > { %v4075_v32 = vpop.xlane.xlu0 %4074  ;;  %4164 = vadd.xlane.f32.xlu0 %v4163_v48  ;;  %v4481_v48 = vld [vmem:[%s8658_s7 + $0x48] sm:$0xff] }
 0xc51   : > { %v4101_v17 = vmul.f32 0.0125, %v4075_v32  ;;  %v4166_v55 = vsel %vm766_vm2, %v4132_v14, 0.0  ;;  %v5583_v14 = vpack.c.bf16 %v4481_v48, %v4476_v36  ;;  %v4486_v32 = vld [vmem:[%s8658_s7 + $0x70] sm:$0xff] }
 0xc52   : > { %v4078_v10 = vpop.xlane.xlu1 %4077  ;;  %4167 = vadd.xlane.f32.xlu1 %v4166_v55 }
 0xc53   : > { %v8236_v56 = vsub.f32 %v8142_v49, %v4101_v17  ;;  %v4102_v43 = vmul.f32 0.0125, %v4078_v10  ;;  %5584 = vmatpush3.bf16.msra.mxu0 %v5583_v14  ;;  %v4491_v17 = vld [vmem:[%s8658_s7 + $0x98] sm:$0xff]  ;;  %v4496_v10 = vld [vmem:[%s8658_s7 + $0xc0] sm:$0xff] }
 0xc54   : > { %5585 = vmatprep.subr.bf16.mxu0 %v6284_v35  ;;  %v5586_v55 = vpack.c.bf16 %v4491_v17, %v4486_v32 }
 0xc55   : > { %v8239_v52 = vsub.f32 %v8147_v13, %v4102_v43  ;;  %v4133_v21 = vmul.f32 %v8236_v56, %v8236_v56  ;;  %v4501_v43 = vld [vmem:[%s8658_s7 + $0xe8] sm:$0xff] }
 0xc57   : > { %v4169_v33 = vsel %vm766_vm2, %v4133_v21, 0.0  ;;  %v4134_v60 = vmul.f32 %v8239_v52, %v8239_v52  ;;  %5587 = vmatpush3.bf16.msra.mxu0 %v5586_v55  ;;  %v5589_v21 = vpack.c.bf16 %v4501_v43, %v4496_v10  ;;  %v8303_v10 = vld [vmem:[#allocation10 + $0x7] ss:$0 sm:$0xff] }
 0xc58   : > { %v4081_v37 = vpop.xlane.xlu0 %4080  ;;  %4170 = vadd.xlane.f32.xlu0 %v4169_v33  ;;  %5588 = vmatprep.subr.bf16.mxu0 %v6284_v35  ;;  %v4506_v33 = vld [vmem:[%s8658_s7 + $0x110] sm:$0xff] }
 0xc59   : > { %v4103_v12 = vmul.f32 0.0125, %v4081_v37  ;;  %v4172_v38 = vsel %vm766_vm2, %v4134_v60, 0.0  ;;  %v4511_v60 = vld [vmem:[%s8658_s7 + $0x138] sm:$0xff] }
 0xc5a   : > { %v4084_v9 = vpop.xlane.xlu1 %4083  ;;  %4173 = vadd.xlane.f32.xlu1 %v4172_v38  ;;  %v5592_v37 = vpack.c.bf16 %v4511_v60, %v4506_v33 }
 0xc5b   : > { %v8248_v49 = vsub.f32 %v8154_v24, %v4103_v12  ;;  %v4104_v13 = vmul.f32 0.0125, %v4084_v9  ;;  %5590 = vmatpush3.bf16.msra.mxu0 %v5589_v21 }
 0xc5c   : > { %5591 = vmatprep.subr.bf16.mxu0 %v6284_v35 }
 0xc5d   : > { %v8251_v8 = vsub.f32 %v8159_v26, %v4104_v13  ;;  %v4135_v6 = vmul.f32 %v8248_v49, %v8248_v49 }
 0xc5f   : > { %v4175_v23 = vsel %vm766_vm2, %v4135_v6, 0.0  ;;  %v4136_v28 = vmul.f32 %v8251_v8, %v8251_v8  ;;  %5593 = vmatpush3.bf16.msra.mxu0 %v5592_v37 }
 0xc60   : > { %4176 = vadd.xlane.f32.xlu0 %v4175_v23  ;;  %v4087_v61 = vpop.xlane.xlu0 %4086  ;;  %5594 = vmatprep.subr.bf16.mxu0 %v6284_v35 }
 0xc61   : > { %v4105_v18 = vmul.f32 0.0125, %v4087_v61  ;;  %v4178_v45 = vsel %vm766_vm2, %v4136_v28, 0.0 }
 0xc62   : > { %4179 = vadd.xlane.f32.xlu1 %v4178_v45  ;;  %v4090_v24 = vpop.xlane.xlu1 %4089 }
 0xc63   : > { %v8260_v25 = vsub.f32 %v8166_v5, %v4105_v18  ;;  %v4106_v26 = vmul.f32 0.0125, %v4090_v24  ;;  %v4368_v5 = vld [vmem:[#allocation8 + $0x10] sm:$0xff] }
 0xc65   : > { %v8263_v0 = vsub.f32 %v8171_v39, %v4106_v26  ;;  %v4137_v34 = vmul.f32 %v8260_v25, %v8260_v25  ;;  %v4369_v39 = vld [vmem:[#allocation8 + $0x18] sm:$0xff] }
 0xc66   : > { %v5531_v2 = vpack.c.bf16 %v4369_v39, %v4368_v5 }
 0xc67   : > { %v4181_v40 = vsel %vm766_vm2, %v4137_v34, 0.0  ;;  %v4138_v31 = vmul.f32 %v8263_v0, %v8263_v0 }
 0xc68   : > { %4182 = vadd.xlane.f32.xlu0 %v4181_v40  ;;  %5532 = vmatpush3.bf16.msra.mxu1 %v5531_v2 }
 0xc69   : > { %v4184_v20 = vsel %vm766_vm2, %v4138_v31, 0.0  ;;  %5533 = vmatprep.subr.bf16.mxu1 %v6284_v35 }
 0xc6a   : > { %4185 = vadd.xlane.f32.xlu1 %v4184_v20 }
 0xc6c   : > { %5535 = vmatpush3.bf16.msra.mxu1 %v5534_v44 }
 0xc6d   : > { %5536 = vmatprep.subr.bf16.mxu1 %v6284_v35 }
 0xc70   : > { %5538 = vmatpush3.bf16.msra.mxu1 %v5537_v59 }
 0xc71   : > { %5539 = vmatprep.subr.bf16.mxu1 %v6284_v35 }
 0xc74   : > { %5541 = vmatpush3.bf16.msra.mxu1 %v5540_v19 }
 0xc75   : > { %5543 = vmatprep.subr.bf16.mxu1 %v5542_v54 }
 0xcac   : > { %v4141_v38 = vpop.xlane.xlu0 %4140 }
 0xcad   : > { %v4187_v61 = vmul.f32 0.0125, %v4141_v38 }
 0xcae   : > { %v4144_v12 = vpop.xlane.xlu1 %4143 }
 0xcaf   : > { %v4188_v23 = vmul.f32 0.0125, %v4144_v12  ;;  %v4203_v31 = vadd.f32 1e-05, %v4187_v61 }
 0xcb1   : > { %v4204_v24 = vadd.f32 1e-05, %v4188_v23  ;;  %v8311_v23 = vld [vmem:[#allocation10 + $0x28] ss:$0 sm:$0xff] }
 0xcb3   : > { %6018 = vrsqrt.f32 %v4204_v24 }
 0xcb4   : > { %v4147_v13 = vpop.xlane.xlu0 %4146  ;;  %6020 = vrsqrt.f32 %v4203_v31 }
 0xcb5   : > { %v4189_v26 = vmul.f32 0.0125, %v4147_v13 }
 0xcb6   : > { %v4150_v9 = vpop.xlane.xlu1 %4149 }
 0xcb7   : > { %v4190_v18 = vmul.f32 0.0125, %v4150_v9  ;;  %v4205_v5 = vadd.f32 1e-05, %v4189_v26 }
 0xcb9   : > { %v4206_v16 = vadd.f32 1e-05, %v4190_v18 }
 0xcbb   : > { %6022 = vrsqrt.f32 %v4206_v16 }
 0xcbc   : > { %6024 = vrsqrt.f32 %v4205_v5 }
 0xcbd   : > { %v6019_v3 = vpop.eup %6018 }
 0xcbe   : > { %v6021_v19 = vpop.eup %6020  ;;  %v4236_v53 = vmul.f32 %v6019_v3, %v8179_v30 }
 0xcbf   : > { %v4235_v32 = vmul.f32 %v6021_v19, %v8176_v22 }
 0xcc0   : > { %v4253_v37 = vmul.f32 %v8303_v10, %v4236_v53 }
 0xcc1   : > { %v4252_v22 = vmul.f32 %v8303_v10, %v4235_v32 }
 0xcc2   : > { %v4270_v61 = vadd.f32 %v8311_v23, %v4253_v37 }
 0xcc4   : > { %v4153_v28 = vpop.xlane.xlu0 %4152  ;;  %v4286_v5 = vsel %vm766_vm2, %v4270_v61, 0.0 }
 0xcc5   : > { %v4191_v11 = vmul.f32 0.0125, %v4153_v28  ;;  %v6023_v46 = vpop.eup %6022 }
 0xcc6   : > { %v4156_v6 = vpop.xlane.xlu1 %4155  ;;  %v6025_v36 = vpop.eup %6024  ;;  %v4238_v43 = vmul.f32 %v6023_v46, %v8191_v62 }
 0xcc7   : > { %v4192_v34 = vmul.f32 0.0125, %v4156_v6  ;;  %v4207_v2 = vadd.f32 1e-05, %v4191_v11  ;;  %v4237_v12 = vmul.f32 %v6025_v36, %v8188_v15 }
 0xcc8   : > { %v4255_v62 = vmul.f32 %v8303_v10, %v4238_v43 }
 0xcc9   : > { %v4208_v29 = vadd.f32 1e-05, %v4192_v34  ;;  %v4254_v15 = vmul.f32 %v8303_v10, %v4237_v12  ;;  %v4269_v34 = vadd.f32 %v8311_v23, %v4252_v22 }
 0xccb   : > { %6026 = vrsqrt.f32 %v4208_v29 }
 0xcd0   : > { %v4159_v40 = vpop.xlane.xlu0 %4158 }
 0xcd1   : > { %v4193_v35 = vmul.f32 0.0125, %v4159_v40 }
 0xcd2   : > { %v4162_v45 = vpop.xlane.xlu1 %4161 }
 0xcd3   : > { %v4194_v20 = vmul.f32 0.0125, %v4162_v45  ;;  %v4209_v50 = vadd.f32 1e-05, %v4193_v35  ;;  %v4271_v35 = vadd.f32 %v8311_v23, %v4254_v15 }
 0xcd5   : > { %v4210_v39 = vadd.f32 1e-05, %v4194_v20  ;;  %v6027_v14 = vpop.eup %6026  ;;  %v4272_v20 = vadd.f32 %v8311_v23, %v4255_v62 }
 0xcd6   : > { %v4240_v38 = vmul.f32 %v6027_v14, %v8203_v63 }
 0xcd7   : > { %6028 = vrsqrt.f32 %v4210_v39 }
 0xcd8   : > { %6030 = vrsqrt.f32 %v4207_v2  ;;  %v4257_v24 = vmul.f32 %v8303_v10, %v4240_v38 }
 0xcd9   : > { %6032 = vrsqrt.f32 %v4209_v50  ;;  %v4285_v50 = vsel %vm766_vm2, %v4269_v34, 0.0 }
 0xcda   : > { %v4274_v39 = vadd.f32 %v8311_v23, %v4257_v24  ;;  %v4287_v3 = vadd.f32 %v4286_v5, %v4285_v50 }
 0xcdc   : > { %v4304_v36 = vsel %vm766_vm2, %v4274_v39, 0.0 }
 0xcdd   : > { %v4165_v47 = vpop.xlane.xlu0 %4164 }
 0xcde   : > { %v4195_v44 = vmul.f32 0.0125, %v4165_v47 }
 0xcdf   : > { %v4168_v42 = vpop.xlane.xlu1 %4167 }
 0xce0   : > { %v4211_v27 = vadd.f32 1e-05, %v4195_v44  ;;  %v4196_v59 = vmul.f32 0.0125, %v4168_v42  ;;  %v4295_v42 = vsel %vm766_vm2, %v4272_v20, 0.0 }
 0xce1   : > { %v6029_v55 = vpop.eup %6028 }
 0xce2   : > { %6034 = vrsqrt.f32 %v4211_v27  ;;  %v4212_v7 = vadd.f32 1e-05, %v4196_v59  ;;  %v6031_v60 = vpop.eup %6030  ;;  %v4242_v13 = vmul.f32 %v6029_v55, %v8215_v58 }
 0xce3   : > { %v6033_v30 = vpop.eup %6032  ;;  %v4239_v28 = vmul.f32 %v6031_v60, %v8200_v4 }
 0xce4   : > { %6036 = vrsqrt.f32 %v4212_v7  ;;  %v4241_v63 = vmul.f32 %v6033_v30, %v8212_v1  ;;  %v4259_v40 = vmul.f32 %v8303_v10, %v4242_v13 }
 0xce5   : > { %v4171_v54 = vpop.xlane.xlu0 %4170  ;;  %v4256_v16 = vmul.f32 %v8303_v10, %v4239_v28 }
 0xce6   : > { %v4197_v48 = vmul.f32 0.0125, %v4171_v54  ;;  %v4276_v47 = vadd.f32 %v8311_v23, %v4259_v40  ;;  %v4294_v54 = vsel %vm766_vm2, %v4271_v35, 0.0 }
 0xce7   : > { %v4174_v17 = vpop.xlane.xlu1 %4173  ;;  %v4273_v27 = vadd.f32 %v8311_v23, %v4256_v16  ;;  %v4296_v32 = vadd.f32 %v4295_v42, %v4294_v54 }
 0xce8   : > { %v4213_v21 = vadd.f32 1e-05, %v4197_v48  ;;  %v4198_v33 = vmul.f32 0.0125, %v4174_v17  ;;  %v4313_v17 = vsel %vm766_vm2, %v4276_v47, 0.0 }
 0xce9   : > { %v4297_v61 = vrot.slane %v4296_v32, 4 }
 0xcea   : > { %6038 = vrsqrt.f32 %v4213_v21  ;;  %v4214_v9 = vadd.f32 1e-05, %v4198_v33  ;;  %v4303_v33 = vsel %vm766_vm2, %v4273_v27, 0.0 }
 0xceb   : > { %v4305_v12 = vadd.f32 %v4304_v36, %v4303_v33  ;;  %v4298_v20 = vadd.f32 %v4297_v61, %v4296_v32 }
 0xcec   : > { %v6035_v6 = vpop.eup %6034  ;;  %6040 = vrsqrt.f32 %v4214_v9 }
 0xced   : > { %v4177_v18 = vpop.xlane.xlu0 %4176  ;;  %v4243_v58 = vmul.f32 %v6035_v6, %v8224_v41  ;;  %v4258_v41 = vmul.f32 %v8303_v10, %v4241_v63  ;;  %v4306_v15 = vrot.slane %v4305_v12, 4 }
 0xcee   : > { %v6037_v45 = vpop.eup %6036  ;;  %v4199_v26 = vmul.f32 0.0125, %v4177_v18 }
 0xcef   : > { %v4244_v4 = vmul.f32 %v6037_v45, %v8227_v57  ;;  %v4180_v31 = vpop.xlane.xlu1 %4179  ;;  %v4260_v2 = vmul.f32 %v8303_v10, %v4243_v58  ;;  %v4275_v7 = vadd.f32 %v8311_v23, %v4258_v41  ;;  %v4288_v58 = vrot.slane %v4287_v3, 4 }
 0xcf0   : > { %v4215_v11 = vadd.f32 1e-05, %v4199_v26  ;;  %v4200_v1 = vmul.f32 0.0125, %v4180_v31 }
 0xcf1   : > { %v4261_v29 = vmul.f32 %v8303_v10, %v4244_v4  ;;  %v4277_v48 = vadd.f32 %v8311_v23, %v4260_v2  ;;  %v4312_v30 = vsel %vm766_vm2, %v4275_v7, 0.0  ;;  %v4289_v35 = vadd.f32 %v4288_v58, %v4287_v3 }
 0xcf2   : > { %6042 = vrsqrt.f32 %v4215_v11  ;;  %v4216_v57 = vadd.f32 1e-05, %v4200_v1  ;;  %v4314_v22 = vadd.f32 %v4313_v17, %v4312_v30  ;;  %v4307_v11 = vadd.f32 %v4306_v15, %v4305_v12 }
 0xcf3   : > { %v4278_v59 = vadd.f32 %v8311_v23, %v4261_v29  ;;  %v4321_v13 = vsel %vm766_vm2, %v4277_v48, 0.0  ;;  %v4299_v2 = vrot.slane %v4298_v20, 2  ;;  %v4290_v27 = vrot.slane %v4289_v35, 2 }
 0xcf4   : > { %v6039_v44 = vpop.eup %6038  ;;  %6044 = vrsqrt.f32 %v4216_v57  ;;  %v4315_v26 = vrot.slane %v4314_v22, 4  ;;  %v4308_v50 = vrot.slane %v4307_v11, 2 }
 0xcf5   : > { %v4245_v19 = vmul.f32 %v6039_v44, %v8236_v56  ;;  %v4183_v46 = vpop.xlane.xlu0 %4182  ;;  %v4322_v56 = vsel %vm766_vm2, %v4278_v59, 0.0  ;;  %v4291_v17 = vadd.f32 %v4290_v27, %v4289_v35  ;;  %v4472_v35 = vld [vmem:[%s8658_s7] sm:$0xff]  ;;  %v4482_v27 = vld [vmem:[%s8658_s7 + $0x50] sm:$0xff] }
 0xcf6   : > { %v6041_v53 = vpop.eup %6040  ;;  %v4201_v14 = vmul.f32 0.0125, %v4183_v46  ;;  %v4316_v41 = vadd.f32 %v4315_v26, %v4314_v22  ;;  %v4309_v48 = vadd.f32 %v4308_v50, %v4307_v11 }
 0xcf7   : > { %v4262_v55 = vmul.f32 %v8303_v10, %v4245_v19  ;;  %v4246_v43 = vmul.f32 %v6041_v53, %v8239_v52  ;;  %v4186_v21 = vpop.xlane.xlu1 %4185  ;;  %v4323_v52 = vadd.f32 %v4322_v56, %v4321_v13  ;;  %v4300_v53 = vadd.f32 %v4299_v2, %v4298_v20  ;;  %v4488_v2 = vld [vmem:[%s8658_s7 + $0x80] sm:$0xff] }
 0xcf8   : > { %v4217_v60 = vadd.f32 1e-05, %v4201_v14  ;;  %v4202_v37 = vmul.f32 0.0125, %v4186_v21  ;;  %v4317_v59 = vrot.slane %v4316_v41, 2  ;;  %v4292_v30 = vrot.slane %v4291_v17, 1 }
 0xcf9   : > { %v4279_v38 = vadd.f32 %v8311_v23, %v4262_v55  ;;  %v4263_v9 = vmul.f32 %v8303_v10, %v4246_v43  ;;  %v4324_v40 = vrot.slane %v4323_v52, 4  ;;  %v4301_v33 = vrot.slane %v4300_v53, 1 }
 0xcfa   : > { %6046 = vrsqrt.f32 %v4217_v60  ;;  %v4218_v6 = vadd.f32 1e-05, %v4202_v37  ;;  %v4318_v55 = vadd.f32 %v4317_v59, %v4316_v41  ;;  %v4310_v37 = vrot.slane %v4309_v48, 1  ;;  %v4477_v41 = vld [vmem:[%s8658_s7 + $0x28] sm:$0xff]  ;;  %v4487_v59 = vld [vmem:[%s8658_s7 + $0x78] sm:$0xff] }
 0xcfb   : > { %v4280_v62 = vadd.f32 %v8311_v23, %v4263_v9  ;;  %v4330_v63 = vsel %vm766_vm2, %v4279_v38, 0.0  ;;  %v4325_v29 = vadd.f32 %v4324_v40, %v4323_v52 }
 0xcfc   : > { %v6043_v28 = vpop.eup %6042  ;;  %6048 = vrsqrt.f32 %v4218_v6  ;;  %v4319_v9 = vrot.slane %v4318_v55, 1 }
 0xcfd   : > { %v4331_v18 = vsel %vm766_vm2, %v4280_v62, 0.0  ;;  %v4247_v45 = vmul.f32 %v6043_v28, %v8248_v49  ;;  %v4326_v19 = vrot.slane %v4325_v29, 2  ;;  %v4311_v62 = vadd.f32 %v4310_v37, %v4309_v48  ;;  %v4503_v48 = vld [vmem:[%s8658_s7 + $0xf8] sm:$0xff]  ;;  %v4517_v37 = vld [vmem:[%s8658_s7 + $0x168] sm:$0xff] }
 0xcfe   : > { %v6045_v24 = vpop.eup %6044  ;;  %v4332_v34 = vadd.f32 %v4331_v18, %v4330_v63  ;;  %v4320_v61 = vadd.f32 %v4319_v9, %v4318_v55  ;;  %v4502_v55 = vld [vmem:[%s8658_s7 + $0xf0] sm:$0xff]  ;;  %v4475_v9 = vld [vmem:[%s8658_s7 + $0x18] sm:$0xff] }
 0xcff   : > { %v4264_v4 = vmul.f32 %v8303_v10, %v4247_v45  ;;  %v4248_v31 = vmul.f32 %v6045_v24, %v8251_v8  ;;  %v4327_v21 = vadd.f32 %v4326_v19, %v4325_v29  ;;  %v4360_v26 = vmul.f32 0.0625, %v4311_v62  ;;  %v4493_v19 = vld [vmem:[%s8658_s7 + $0xa8] sm:$0xff] }
 0xd00   : > { %v4333_v16 = vrot.slane %v4332_v34, 4 }
 0xd01   : > { %v4281_v1 = vadd.f32 %v8311_v23, %v4264_v4  ;;  %v4265_v5 = vmul.f32 %v8303_v10, %v4248_v31  ;;  %v4328_v13 = vrot.slane %v4327_v21, 1  ;;  %v4361_v4 = vmul.f32 0.0625, %v4320_v61 }
 0xd02   : > { %v4334_v57 = vadd.f32 %v4333_v16, %v4332_v34 }
 0xd03   : > { %v4282_v49 = vadd.f32 %v8311_v23, %v4265_v5  ;;  %v4339_v47 = vsel %vm766_vm2, %v4281_v1, 0.0  ;;  %v4329_v63 = vadd.f32 %v4328_v13, %v4327_v21  ;;  %v4513_v21 = vld [vmem:[%s8658_s7 + $0x148] sm:$0xff] }
 0xd04   : > { %v6047_v39 = vpop.eup %6046  ;;  %v4335_v36 = vrot.slane %v4334_v57, 2 }
 0xd05   : > { %v4340_v8 = vsel %vm766_vm2, %v4282_v49, 0.0  ;;  %v4249_v44 = vmul.f32 %v6047_v39, %v8260_v25  ;;  %v4362_v31 = vmul.f32 0.0625, %v4329_v63  ;;  %v4483_v39 = vld [vmem:[%s8658_s7 + $0x58] sm:$0xff] }
 0xd06   : > { %v6049_v42 = vpop.eup %6048  ;;  %v4341_v7 = vadd.f32 %v4340_v8, %v4339_v47  ;;  %v4336_v56 = vadd.f32 %v4335_v36, %v4334_v57  ;;  %v5544_v8 = vpack.c.bf16 %v4477_v41, %v4472_v35  ;;  %v4497_v36 = vld [vmem:[%s8658_s7 + $0xc8] sm:$0xff]  ;;  %v4515_v41 = vld [vmem:[%s8658_s7 + $0x158] sm:$0xff] }
 0xd07   : > { %v4266_v3 = vmul.f32 %v8303_v10, %v4249_v44  ;;  %v4250_v46 = vmul.f32 %v6049_v42, %v8263_v0  ;;  %v5546_v42 = vpack.c.bf16 %v4488_v2, %v4483_v39  ;;  %v4509_v35 = vld [vmem:[%s8658_s7 + $0x128] sm:$0xff]  ;;  %v4514_v2 = vld [vmem:[%s8658_s7 + $0x150] sm:$0xff] }
 0xd08   : > { %v4342_v54 = vrot.slane %v4341_v7, 4  ;;  %v4337_v6 = vrot.slane %v4336_v56, 1 }
 0xd09   : > { %v4283_v14 = vadd.f32 %v8311_v23, %v4266_v3  ;;  %v4267_v32 = vmul.f32 %v8303_v10, %v4250_v46  ;;  %v4302_v10 = vadd.f32 %v4301_v33, %v4300_v53  ;;  %v4498_v3 = vld [vmem:[%s8658_s7 + $0xd0] sm:$0xff]  ;;  %v5548_v46 = vpack.c.bf16 %v4487_v59, %v4482_v27  ;;  %v8660_v59 = vld [vmem:[#allocation34_spill] sm:$0xff] }
 0xd0a   : > { %v4343_v25 = vadd.f32 %v4342_v54, %v4341_v7  ;;  %v4338_v45 = vadd.f32 %v4337_v6, %v4336_v56  ;;  %v5550_v53 = vpack.c.bf16 %v4498_v3, %v4493_v19  ;;  %v4492_v54 = vld [vmem:[%s8658_s7 + $0xa0] sm:$0xff]  ;;  %v4518_v33 = vld [vmem:[%s8658_s7 + $0x170] sm:$0xff]  ;;  %v8661_v3 = vld [vmem:[#allocation35_spill] sm:$0xff] }
 0xd0b   : > { %v4284_v43 = vadd.f32 %v8311_v23, %v4267_v32  ;;  %v4348_v0 = vsel %vm766_vm2, %v4283_v14, 0.0  ;;  %v4293_v23 = vadd.f32 %v4292_v30, %v4291_v17  ;;  %v4359_v18 = vmul.f32 0.0625, %v4302_v10  ;;  %v4508_v14 = vld [vmem:[%s8658_s7 + $0x120] sm:$0xff]  ;;  %v4376_v10 = vld [vmem:[#allocation10 + $0x29] ss:$0 sm:$0xff]  ;;  %v4474_v6 = vld [vmem:[%s8658_s7 + $0x10] sm:$0xff] }
 0xd0c   : > { %v4344_v60 = vrot.slane %v4343_v25, 2  ;;  %v4363_v16 = vmul.f32 0.0625, %v4338_v45  ;;  %v5552_v32 = vpack.c.bf16 %v4497_v36, %v4492_v54  ;;  %v5554_v17 = vpack.c.bf16 %v4508_v14, %v4503_v48  ;;  %v4512_v56 = vld [vmem:[%s8658_s7 + $0x140] sm:$0xff] }
 0xd0d   : > { %v4349_v12 = vsel %vm766_vm2, %v4284_v43, 0.0  ;;  %v4358_v34 = vmul.f32 0.0625, %v4293_v23  ;;  %v5560_v30 = vpack.c.bf16 %v4517_v37, %v4512_v56  ;;  %v4490_v23 = vld [vmem:[%s8658_s7 + $0x90] sm:$0xff] }
 0xd0e   : > { %v4350_v38 = vadd.f32 %v4349_v12, %v4348_v0  ;;  %v4345_v22 = vadd.f32 %v4344_v60, %v4343_v25  ;;  %v4507_v25 = vld [vmem:[%s8658_s7 + $0x118] sm:$0xff]  ;;  %v5558_v60 = vpack.c.bf16 %v4518_v33, %v4513_v21  ;;  %v4516_v0 = vld [vmem:[%s8658_s7 + $0x160] sm:$0xff]  ;;  %v4521_v12 = vld [vmem:[%s8658_s7 + $0x188] sm:$0xff] }
 0xd0f   : > { %v4386_v11 = vsel %vm4385_vm5, %v4359_v18, %v4358_v34  ;;  %v5556_v43 = vpack.c.bf16 %v4507_v25, %v4502_v55  ;;  %v4500_v34 = vld [vmem:[%s8658_s7 + $0xe0] sm:$0xff] }
 0xd10   : > { %v4351_v52 = vrot.slane %v4350_v38, 4  ;;  %v4346_v28 = vrot.slane %v4345_v22, 1  ;;  %v4388_v5 = vsel %vm4387_vm6, %v4360_v26, %v4386_v11  ;;  %v4495_v26 = vld [vmem:[%s8658_s7 + $0xb8] sm:$0xff]  ;;  %v4510_v11 = vld [vmem:[%s8658_s7 + $0x130] sm:$0xff] }
 0xd11   : > { %v4390_v49 = vsel %vm4389_vm7, %v4361_v4, %v4388_v5  ;;  %v5570_v4 = vpack.c.bf16 %v4500_v34, %v4495_v26  ;;  %v4504_v5 = vld [vmem:[%s8658_s7 + $0x100] sm:$0xff] }
 0xd12   : > { %v4352_v15 = vadd.f32 %v4351_v52, %v4350_v38  ;;  %v4347_v58 = vadd.f32 %v4346_v28, %v4345_v22  ;;  %v4392_v57 = vsel %vm4391_vm8, %v4362_v31, %v4390_v49  ;;  %v5595_v38 = vpack.c.bf16 %v4521_v12, %v4516_v0  ;;  %v4480_v22 = vld [vmem:[%s8658_s7 + $0x40] sm:$0xff]  ;;  %v4479_v52 = vld [vmem:[%s8658_s7 + $0x38] sm:$0xff]  ;;  %v4485_v28 = vld [vmem:[%s8658_s7 + $0x68] sm:$0xff] }
 0xd13   : > { %v4394_v47 = vsel %vm4393_vm9, %v4363_v16, %v4392_v57  ;;  %v5562_v13 = vpack.c.bf16 %v4480_v22, %v4475_v9  ;;  %v5564_v63 = vpack.c.bf16 %v4479_v52, %v4474_v6  ;;  %v5566_v45 = vpack.c.bf16 %v4490_v23, %v4485_v28  ;;  %v4494_v31 = vld [vmem:[%s8658_s7 + $0xb0] sm:$0xff]  ;;  %v4505_v16 = vld [vmem:[%s8658_s7 + $0x108] sm:$0xff]  ;;  %v4519_v57 = vld [vmem:[%s8658_s7 + $0x178] sm:$0xff] }
 0xd14   : > { %v4353_v24 = vrot.slane %v4352_v15, 2  ;;  %v4364_v1 = vmul.f32 0.0625, %v4347_v58  ;;  %5596 = vmatpush3.bf16.msra.mxu0 %v5595_v38  ;;  %v4489_v58 = vld [vmem:[%s8658_s7 + $0x88] sm:$0xff]  ;;  %v5576_v49 = vpack.c.bf16 %v4509_v35, %v4504_v5 }
 0xd16   : > { %v4354_v40 = vadd.f32 %v4353_v24, %v4352_v15  ;;  %v4396_v44 = vsel %vm4395_vm10, %v4364_v1, %v4394_v47  ;;  %v4484_v24 = vld [vmem:[%s8658_s7 + $0x60] sm:$0xff]  ;;  %v5574_v1 = vpack.c.bf16 %v4510_v11, %v4505_v16 }
 0xd17   : > { %v4523_v47 = vld [vmem:[#allocation10 + $0x2a] ss:$8 sm:$0xf] }
 0xd18   : > { %v4355_v20 = vrot.slane %v4354_v40, 1 }
 0xd1a   : > { %v4356_v29 = vadd.f32 %v4355_v20, %v4354_v40  ;;  %v5568_v40 = vpack.c.bf16 %v4489_v58, %v4484_v24  ;;  %v4499_v20 = vld [vmem:[%s8658_s7 + $0xd8] sm:$0xff] }
 0xd1c   : > { %v4365_v50 = vmul.f32 0.0625, %v4356_v29  ;;  %v4520_v29 = vld [vmem:[%s8658_s7 + $0x180] sm:$0xff] }
 0xd1d   : > { %v5578_v39 = vpack.c.bf16 %v4520_v29, %v4515_v41 }
 0xd1e   : > { %v4398_v7 = vsel %vm4397_vm11, %v4365_v50, %v4396_v44  ;;  %v5580_v50 = vpack.c.bf16 %v4519_v57, %v4514_v2 }
 0xd1f   : > { %5502 = vmatmul.mubr.msk.f32.vlgmr.msra.gmra.mrb[136].mxu1 %vm766_vm2, %v4398_v7 }
 0xd20   : > { %5545 = vmatpush1.bf16.msra.mxu1 %v5544_v8  ;;  %4619 = vmatprep.mubr.f32.mxu1 %v8631_v51  ;;  %v4524_v8 = vld [vmem:[#allocation10 + $0x2a] ss:$8 sm:$0x10] }
 0xd21   : > { %5547 = vmatprep.subr.bf16.mxu1 %v5546_v42  ;;  %v4525_v44 = vor.u32 %v4524_v8, %v4523_v47  ;;  %v8659_v42 = vld [vmem:[#allocation33_spill] sm:$0xff] }
 0xd22   : > { %v4545_v27 = vsub.s32 4, %v8659_v42  ;;  %v8662_v55 = vsub.s32 2, %v8659_v42 }
 0xd23   : > { %v4530_v7 = vrot.slane %v4525_v44, %v8660_v59 }
 0xd24   : > { %5549 = vmatpush1.bf16.msra.mxu1 %v5548_v46  ;;  %v4546_v19 = vrot.slane %v4525_v44, %v4545_v27  ;;  %v4534_v46 = vrot.slane %v4525_v44, %v8661_v3  ;;  %v4538_v25 = vrot.slane %v4525_v44, %v8662_v55 }
 0xd25   : > { %5551 = vmatprep.subr.bf16.mxu1 %v5550_v53 }
 0xd28   : > { %5553 = vmatpush1.bf16.msra.mxu1 %v5552_v32 }
 0xd29   : > { %5555 = vmatprep.subr.bf16.mxu1 %v5554_v17 }
 0xd2c   : > { %5557 = vmatpush1.bf16.msra.mxu1 %v5556_v43  ;;  %v8663_v43 = vsub.s32 3, %v8659_v42 }
 0xd2d   : > { %5559 = vmatprep.subr.bf16.mxu1 %v5558_v60 }
 0xd2e   : > { %v4542_v21 = vrot.slane %v4525_v44, %v8663_v43 }
 0xd30   : > { %5561 = vmatpush1.bf16.msra.mxu1 %v5560_v30 }
 0xd31   : > { %5563 = vmatprep.subr.bf16.mxu1 %v5562_v13 }
 0xdf2   : > { %v4467_v62 = vpop.f32.mrb[136].mxu1 }
 0xdf3   : > { %v4468_v61 = vadd.f32 %v4467_v62, %v4376_v10  ;;  %v5503_v15 = vpop.f32.mrb[137].mxu1 }
 0xdf5   : > { %v4471_v18 = vmax.f32 %v4468_v61, 0.0 }
 0xdf7   : > { %5034 = vmatmul.mubr.msk.f32.vlgmr.msra.gmra.mrb[138].mxu1 %vm766_vm2, %v4471_v18  ;;  %5525 = vmatmul.mubr.msk.f32.vlgmr.msra.gmra.mrb[168].mxu0 %vm766_vm2, %v4471_v18 }
 0xdf8   : > { %5565 = vmatpush1.bf16.msra.mxu1 %v5564_v63  ;;  %4690 = vmatprep.mubr.f32.mxu1 %v8631_v51  ;;  %v5572_v51 = vpack.c.bf16 %v4499_v20, %v4494_v31 }
 0xdf9   : > { %5567 = vmatprep.subr.bf16.mxu1 %v5566_v45 }
 0xdfc   : > { %5569 = vmatpush1.bf16.msra.mxu1 %v5568_v40 }
 0xdfd   : > { %5571 = vmatprep.subr.bf16.mxu1 %v5570_v4 }
 0xe00   : > { %5573 = vmatpush1.bf16.msra.mxu1 %v5572_v51 }
 0xe01   : > { %5575 = vmatprep.subr.bf16.mxu1 %v5574_v1 }
 0xe04   : > { %5577 = vmatpush1.bf16.msra.mxu1 %v5576_v49 }
 0xe05   : > { %5579 = vmatprep.subr.bf16.mxu1 %v5578_v39 }
 0xe08   : > { %5581 = vmatpush1.bf16.msra.mxu1 %v5580_v50 }
 0xe0b   : > { %5035 = vmatmul.mubr.msk.f32.vlgmr.msra.gmra.mrb[140].mxu1 %vm766_vm2, %v4471_v18 }
 0xeca   : > { %v4621_v53 = vpop.f32.mrb[138].mxu1  ;;  %v4763_v54 = vpop.f32.mrb[168].mxu0 }
 0xecb   : > { %v4622_v36 = vadd.f32 %v4621_v53, %v4530_v7  ;;  %v4764_v48 = vadd.f32 %v4763_v54, %v4546_v19  ;;  %v4623_v14 = vpop.f32.mrb[139].mxu1  ;;  %v5526_v32 = vpop.f32.mrb[169].mxu0 }
 0xecc   : > { %v4624_v17 = vadd.f32 %v4623_v14, %v4534_v46 }
 0xecd   : > { %4767 = vst [vmem:[%s409_s9] sm:$0xff] %v4622_v36  ;;  %4771 = vst [vmem:[%s409_s9 + $0x20] sm:$0xff] %v4764_v48 }
 0xece   : > { %4768 = vst [vmem:[%s409_s9 + $0x8] sm:$0xff] %v4624_v17 }
 0xede   : > { %v4692_v33 = vpop.f32.mrb[140].mxu1 }
 0xedf   : > { %v4693_v56 = vadd.f32 %v4692_v33, %v4538_v25  ;;  %v4694_v60 = vpop.f32.mrb[141].mxu1 }
 0xee0   : > { %v4695_v37 = vadd.f32 %v4694_v60, %v4542_v21 }
 0xee1   : > { %4769 = vst [vmem:[%s409_s9 + $0x10] sm:$0xff] %v4693_v56 }
 0xee2   : > { %4770 = vst [vmem:[%s409_s9 + $0x18] sm:$0xff] %v4695_v37 }
 0xee3   : > { %6205 = shalt.err (!%p6202_p13)
}
 0xee4   : > { %s6206_s19 = scalar_lea.hbm %s8507_s20, 640  ;;  %s6210_s9 = scalar_lea.hbm %s8665_s28, 1280 }
 0xee5   : > { %p6207_p0 = scmp.ne.s32.totalorder %s8507_s20, %s6206_s19  ;;  %p6211_p1 = scmp.lt.u32.totalorder %s8507_s20, %s8665_s28 }
 0xee6   : > { %p6212_p2 = scmp.lt.u32.totalorder %s6210_s9, %s6206_s19  ;;  %p6214_p6 = scmp.lt.u32.totalorder %s6206_s19, %s8507_s20 }
 0xee7   : > { %p6208_p5 = pnand %p6207_p0, %p6481_p8 }
 0xee8   : > { %p6213_p4 = por %p6212_p2, %p6211_p1 }
 0xee9   : > { %p6209_p11 = pneg %p6208_p5 }
 0xeea   : > { %p6215_p10 = por %p6214_p6, %p6213_p4 }
 0xeec   : > { %p6216_p12 = pnand %p6215_p10, %p6209_p11 }
 0xeee   : > { %6219 = shalt.err (!%p6216_p12)
}
 0xeef   : > { %5625 = dma.vmem_to_hbm [thread:$0]  (%p6481_p8), %s8509_s29, 640, %s8507_s20, %s4773_s25  }
 0xef0 PF: > { %s8666_s15 = sld [smem:[#allocation16_spill]]  ;;  %s8667_s30 = sld [smem:[#allocation17_spill]] }
 0xef1   : > { %p8669_p7 = scmp.ge.s32.totalorder %s6266_s12, 2 }
 0xef6   : > { %s4799_s26 = sand.u32 1, %s8666_s15   ;;  %p8668_p3 = scmp.ne.s32.totalorder %s8667_s30, 0 }
 0xef7   : > { %s4800_s13 = scalar_lea.sflag [#allocation4], %s4799_s26 }
 0xef8   : > { %p5645_p9 = pnand %p8669_p7, %p8668_p3 }
 0xefa   : > { %6249 = dma.done.wait (!%p5645_p9), %s4800_s13, 640  }
 0xefb   : > { %6251 = vsyncadd (!%p5645_p9), %s4800_s13, 4294966656  ;;  %p24_p13 = scmp.ge.s32.totalorder %s6468_s22, 4   ;;  %s8670_s30 = smov %s6258_s10 }
 0xefc   : > { %s8671_s10 = smov %s6262_s11  ;;  %s8672_s11 = smov %s6477_s16 }
 0xefd   : > { %s8673_s12 = smov %s6468_s22  ;;  %26 = sbr.rel (!%p24_p13) target bundleno = 10 (0xa), region = 120 }
 0xf04   :  { %4805 = vsyncpa [#allocation3], 1 }
 0xf05   :  { %4807 = vsyncpa [#allocation3 + $0x1], 1 }
 0xf06   :  { %4808 = vsyncpa [#allocation6], 1 }
 0xf07   :  { %4809 = vsyncpa [#allocation9], 1 }
 0xf08   :  { %4810 = vsyncpa [#allocation4], 1 }
 0xf09   :  { %4812 = vsyncpa [#allocation4 + $0x1], 1 }

</bundles_post_ra>
